<compile_context>
chip_gen: v7x
topology: tpu7x:2x2x1
jax: 0.10.0
libtpu: 0.0.40
codegen_flags: <defaults>
</compile_context>

<pallas_src>
import functools

import jax
import jax.numpy as jnp
from jax import lax
from jax.experimental import pallas as pl
from jax.experimental.pallas import tpu as pltpu

_BN_EPS = 1e-5
_LANE = 128


def _round_up(x, m):
    return (x + m - 1) // m * m


def _vmem_budget_bytes():
    """Generation-aware scoped-VMEM budget (v5e/v6e: 128 MiB, v7x: 64 MiB)."""
    try:
        cap = int(pltpu.get_tpu_info().vmem_capacity_bytes)
    except Exception:
        cap = 64 * 1024 * 1024  # conservative (v7x-sized) default
    return max(16 * 1024 * 1024, min(cap // 2, 96 * 1024 * 1024))


def _pad_out_channels(o):
    # >=128 lanes for unmasked stores / full MXU columns; multiples of 256 when
    # o > 128 for the 256-wide v6e/v7x MXUs (extra zero columns are free-ish).
    return _LANE if o <= _LANE else _round_up(o, 256)


# ----------------------------------------------------------------------------
# Fused path (stride 1): shift-and-matmul over the k*k taps, no HBM im2col.
# x is the per-image padded activation flattened to [Hp*Wp (+k-1), C]; tap
# (ki,kj) is the contiguous row window starting at ki*Wp + kj.  Full-width rows
# (Wp instead of OW) are computed; junk columns are masked out of the stats and
# sliced off on the host.
# ----------------------------------------------------------------------------
def _fused_stats_kernel(x_ref, w_ref, mask_ref, s1_ref, s2_ref, *, k, rows,
                        row_stride):
    op = w_ref.shape[-1]
    acc = jnp.zeros((rows, op), jnp.float32)
    for ki in range(k):
        for kj in range(k):
            off = ki * row_stride + kj
            acc += jnp.dot(x_ref[off:off + rows, :], w_ref[ki * k + kj],
                           preferred_element_type=jnp.float32)
    # TODO(synk): for tiny K the sums below bound the VPU/XLU; a ones-row matmul
    # could offload the column sum to the MXU if the bundle dump shows it.
    m = mask_ref[...]
    s1_ref[...] = jnp.sum(acc * m, axis=0, keepdims=True)
    s2_ref[...] = jnp.sum(acc * acc * m, axis=0, keepdims=True)


def _fused_apply_kernel(x_ref, w_ref, scale_ref, shift_ref, o_ref, *, k, rows,
                        row_stride):
    op = w_ref.shape[-1]
    acc = jnp.zeros((rows, op), jnp.float32)
    for ki in range(k):
        for kj in range(k):
            off = ki * row_stride + kj
            acc += jnp.dot(x_ref[off:off + rows, :], w_ref[ki * k + kj],
                           preferred_element_type=jnp.float32)
    o_ref[...] = jnp.maximum(acc * scale_ref[...] + shift_ref[...],
                             0.0).astype(o_ref.dtype)


# ----------------------------------------------------------------------------
# Matmul path (1x1 fast path and strided-conv fallback): patches @ W.
# ----------------------------------------------------------------------------
def _matmul_stats_kernel(p_ref, w_ref, s1_ref, s2_ref):
    y = jnp.dot(p_ref[...], w_ref[...], preferred_element_type=jnp.float32)
    s1_ref[...] = jnp.sum(y, axis=0, keepdims=True)
    s2_ref[...] = jnp.sum(y * y, axis=0, keepdims=True)


def _matmul_apply_kernel(p_ref, w_ref, scale_ref, shift_ref, o_ref):
    y = jnp.dot(p_ref[...], w_ref[...], preferred_element_type=jnp.float32)
    o_ref[...] = jnp.maximum(y * scale_ref[...] + shift_ref[...],
                             0.0).astype(o_ref.dtype)


def _im2col_nhwc(x_nhwc, k, s, p):
    """x: [N,H,W,C] -> patches [N*OH*OW, k*k*C] (tap-major, C lane-contiguous)."""
    n, h, w, c = x_nhwc.shape
    xp = jnp.pad(x_nhwc, ((0, 0), (p, p), (p, p), (0, 0)))
    oh = (h + 2 * p - k) // s + 1
    ow = (w + 2 * p - k) // s + 1
    taps = [xp[:, ki:ki + s * oh:s, kj:kj + s * ow:s, :]
            for ki in range(k) for kj in range(k)]
    pat = jnp.stack(taps, axis=3).reshape(n * oh * ow, k * k * c)
    return pat, oh, ow


def _pick_block_m(kdim, o_pad, m, out_itemsize, budget):
    """Largest M tile (mult. of 256) whose working set fits ~60% of VMEM budget."""
    w_bytes = kdim * o_pad * 2
    row_bytes = 2 * kdim * 2 + 2 * o_pad * max(out_itemsize, 4) + o_pad * 4
    avail = int(0.6 * budget) - w_bytes
    bm = max(256, min(4096, (avail // max(row_bytes, 1)) // 256 * 256))
    # TODO(synk): for huge K*O layers (resident weight alone near the budget)
    # add an O or K grid axis instead of shrinking block_m.
    return min(bm, max(256, _round_up(m, 256)))


def _bn_scale_shift(s1, s2, gamma, beta, m, o, o_pad):
    """Reduce per-tile sums -> BN scale/shift (biased var, training-mode)."""
    inv_m = 1.0 / float(m)
    mean = jnp.sum(s1[:, 0, :], axis=0) * inv_m
    ex2 = jnp.sum(s2[:, 0, :], axis=0) * inv_m
    var = jnp.maximum(ex2 - mean * mean, 0.0)
    gamma_p = jnp.pad(gamma.astype(jnp.float32), (0, o_pad - o))
    beta_p = jnp.pad(beta.astype(jnp.float32), (0, o_pad - o))
    scale = gamma_p * lax.rsqrt(var + _BN_EPS)
    shift = beta_p - mean * scale
    return scale.reshape(1, o_pad), shift.reshape(1, o_pad)


@functools.partial(jax.jit,
                   static_argnames=("k", "s", "p", "out_layout", "out_dtype"))
def conv_bn_relu(x, weight, gamma, beta, *, k=1, s=1, p=0,
                 out_layout="NCHW", out_dtype=None):
    """Forward of Conv(in_ch, out_ch, ReLU, k, s, p).

    x:      [N, in_ch, H, W]       (NCHW, like PyTorch)
    weight: [out_ch, in_ch, k, k]  (Conv2d weight, bias=False)
    gamma/beta: [out_ch]           (BatchNorm2d affine)
    out_layout: "NCHW" (PyTorch-compatible, needs one transpose) or "NHWC".
    out_dtype:  defaults to x.dtype; pass jnp.bfloat16 to halve pass-2 writeback.
    """
    assert out_layout in ("NCHW", "NHWC")
    n, c, h, w = x.shape
    o = weight.shape[0]
    out_dtype = jnp.dtype(out_dtype) if out_dtype is not None else jnp.dtype(x.dtype)
    oh = (h + 2 * p - k) // s + 1
    ow = (w + 2 * p - k) // s + 1
    m_true = n * oh * ow
    o_pad = _pad_out_channels(o)
    budget = _vmem_budget_bytes()
    params = pltpu.CompilerParams(dimension_semantics=("parallel",),
                                  vmem_limit_bytes=budget)

    x_nhwc = jnp.transpose(x, (0, 2, 3, 1)).astype(jnp.bfloat16)

    onebyone = (k == 1 and s == 1 and p == 0)
    hp, wp = h + 2 * p, w + 2 * p
    rows = oh * wp                       # full-width output rows per image
    slab_rows = hp * wp + (k - 1)        # flattened padded image (+ tap overrun)
    fused_est = (2 * slab_rows * c * 2 + k * k * c * o_pad * 2
                 + 2 * rows * o_pad * out_dtype.itemsize
                 + rows * o_pad * 4 + 2 * rows * c * 4 + rows * 4 + (1 << 20))
    use_fused = (s == 1) and (not onebyone) and fused_est <= int(0.7 * budget)

    if use_fused:
        # ---- fused shift-and-matmul path (stride 1), grid over images -------
        # TODO(synk): for N==1 on v7x both TensorCores cannot be used with this
        # per-image grid; a manual-DMA row-slab split would restore parallelism.
        xp = jnp.pad(x_nhwc, ((0, 0), (p, p), (p, p), (0, 0)))
        x_flat = jnp.pad(xp.reshape(n, hp * wp, c), ((0, 0), (0, k - 1), (0, 0)))
        w3 = jnp.pad(
            weight.transpose(2, 3, 1, 0).reshape(k * k, c, o).astype(jnp.bfloat16),
            ((0, 0), (0, 0), (0, o_pad - o)))
        mask = ((jnp.arange(rows, dtype=jnp.int32) % wp) < ow)
        mask = mask.astype(jnp.float32).reshape(rows, 1)

        flops1 = 2 * n * rows * (k * k * c) * o_pad + 3 * n * rows * o_pad
        bytes1 = (n * slab_rows * c * 2 + k * k * c * o_pad * 2 + rows * 4
                  + 2 * n * o_pad * 4)
        s1, s2 = pl.pallas_call(
            functools.partial(_fused_stats_kernel, k=k, rows=rows, row_stride=wp),
            out_shape=(jax.ShapeDtypeStruct((n, 1, o_pad), jnp.float32),
                       jax.ShapeDtypeStruct((n, 1, o_pad), jnp.float32)),
            grid=(n,),
            in_specs=[
                pl.BlockSpec((None, slab_rows, c), lambda i: (i, 0, 0)),
                pl.BlockSpec((k * k, c, o_pad), lambda i: (0, 0, 0)),
                pl.BlockSpec((rows, 1), lambda i: (0, 0)),
            ],
            out_specs=(pl.BlockSpec((None, 1, o_pad), lambda i: (i, 0, 0)),
                       pl.BlockSpec((None, 1, o_pad), lambda i: (i, 0, 0))),
            compiler_params=params,
            cost_estimate=pl.CostEstimate(flops=int(flops1), transcendentals=0,
                                          bytes_accessed=int(bytes1)),
        )(x_flat, w3, mask)

        scale, shift = _bn_scale_shift(s1, s2, gamma, beta, m_true, o, o_pad)

        flops2 = 2 * n * rows * (k * k * c) * o_pad + 3 * n * rows * o_pad
        bytes2 = (n * slab_rows * c * 2 + k * k * c * o_pad * 2 + 2 * o_pad * 4
                  + n * rows * o_pad * out_dtype.itemsize)
        y = pl.pallas_call(
            functools.partial(_fused_apply_kernel, k=k, rows=rows, row_stride=wp),
            out_shape=jax.ShapeDtypeStruct((n, rows, o_pad), out_dtype),
            grid=(n,),
            in_specs=[
                pl.BlockSpec((None, slab_rows, c), lambda i: (i, 0, 0)),
                pl.BlockSpec((k * k, c, o_pad), lambda i: (0, 0, 0)),
                pl.BlockSpec((1, o_pad), lambda i: (0, 0)),
                pl.BlockSpec((1, o_pad), lambda i: (0, 0)),
            ],
            out_specs=pl.BlockSpec((None, rows, o_pad), lambda i: (i, 0, 0)),
            compiler_params=params,
            cost_estimate=pl.CostEstimate(flops=int(flops2), transcendentals=0,
                                          bytes_accessed=int(bytes2)),
        )(x_flat, w3, scale, shift)
        out_nhwc = y.reshape(n, oh, wp, o_pad)[:, :, :ow, :o]
    else:
        # ---- matmul path: 1x1 reshape fast path, or strided im2col fallback --
        if onebyone:
            patches = x_nhwc.reshape(n * h * w, c)          # no copy blowup
        else:
            patches, oh, ow = _im2col_nhwc(x_nhwc, k, s, p)
        m, kdim = patches.shape
        block_m = _pick_block_m(kdim, o_pad, m, out_dtype.itemsize, budget)
        m_pad = _round_up(m, block_m)
        num_m = m_pad // block_m
        pat_p = jnp.pad(patches, ((0, m_pad - m), (0, 0)))   # zero rows: stats-safe
        w_p = jnp.pad(
            weight.transpose(2, 3, 1, 0).reshape(kdim, o).astype(jnp.bfloat16),
            ((0, 0), (0, o_pad - o)))

        flops1 = 2 * m_pad * kdim * o_pad + 3 * m_pad * o_pad
        bytes1 = m_pad * kdim * 2 + kdim * o_pad * 2 + 2 * num_m * o_pad * 4
        s1, s2 = pl.pallas_call(
            _matmul_stats_kernel,
            out_shape=(jax.ShapeDtypeStruct((num_m, 1, o_pad), jnp.float32),
                       jax.ShapeDtypeStruct((num_m, 1, o_pad), jnp.float32)),
            grid=(num_m,),
            in_specs=[
                pl.BlockSpec((block_m, kdim), lambda i: (i, 0)),
                pl.BlockSpec((kdim, o_pad), lambda i: (0, 0)),
            ],
            out_specs=(pl.BlockSpec((None, 1, o_pad), lambda i: (i, 0, 0)),
                       pl.BlockSpec((None, 1, o_pad), lambda i: (i, 0, 0))),
            compiler_params=params,
            cost_estimate=pl.CostEstimate(flops=int(flops1), transcendentals=0,
                                          bytes_accessed=int(bytes1)),
        )(pat_p, w_p)

        scale, shift = _bn_scale_shift(s1, s2, gamma, beta, m, o, o_pad)

        flops2 = 2 * m_pad * kdim * o_pad + 3 * m_pad * o_pad
        bytes2 = (m_pad * kdim * 2 + kdim * o_pad * 2 + 2 * o_pad * 4
                  + m_pad * o_pad * out_dtype.itemsize)
        y = pl.pallas_call(
            _matmul_apply_kernel,
            out_shape=jax.ShapeDtypeStruct((m_pad, o_pad), out_dtype),
            grid=(num_m,),
            in_specs=[
                pl.BlockSpec((block_m, kdim), lambda i: (i, 0)),
                pl.BlockSpec((kdim, o_pad), lambda i: (0, 0)),
                pl.BlockSpec((1, o_pad), lambda i: (0, 0)),
                pl.BlockSpec((1, o_pad), lambda i: (0, 0)),
            ],
            out_specs=pl.BlockSpec((block_m, o_pad), lambda i: (i, 0)),
            compiler_params=params,
            cost_estimate=pl.CostEstimate(flops=int(flops2), transcendentals=0,
                                          bytes_accessed=int(bytes2)),
        )(pat_p, w_p, scale, shift)
        out_nhwc = y[:m, :o].reshape(n, oh, ow, o)

    if out_layout == "NHWC":
        return out_nhwc
    # NCHW only to match the PyTorch module; prefer out_layout="NHWC" in a full
    # NHWC pipeline to avoid this extra layout pass.
    return jnp.transpose(out_nhwc, (0, 3, 1, 2))


if __name__ == "__main__":
    key = jax.random.PRNGKey(0)
    kx, kw, kg, kb = jax.random.split(key, 4)

    N, C_IN, H, W = 2, 4, 16, 16
    C_OUT = 8

    x = jax.random.normal(kx, (N, C_IN, H, W), dtype=jnp.float32)
    gamma = 1.0 + 0.1 * jax.random.normal(kg, (C_OUT,), dtype=jnp.float32)
    beta = 0.05 * jax.random.normal(kb, (C_OUT,), dtype=jnp.float32)

    def reference(x, weight, k, s, p):
        conv = lax.conv_general_dilated(
            x, weight, (s, s), [(p, p), (p, p)],
            dimension_numbers=("NCHW", "OIHW", "NCHW"))
        mu = conv.mean(axis=(0, 2, 3), keepdims=True)
        var = conv.var(axis=(0, 2, 3), keepdims=True)
        return jnp.maximum(
            gamma[None, :, None, None] * (conv - mu) / jnp.sqrt(var + _BN_EPS)
            + beta[None, :, None, None], 0.0)

    # Exercise all three code paths: fused shift-and-matmul (3x3 s=1),
    # strided im2col fallback (3x3 s=2), and the 1x1 reshape fast path.
    configs = [(3, 1, 1), (3, 2, 1), (1, 1, 0)]
    for (K, S, P) in configs:
        kw_i = jax.random.fold_in(kw, K * 10 + S)
        weight = 0.1 * jax.random.normal(kw_i, (C_OUT, C_IN, K, K),
                                         dtype=jnp.float32)
        y = conv_bn_relu(x, weight, gamma, beta, k=K, s=S, p=P)
        y = jax.block_until_ready(y)
        ref = reference(x, weight, K, S, P)
        assert y.shape == ref.shape, (y.shape, ref.shape)
        err = float(jnp.max(jnp.abs(y.astype(jnp.float32) - ref)))
        assert err < 1e-1, f"k={K} s={S} p={P}: max abs error {err}"
    print("KERNEL_OK")
</pallas_src>

<mosaic_0001>
module attributes {stable_mosaic.version = 11 : i64} {
  func.func @_fused_stats_kernel(%arg0: i32, %arg1: memref<1x326x4xbf16, #tpu.memory_space<vmem>>, %arg2: memref<9x4x128xbf16, #tpu.memory_space<vmem>>, %arg3: memref<288x1xf32, #tpu.memory_space<vmem>>, %arg4: memref<1x1x128xf32, #tpu.memory_space<vmem>>, %arg5: memref<1x1x128xf32, #tpu.memory_space<vmem>>) attributes {dimension_semantics = [#tpu.dimension_semantics<parallel>], iteration_bounds = array<i64: 2>, scalar_prefetch = 0 : i64, scratch_operands = 0 : i64, tpu.core_type = #tpu.core_type<tc>, window_params = [{transform_indices = @transform_0, window_bounds = array<i64: 1, 326, 4>}, {pipeline_mode = #tpu.pipeline_mode<synchronous>, transform_indices = @transform_1, window_bounds = array<i64: 9, 4, 128>}, {pipeline_mode = #tpu.pipeline_mode<synchronous>, transform_indices = @transform_2, window_bounds = array<i64: 288, 1>}, {transform_indices = @transform_3, window_bounds = array<i64: 1, 1, 128>}, {transform_indices = @transform_4, window_bounds = array<i64: 1, 1, 128>}]} {
    %cst = arith.constant 0.000000e+00 : f32
    %0 = vector.broadcast %cst : f32 to vector<288x128xf32>
    %c0 = arith.constant 0 : index
    %c0_0 = arith.constant 0 : index
    %c0_1 = arith.constant 0 : index
    %1 = vector.load %arg1[%c0, %c0_0, %c0_1] : memref<1x326x4xbf16, #tpu.memory_space<vmem>>, vector<1x288x4xbf16>
    %2 = vector.shape_cast %1 : vector<1x288x4xbf16> to vector<288x4xbf16>
    %c0_2 = arith.constant 0 : index
    %c0_3 = arith.constant 0 : index
    %c0_4 = arith.constant 0 : index
    %3 = vector.load %arg2[%c0_2, %c0_3, %c0_4] : memref<9x4x128xbf16, #tpu.memory_space<vmem>>, vector<1x4x128xbf16>
    %4 = vector.shape_cast %3 : vector<1x4x128xbf16> to vector<4x128xbf16>
    %cst_5 = arith.constant dense<0.000000e+00> : vector<288x128xf32>
    %5 = tpu.matmul %2, %4, %cst_5 {dimension_numbers = #tpu.dot_dimension_numbers<[1], [0], [0], [1], [0, 0, 1, 1], [], []>} : vector<288x4xbf16>, vector<4x128xbf16>, vector<288x128xf32> -> vector<288x128xf32>
    %6 = arith.addf %0, %5 : vector<288x128xf32>
    %c0_6 = arith.constant 0 : index
    %c1 = arith.constant 1 : index
    %c0_7 = arith.constant 0 : index
    %7 = vector.load %arg1[%c0_6, %c1, %c0_7] : memref<1x326x4xbf16, #tpu.memory_space<vmem>>, vector<1x288x4xbf16>
    %8 = vector.shape_cast %7 : vector<1x288x4xbf16> to vector<288x4xbf16>
    %c1_8 = arith.constant 1 : index
    %c0_9 = arith.constant 0 : index
    %c0_10 = arith.constant 0 : index
    %9 = vector.load %arg2[%c1_8, %c0_9, %c0_10] : memref<9x4x128xbf16, #tpu.memory_space<vmem>>, vector<1x4x128xbf16>
    %10 = vector.shape_cast %9 : vector<1x4x128xbf16> to vector<4x128xbf16>
    %cst_11 = arith.constant dense<0.000000e+00> : vector<288x128xf32>
    %11 = tpu.matmul %8, %10, %cst_11 {dimension_numbers = #tpu.dot_dimension_numbers<[1], [0], [0], [1], [0, 0, 1, 1], [], []>} : vector<288x4xbf16>, vector<4x128xbf16>, vector<288x128xf32> -> vector<288x128xf32>
    %12 = arith.addf %6, %11 : vector<288x128xf32>
    %c0_12 = arith.constant 0 : index
    %c2 = arith.constant 2 : index
    %c0_13 = arith.constant 0 : index
    %13 = vector.load %arg1[%c0_12, %c2, %c0_13] : memref<1x326x4xbf16, #tpu.memory_space<vmem>>, vector<1x288x4xbf16>
    %14 = vector.shape_cast %13 : vector<1x288x4xbf16> to vector<288x4xbf16>
    %c2_14 = arith.constant 2 : index
    %c0_15 = arith.constant 0 : index
    %c0_16 = arith.constant 0 : index
    %15 = vector.load %arg2[%c2_14, %c0_15, %c0_16] : memref<9x4x128xbf16, #tpu.memory_space<vmem>>, vector<1x4x128xbf16>
    %16 = vector.shape_cast %15 : vector<1x4x128xbf16> to vector<4x128xbf16>
    %cst_17 = arith.constant dense<0.000000e+00> : vector<288x128xf32>
    %17 = tpu.matmul %14, %16, %cst_17 {dimension_numbers = #tpu.dot_dimension_numbers<[1], [0], [0], [1], [0, 0, 1, 1], [], []>} : vector<288x4xbf16>, vector<4x128xbf16>, vector<288x128xf32> -> vector<288x128xf32>
    %18 = arith.addf %12, %17 : vector<288x128xf32>
    %c0_18 = arith.constant 0 : index
    %c18 = arith.constant 18 : index
    %c0_19 = arith.constant 0 : index
    %19 = vector.load %arg1[%c0_18, %c18, %c0_19] : memref<1x326x4xbf16, #tpu.memory_space<vmem>>, vector<1x288x4xbf16>
    %20 = vector.shape_cast %19 : vector<1x288x4xbf16> to vector<288x4xbf16>
    %c3 = arith.constant 3 : index
    %c0_20 = arith.constant 0 : index
    %c0_21 = arith.constant 0 : index
    %21 = vector.load %arg2[%c3, %c0_20, %c0_21] : memref<9x4x128xbf16, #tpu.memory_space<vmem>>, vector<1x4x128xbf16>
    %22 = vector.shape_cast %21 : vector<1x4x128xbf16> to vector<4x128xbf16>
    %cst_22 = arith.constant dense<0.000000e+00> : vector<288x128xf32>
    %23 = tpu.matmul %20, %22, %cst_22 {dimension_numbers = #tpu.dot_dimension_numbers<[1], [0], [0], [1], [0, 0, 1, 1], [], []>} : vector<288x4xbf16>, vector<4x128xbf16>, vector<288x128xf32> -> vector<288x128xf32>
    %24 = arith.addf %18, %23 : vector<288x128xf32>
    %c0_23 = arith.constant 0 : index
    %c19 = arith.constant 19 : index
    %c0_24 = arith.constant 0 : index
    %25 = vector.load %arg1[%c0_23, %c19, %c0_24] : memref<1x326x4xbf16, #tpu.memory_space<vmem>>, vector<1x288x4xbf16>
    %26 = vector.shape_cast %25 : vector<1x288x4xbf16> to vector<288x4xbf16>
    %c4 = arith.constant 4 : index
    %c0_25 = arith.constant 0 : index
    %c0_26 = arith.constant 0 : index
    %27 = vector.load %arg2[%c4, %c0_25, %c0_26] : memref<9x4x128xbf16, #tpu.memory_space<vmem>>, vector<1x4x128xbf16>
    %28 = vector.shape_cast %27 : vector<1x4x128xbf16> to vector<4x128xbf16>
    %cst_27 = arith.constant dense<0.000000e+00> : vector<288x128xf32>
    %29 = tpu.matmul %26, %28, %cst_27 {dimension_numbers = #tpu.dot_dimension_numbers<[1], [0], [0], [1], [0, 0, 1, 1], [], []>} : vector<288x4xbf16>, vector<4x128xbf16>, vector<288x128xf32> -> vector<288x128xf32>
    %30 = arith.addf %24, %29 : vector<288x128xf32>
    %c0_28 = arith.constant 0 : index
    %c20 = arith.constant 20 : index
    %c0_29 = arith.constant 0 : index
    %31 = vector.load %arg1[%c0_28, %c20, %c0_29] : memref<1x326x4xbf16, #tpu.memory_space<vmem>>, vector<1x288x4xbf16>
    %32 = vector.shape_cast %31 : vector<1x288x4xbf16> to vector<288x4xbf16>
    %c5 = arith.constant 5 : index
    %c0_30 = arith.constant 0 : index
    %c0_31 = arith.constant 0 : index
    %33 = vector.load %arg2[%c5, %c0_30, %c0_31] : memref<9x4x128xbf16, #tpu.memory_space<vmem>>, vector<1x4x128xbf16>
    %34 = vector.shape_cast %33 : vector<1x4x128xbf16> to vector<4x128xbf16>
    %cst_32 = arith.constant dense<0.000000e+00> : vector<288x128xf32>
    %35 = tpu.matmul %32, %34, %cst_32 {dimension_numbers = #tpu.dot_dimension_numbers<[1], [0], [0], [1], [0, 0, 1, 1], [], []>} : vector<288x4xbf16>, vector<4x128xbf16>, vector<288x128xf32> -> vector<288x128xf32>
    %36 = arith.addf %30, %35 : vector<288x128xf32>
    %c0_33 = arith.constant 0 : index
    %c36 = arith.constant 36 : index
    %c0_34 = arith.constant 0 : index
    %37 = vector.load %arg1[%c0_33, %c36, %c0_34] : memref<1x326x4xbf16, #tpu.memory_space<vmem>>, vector<1x288x4xbf16>
    %38 = vector.shape_cast %37 : vector<1x288x4xbf16> to vector<288x4xbf16>
    %c6 = arith.constant 6 : index
    %c0_35 = arith.constant 0 : index
    %c0_36 = arith.constant 0 : index
    %39 = vector.load %arg2[%c6, %c0_35, %c0_36] : memref<9x4x128xbf16, #tpu.memory_space<vmem>>, vector<1x4x128xbf16>
    %40 = vector.shape_cast %39 : vector<1x4x128xbf16> to vector<4x128xbf16>
    %cst_37 = arith.constant dense<0.000000e+00> : vector<288x128xf32>
    %41 = tpu.matmul %38, %40, %cst_37 {dimension_numbers = #tpu.dot_dimension_numbers<[1], [0], [0], [1], [0, 0, 1, 1], [], []>} : vector<288x4xbf16>, vector<4x128xbf16>, vector<288x128xf32> -> vector<288x128xf32>
    %42 = arith.addf %36, %41 : vector<288x128xf32>
    %c0_38 = arith.constant 0 : index
    %c37 = arith.constant 37 : index
    %c0_39 = arith.constant 0 : index
    %43 = vector.load %arg1[%c0_38, %c37, %c0_39] : memref<1x326x4xbf16, #tpu.memory_space<vmem>>, vector<1x288x4xbf16>
    %44 = vector.shape_cast %43 : vector<1x288x4xbf16> to vector<288x4xbf16>
    %c7 = arith.constant 7 : index
    %c0_40 = arith.constant 0 : index
    %c0_41 = arith.constant 0 : index
    %45 = vector.load %arg2[%c7, %c0_40, %c0_41] : memref<9x4x128xbf16, #tpu.memory_space<vmem>>, vector<1x4x128xbf16>
    %46 = vector.shape_cast %45 : vector<1x4x128xbf16> to vector<4x128xbf16>
    %cst_42 = arith.constant dense<0.000000e+00> : vector<288x128xf32>
    %47 = tpu.matmul %44, %46, %cst_42 {dimension_numbers = #tpu.dot_dimension_numbers<[1], [0], [0], [1], [0, 0, 1, 1], [], []>} : vector<288x4xbf16>, vector<4x128xbf16>, vector<288x128xf32> -> vector<288x128xf32>
    %48 = arith.addf %42, %47 : vector<288x128xf32>
    %c0_43 = arith.constant 0 : index
    %c38 = arith.constant 38 : index
    %c0_44 = arith.constant 0 : index
    %49 = vector.load %arg1[%c0_43, %c38, %c0_44] : memref<1x326x4xbf16, #tpu.memory_space<vmem>>, vector<1x288x4xbf16>
    %50 = vector.shape_cast %49 : vector<1x288x4xbf16> to vector<288x4xbf16>
    %c8 = arith.constant 8 : index
    %c0_45 = arith.constant 0 : index
    %c0_46 = arith.constant 0 : index
    %51 = vector.load %arg2[%c8, %c0_45, %c0_46] : memref<9x4x128xbf16, #tpu.memory_space<vmem>>, vector<1x4x128xbf16>
    %52 = vector.shape_cast %51 : vector<1x4x128xbf16> to vector<4x128xbf16>
    %cst_47 = arith.constant dense<0.000000e+00> : vector<288x128xf32>
    %53 = tpu.matmul %50, %52, %cst_47 {dimension_numbers = #tpu.dot_dimension_numbers<[1], [0], [0], [1], [0, 0, 1, 1], [], []>} : vector<288x4xbf16>, vector<4x128xbf16>, vector<288x128xf32> -> vector<288x128xf32>
    %54 = arith.addf %48, %53 : vector<288x128xf32>
    %c0_48 = arith.constant 0 : index
    %c0_49 = arith.constant 0 : index
    %55 = vector.load %arg3[%c0_48, %c0_49] : memref<288x1xf32, #tpu.memory_space<vmem>>, vector<288x1xf32>
    %56 = vector.broadcast %55 : vector<288x1xf32> to vector<288x128xf32>
    %57 = arith.mulf %54, %56 : vector<288x128xf32>
    %cst_50 = arith.constant dense<0.000000e+00> : vector<128xf32>
    %58 = vector.multi_reduction <add>, %57, %cst_50 [0] : vector<288x128xf32> to vector<128xf32>
    %59 = vector.shape_cast %58 : vector<128xf32> to vector<1x128xf32>
    %c0_51 = arith.constant 0 : index
    %c0_52 = arith.constant 0 : index
    %c0_53 = arith.constant 0 : index
    %60 = vector.load %arg4[%c0_51, %c0_52, %c0_53] : memref<1x1x128xf32, #tpu.memory_space<vmem>>, vector<1x1x128xf32>
    %61 = vector.shape_cast %60 : vector<1x1x128xf32> to vector<1x128xf32>
    %62 = vector.shape_cast %59 : vector<1x128xf32> to vector<1x1x128xf32>
    tpu.vector_store %arg4[%c0_51, %c0_52, %c0_53], %62 {strides = array<i32>} : memref<1x1x128xf32, #tpu.memory_space<vmem>>, vector<1x1x128xf32>,
    %63 = arith.mulf %54, %54 : vector<288x128xf32>
    %64 = vector.broadcast %55 : vector<288x1xf32> to vector<288x128xf32>
    %65 = arith.mulf %63, %64 : vector<288x128xf32>
    %cst_54 = arith.constant dense<0.000000e+00> : vector<128xf32>
    %66 = vector.multi_reduction <add>, %65, %cst_54 [0] : vector<288x128xf32> to vector<128xf32>
    %67 = vector.shape_cast %66 : vector<128xf32> to vector<1x128xf32>
    %c0_55 = arith.constant 0 : index
    %c0_56 = arith.constant 0 : index
    %c0_57 = arith.constant 0 : index
    %68 = vector.load %arg5[%c0_55, %c0_56, %c0_57] : memref<1x1x128xf32, #tpu.memory_space<vmem>>, vector<1x1x128xf32>
    %69 = vector.shape_cast %68 : vector<1x1x128xf32> to vector<1x128xf32>
    %70 = vector.shape_cast %67 : vector<1x128xf32> to vector<1x1x128xf32>
    tpu.vector_store %arg5[%c0_55, %c0_56, %c0_57], %70 {strides = array<i32>} : memref<1x1x128xf32, #tpu.memory_space<vmem>>, vector<1x1x128xf32>,
    return
  }
  func.func @transform_0(%arg0: i32) -> (i32, i32, i32) {
    %c0_i32 = arith.constant 0 : i32
    %c0_i32_0 = arith.constant 0 : i32
    %c0_i32_1 = arith.constant 0 : i32
    return %arg0, %c0_i32, %c0_i32_0 : i32, i32, i32
  }
  func.func @transform_1(%arg0: i32) -> (i32, i32, i32) {
    %c0_i32 = arith.constant 0 : i32
    %c0_i32_0 = arith.constant 0 : i32
    %c0_i32_1 = arith.constant 0 : i32
    %c0_i32_2 = arith.constant 0 : i32
    return %c0_i32, %c0_i32_0, %c0_i32_1 : i32, i32, i32
  }
  func.func @transform_2(%arg0: i32) -> (i32, i32) {
    %c0_i32 = arith.constant 0 : i32
    %c0_i32_0 = arith.constant 0 : i32
    %c0_i32_1 = arith.constant 0 : i32
    return %c0_i32, %c0_i32_0 : i32, i32
  }
  func.func @transform_3(%arg0: i32) -> (i32, i32, i32) {
    %c0_i32 = arith.constant 0 : i32
    %c0_i32_0 = arith.constant 0 : i32
    %c0_i32_1 = arith.constant 0 : i32
    return %arg0, %c0_i32, %c0_i32_0 : i32, i32, i32
  }
  func.func @transform_4(%arg0: i32) -> (i32, i32, i32) {
    %c0_i32 = arith.constant 0 : i32
    %c0_i32_0 = arith.constant 0 : i32
    %c0_i32_1 = arith.constant 0 : i32
    return %arg0, %c0_i32, %c0_i32_0 : i32, i32, i32
  }
}

module attributes {stable_mosaic.version = 11 : i64} {
  func.func @_fused_apply_kernel(%arg0: i32, %arg1: memref<1x326x4xbf16, #tpu.memory_space<vmem>>, %arg2: memref<9x4x128xbf16, #tpu.memory_space<vmem>>, %arg3: memref<1x128xf32, #tpu.memory_space<vmem>>, %arg4: memref<1x128xf32, #tpu.memory_space<vmem>>, %arg5: memref<1x288x128xf32, #tpu.memory_space<vmem>>) attributes {dimension_semantics = [#tpu.dimension_semantics<parallel>], iteration_bounds = array<i64: 2>, scalar_prefetch = 0 : i64, scratch_operands = 0 : i64, tpu.core_type = #tpu.core_type<tc>, window_params = [{transform_indices = @transform_0, window_bounds = array<i64: 1, 326, 4>}, {pipeline_mode = #tpu.pipeline_mode<synchronous>, transform_indices = @transform_1, window_bounds = array<i64: 9, 4, 128>}, {pipeline_mode = #tpu.pipeline_mode<synchronous>, transform_indices = @transform_2, window_bounds = array<i64: 1, 128>}, {pipeline_mode = #tpu.pipeline_mode<synchronous>, transform_indices = @transform_3, window_bounds = array<i64: 1, 128>}, {transform_indices = @transform_4, window_bounds = array<i64: 1, 288, 128>}]} {
    %cst = arith.constant 0.000000e+00 : f32
    %0 = vector.broadcast %cst : f32 to vector<288x128xf32>
    %c0 = arith.constant 0 : index
    %c0_0 = arith.constant 0 : index
    %c0_1 = arith.constant 0 : index
    %1 = vector.load %arg1[%c0, %c0_0, %c0_1] : memref<1x326x4xbf16, #tpu.memory_space<vmem>>, vector<1x288x4xbf16>
    %2 = vector.shape_cast %1 : vector<1x288x4xbf16> to vector<288x4xbf16>
    %c0_2 = arith.constant 0 : index
    %c0_3 = arith.constant 0 : index
    %c0_4 = arith.constant 0 : index
    %3 = vector.load %arg2[%c0_2, %c0_3, %c0_4] : memref<9x4x128xbf16, #tpu.memory_space<vmem>>, vector<1x4x128xbf16>
    %4 = vector.shape_cast %3 : vector<1x4x128xbf16> to vector<4x128xbf16>
    %cst_5 = arith.constant dense<0.000000e+00> : vector<288x128xf32>
    %5 = tpu.matmul %2, %4, %cst_5 {dimension_numbers = #tpu.dot_dimension_numbers<[1], [0], [0], [1], [0, 0, 1, 1], [], []>} : vector<288x4xbf16>, vector<4x128xbf16>, vector<288x128xf32> -> vector<288x128xf32>
    %6 = arith.addf %0, %5 : vector<288x128xf32>
    %c0_6 = arith.constant 0 : index
    %c1 = arith.constant 1 : index
    %c0_7 = arith.constant 0 : index
    %7 = vector.load %arg1[%c0_6, %c1, %c0_7] : memref<1x326x4xbf16, #tpu.memory_space<vmem>>, vector<1x288x4xbf16>
    %8 = vector.shape_cast %7 : vector<1x288x4xbf16> to vector<288x4xbf16>
    %c1_8 = arith.constant 1 : index
    %c0_9 = arith.constant 0 : index
    %c0_10 = arith.constant 0 : index
    %9 = vector.load %arg2[%c1_8, %c0_9, %c0_10] : memref<9x4x128xbf16, #tpu.memory_space<vmem>>, vector<1x4x128xbf16>
    %10 = vector.shape_cast %9 : vector<1x4x128xbf16> to vector<4x128xbf16>
    %cst_11 = arith.constant dense<0.000000e+00> : vector<288x128xf32>
    %11 = tpu.matmul %8, %10, %cst_11 {dimension_numbers = #tpu.dot_dimension_numbers<[1], [0], [0], [1], [0, 0, 1, 1], [], []>} : vector<288x4xbf16>, vector<4x128xbf16>, vector<288x128xf32> -> vector<288x128xf32>
    %12 = arith.addf %6, %11 : vector<288x128xf32>
    %c0_12 = arith.constant 0 : index
    %c2 = arith.constant 2 : index
    %c0_13 = arith.constant 0 : index
    %13 = vector.load %arg1[%c0_12, %c2, %c0_13] : memref<1x326x4xbf16, #tpu.memory_space<vmem>>, vector<1x288x4xbf16>
    %14 = vector.shape_cast %13 : vector<1x288x4xbf16> to vector<288x4xbf16>
    %c2_14 = arith.constant 2 : index
    %c0_15 = arith.constant 0 : index
    %c0_16 = arith.constant 0 : index
    %15 = vector.load %arg2[%c2_14, %c0_15, %c0_16] : memref<9x4x128xbf16, #tpu.memory_space<vmem>>, vector<1x4x128xbf16>
    %16 = vector.shape_cast %15 : vector<1x4x128xbf16> to vector<4x128xbf16>
    %cst_17 = arith.constant dense<0.000000e+00> : vector<288x128xf32>
    %17 = tpu.matmul %14, %16, %cst_17 {dimension_numbers = #tpu.dot_dimension_numbers<[1], [0], [0], [1], [0, 0, 1, 1], [], []>} : vector<288x4xbf16>, vector<4x128xbf16>, vector<288x128xf32> -> vector<288x128xf32>
    %18 = arith.addf %12, %17 : vector<288x128xf32>
    %c0_18 = arith.constant 0 : index
    %c18 = arith.constant 18 : index
    %c0_19 = arith.constant 0 : index
    %19 = vector.load %arg1[%c0_18, %c18, %c0_19] : memref<1x326x4xbf16, #tpu.memory_space<vmem>>, vector<1x288x4xbf16>
    %20 = vector.shape_cast %19 : vector<1x288x4xbf16> to vector<288x4xbf16>
    %c3 = arith.constant 3 : index
    %c0_20 = arith.constant 0 : index
    %c0_21 = arith.constant 0 : index
    %21 = vector.load %arg2[%c3, %c0_20, %c0_21] : memref<9x4x128xbf16, #tpu.memory_space<vmem>>, vector<1x4x128xbf16>
    %22 = vector.shape_cast %21 : vector<1x4x128xbf16> to vector<4x128xbf16>
    %cst_22 = arith.constant dense<0.000000e+00> : vector<288x128xf32>
    %23 = tpu.matmul %20, %22, %cst_22 {dimension_numbers = #tpu.dot_dimension_numbers<[1], [0], [0], [1], [0, 0, 1, 1], [], []>} : vector<288x4xbf16>, vector<4x128xbf16>, vector<288x128xf32> -> vector<288x128xf32>
    %24 = arith.addf %18, %23 : vector<288x128xf32>
    %c0_23 = arith.constant 0 : index
    %c19 = arith.constant 19 : index
    %c0_24 = arith.constant 0 : index
    %25 = vector.load %arg1[%c0_23, %c19, %c0_24] : memref<1x326x4xbf16, #tpu.memory_space<vmem>>, vector<1x288x4xbf16>
    %26 = vector.shape_cast %25 : vector<1x288x4xbf16> to vector<288x4xbf16>
    %c4 = arith.constant 4 : index
    %c0_25 = arith.constant 0 : index
    %c0_26 = arith.constant 0 : index
    %27 = vector.load %arg2[%c4, %c0_25, %c0_26] : memref<9x4x128xbf16, #tpu.memory_space<vmem>>, vector<1x4x128xbf16>
    %28 = vector.shape_cast %27 : vector<1x4x128xbf16> to vector<4x128xbf16>
    %cst_27 = arith.constant dense<0.000000e+00> : vector<288x128xf32>
    %29 = tpu.matmul %26, %28, %cst_27 {dimension_numbers = #tpu.dot_dimension_numbers<[1], [0], [0], [1], [0, 0, 1, 1], [], []>} : vector<288x4xbf16>, vector<4x128xbf16>, vector<288x128xf32> -> vector<288x128xf32>
    %30 = arith.addf %24, %29 : vector<288x128xf32>
    %c0_28 = arith.constant 0 : index
    %c20 = arith.constant 20 : index
    %c0_29 = arith.constant 0 : index
    %31 = vector.load %arg1[%c0_28, %c20, %c0_29] : memref<1x326x4xbf16, #tpu.memory_space<vmem>>, vector<1x288x4xbf16>
    %32 = vector.shape_cast %31 : vector<1x288x4xbf16> to vector<288x4xbf16>
    %c5 = arith.constant 5 : index
    %c0_30 = arith.constant 0 : index
    %c0_31 = arith.constant 0 : index
    %33 = vector.load %arg2[%c5, %c0_30, %c0_31] : memref<9x4x128xbf16, #tpu.memory_space<vmem>>, vector<1x4x128xbf16>
    %34 = vector.shape_cast %33 : vector<1x4x128xbf16> to vector<4x128xbf16>
    %cst_32 = arith.constant dense<0.000000e+00> : vector<288x128xf32>
    %35 = tpu.matmul %32, %34, %cst_32 {dimension_numbers = #tpu.dot_dimension_numbers<[1], [0], [0], [1], [0, 0, 1, 1], [], []>} : vector<288x4xbf16>, vector<4x128xbf16>, vector<288x128xf32> -> vector<288x128xf32>
    %36 = arith.addf %30, %35 : vector<288x128xf32>
    %c0_33 = arith.constant 0 : index
    %c36 = arith.constant 36 : index
    %c0_34 = arith.constant 0 : index
    %37 = vector.load %arg1[%c0_33, %c36, %c0_34] : memref<1x326x4xbf16, #tpu.memory_space<vmem>>, vector<1x288x4xbf16>
    %38 = vector.shape_cast %37 : vector<1x288x4xbf16> to vector<288x4xbf16>
    %c6 = arith.constant 6 : index
    %c0_35 = arith.constant 0 : index
    %c0_36 = arith.constant 0 : index
    %39 = vector.load %arg2[%c6, %c0_35, %c0_36] : memref<9x4x128xbf16, #tpu.memory_space<vmem>>, vector<1x4x128xbf16>
    %40 = vector.shape_cast %39 : vector<1x4x128xbf16> to vector<4x128xbf16>
    %cst_37 = arith.constant dense<0.000000e+00> : vector<288x128xf32>
    %41 = tpu.matmul %38, %40, %cst_37 {dimension_numbers = #tpu.dot_dimension_numbers<[1], [0], [0], [1], [0, 0, 1, 1], [], []>} : vector<288x4xbf16>, vector<4x128xbf16>, vector<288x128xf32> -> vector<288x128xf32>
    %42 = arith.addf %36, %41 : vector<288x128xf32>
    %c0_38 = arith.constant 0 : index
    %c37 = arith.constant 37 : index
    %c0_39 = arith.constant 0 : index
    %43 = vector.load %arg1[%c0_38, %c37, %c0_39] : memref<1x326x4xbf16, #tpu.memory_space<vmem>>, vector<1x288x4xbf16>
    %44 = vector.shape_cast %43 : vector<1x288x4xbf16> to vector<288x4xbf16>
    %c7 = arith.constant 7 : index
    %c0_40 = arith.constant 0 : index
    %c0_41 = arith.constant 0 : index
    %45 = vector.load %arg2[%c7, %c0_40, %c0_41] : memref<9x4x128xbf16, #tpu.memory_space<vmem>>, vector<1x4x128xbf16>
    %46 = vector.shape_cast %45 : vector<1x4x128xbf16> to vector<4x128xbf16>
    %cst_42 = arith.constant dense<0.000000e+00> : vector<288x128xf32>
    %47 = tpu.matmul %44, %46, %cst_42 {dimension_numbers = #tpu.dot_dimension_numbers<[1], [0], [0], [1], [0, 0, 1, 1], [], []>} : vector<288x4xbf16>, vector<4x128xbf16>, vector<288x128xf32> -> vector<288x128xf32>
    %48 = arith.addf %42, %47 : vector<288x128xf32>
    %c0_43 = arith.constant 0 : index
    %c38 = arith.constant 38 : index
    %c0_44 = arith.constant 0 : index
    %49 = vector.load %arg1[%c0_43, %c38, %c0_44] : memref<1x326x4xbf16, #tpu.memory_space<vmem>>, vector<1x288x4xbf16>
    %50 = vector.shape_cast %49 : vector<1x288x4xbf16> to vector<288x4xbf16>
    %c8 = arith.constant 8 : index
    %c0_45 = arith.constant 0 : index
    %c0_46 = arith.constant 0 : index
    %51 = vector.load %arg2[%c8, %c0_45, %c0_46] : memref<9x4x128xbf16, #tpu.memory_space<vmem>>, vector<1x4x128xbf16>
    %52 = vector.shape_cast %51 : vector<1x4x128xbf16> to vector<4x128xbf16>
    %cst_47 = arith.constant dense<0.000000e+00> : vector<288x128xf32>
    %53 = tpu.matmul %50, %52, %cst_47 {dimension_numbers = #tpu.dot_dimension_numbers<[1], [0], [0], [1], [0, 0, 1, 1], [], []>} : vector<288x4xbf16>, vector<4x128xbf16>, vector<288x128xf32> -> vector<288x128xf32>
    %54 = arith.addf %48, %53 : vector<288x128xf32>
    %c0_48 = arith.constant 0 : index
    %c0_49 = arith.constant 0 : index
    %55 = vector.load %arg3[%c0_48, %c0_49] : memref<1x128xf32, #tpu.memory_space<vmem>>, vector<1x128xf32>
    %56 = vector.broadcast %55 : vector<1x128xf32> to vector<288x128xf32>
    %57 = arith.mulf %54, %56 : vector<288x128xf32>
    %c0_50 = arith.constant 0 : index
    %c0_51 = arith.constant 0 : index
    %58 = vector.load %arg4[%c0_50, %c0_51] : memref<1x128xf32, #tpu.memory_space<vmem>>, vector<1x128xf32>
    %59 = vector.broadcast %58 : vector<1x128xf32> to vector<288x128xf32>
    %60 = arith.addf %57, %59 : vector<288x128xf32>
    %cst_52 = arith.constant 0.000000e+00 : f32
    %61 = vector.broadcast %cst_52 : f32 to vector<288x128xf32>
    %62 = arith.maximumf %60, %61 : vector<288x128xf32>
    %c0_53 = arith.constant 0 : index
    %c0_54 = arith.constant 0 : index
    %c0_55 = arith.constant 0 : index
    %63 = vector.load %arg5[%c0_53, %c0_54, %c0_55] : memref<1x288x128xf32, #tpu.memory_space<vmem>>, vector<1x288x128xf32>
    %64 = vector.shape_cast %63 : vector<1x288x128xf32> to vector<288x128xf32>
    %65 = vector.shape_cast %62 : vector<288x128xf32> to vector<1x288x128xf32>
    tpu.vector_store %arg5[%c0_53, %c0_54, %c0_55], %65 {strides = array<i32>} : memref<1x288x128xf32, #tpu.memory_space<vmem>>, vector<1x288x128xf32>,
    return
  }
  func.func @transform_0(%arg0: i32) -> (i32, i32, i32) {
    %c0_i32 = arith.constant 0 : i32
    %c0_i32_0 = arith.constant 0 : i32
    %c0_i32_1 = arith.constant 0 : i32
    return %arg0, %c0_i32, %c0_i32_0 : i32, i32, i32
  }
  func.func @transform_1(%arg0: i32) -> (i32, i32, i32) {
    %c0_i32 = arith.constant 0 : i32
    %c0_i32_0 = arith.constant 0 : i32
    %c0_i32_1 = arith.constant 0 : i32
    %c0_i32_2 = arith.constant 0 : i32
    return %c0_i32, %c0_i32_0, %c0_i32_1 : i32, i32, i32
  }
  func.func @transform_2(%arg0: i32) -> (i32, i32) {
    %c0_i32 = arith.constant 0 : i32
    %c0_i32_0 = arith.constant 0 : i32
    %c0_i32_1 = arith.constant 0 : i32
    return %c0_i32, %c0_i32_0 : i32, i32
  }
  func.func @transform_3(%arg0: i32) -> (i32, i32) {
    %c0_i32 = arith.constant 0 : i32
    %c0_i32_0 = arith.constant 0 : i32
    %c0_i32_1 = arith.constant 0 : i32
    return %c0_i32, %c0_i32_0 : i32, i32
  }
  func.func @transform_4(%arg0: i32) -> (i32, i32, i32) {
    %c0_i32 = arith.constant 0 : i32
    %c0_i32_0 = arith.constant 0 : i32
    %c0_i32_1 = arith.constant 0 : i32
    return %arg0, %c0_i32, %c0_i32_0 : i32, i32, i32
  }
}

</mosaic_0001>

<bundles_post_ra>
// kernel: conv_bn_relu.3
= control target key start
LH: loop header
LB: loop body
LE: loop exit
PB: predicated region body
PF: predicated region fallthrough
CT: control target
= control target key end

     0   :  { %s5032_s15 = smov 0   ;;  %s6006_s0 = inlined_call_operand.vmem [shape: bf16[2,326,4], index: 0, kind: input, shape index: {}]   ;;  %s6007_s1 = inlined_call_operand.vmem [shape: bf16[9,4,128], index: 1, kind: input, shape index: {}]   ;;  %s6008_s2 = inlined_call_operand.vmem [shape: f32[1,128], index: 2, kind: input, shape index: {}]   ;;  %s6009_s3 = inlined_call_operand.vmem [shape: f32[1,128], index: 3, kind: input, shape index: {}]   ;;  %s6010_s4 = inlined_call_operand.vmem [shape: f32[2,288,128], index: 4, kind: output, shape index: {}]  }
   0x1 LB: > { %s3860_s16 = sadd.s32 4294967295, %s5005_s15   ;;  %p3864_p0 = scmp.ge.s32.totalorder %s5005_s15, 1  ;;  %s5005_s15 = sphi %s5032_s15, %s14_s15  }
   0x2   : > { %p162_p1 = scmp.lt.s32.totalorder %s5005_s15, 3 }
   0x4   : > { %p163_p2 = pnand %p3864_p0, %p162_p1 }
   0x5   : > { %vm536_vm0 = vcmask (!%p163_p2), 1041408   ;;  %v3981_v0 = vld [vmem:[%s6007_s1 + $0x8] sm:$0x3] (!%p163_p2)  ;;  %v3867_v1 = vld [vmem:[%s6007_s1 + $0x2] sm:$0x3] (!%p163_p2)  ;;  %p188_p3 = scmp.lt.s32.totalorder (!%p163_p2), %s3860_s16, 1 }
   0x6   : > { %166 = sbr.rel (%p163_p2) target bundleno = 575 (0x23f), region = 36  ;;  %4910 = vmatprep.subr.msk.bf16.mxu0 (!%p163_p2), %vm536_vm0, %v3981_v0  ;;  %4906 = vmatprep.subr.msk.bf16.mxu1 (!%p163_p2), %vm536_vm0, %v3867_v1  ;;  %v5049_v2 = vsel (!%p163_p2), %vm536_vm0, %v3981_v0, 0  ;;  %v538_v3 = vsel (!%p163_p2), %vm536_vm0, %v3867_v1, 0  ;;  %v4001_v4 = vld [vmem:[%s6007_s1 + $0xa] sm:$0x3] (!%p163_p2)  ;;  %vm481_vm2 = vcmask (!%p163_p2), 31744  }
   0x7   : > { %4427 = vmatpush3.bf16.msra.mxu0 (!%p163_p2), %v5049_v2  ;;  %4275 = vmatpush3.bf16.msra.mxu1 (!%p163_p2), %v538_v3  ;;  %v235_v5 = vld [vmem:[%s6007_s1] sm:$0x3] (!%p163_p2)  ;;  %vm332_vm1 = vsmask.f32 (!%p163_p2), 7424  ;;  %v5070_v6 = vsel (!%p163_p2), %vm536_vm0, %v4001_v4, 0  ;;  %vm2139_vm4 = vcmask (!%p163_p2), 1045504  }
   0x8   : > { %4912 = vmatprep.subr.msk.bf16.mxu0 (!%p163_p2), %vm536_vm0, %v4001_v4  ;;  %4907 = vmatprep.subr.msk.bf16.mxu1 (!%p163_p2), %vm536_vm0, %v235_v5  ;;  %vm1692_vm3 = vsmask.f32 (!%p163_p2), 6400  ;;  %v754_v12 = vsel (!%p163_p2), %vm536_vm0, %v235_v5, 0  ;;  %v5118_v39 = vld [vmem:[%s6007_s1 + $0x4] sm:$0x3] (!%p163_p2)  ;;  %vm939_vm5 = vcmask (!%p163_p2), 1046528  }
   0x9   : > { %v5152_v1 = vld [vmem:[%s6007_s1 + $0xc] sm:$0x3] (!%p163_p2)  ;;  %vm2892_vm6 = vsmask.f32 (!%p163_p2), 5376  ;;  %vm3339_vm7 = vcmask (!%p163_p2), 1044480  }
   0xd   : > { %s6012_s16 = smov (!%p188_p3, %s3860_s16), 1 }
   0xe   : > { %s4916_s25 = smul.u32 164, %s6012_s16 }
   0xf   : > { %s4917_s19 = smul.u32 288, %s6012_s16 }
  0x10   : > { %s5067_s28 = scalar_lea.vmem %s6006_s0, %s4916_s25 }
  0x11   : > { %v199_v7 = vld [vmem:[%s5067_s28] sm:$0xf]  ;;  %v5074_v8 = vld [vmem:[%s5067_s28 + $0x4] sm:$0xf]  ;;  %v5080_v10 = vld [vmem:[%s5067_s28 + $0x8] sm:$0xff]   ;;  %s5886_s23 = scalar_lea.vmem %s6010_s4, %s4917_s19 }
  0x12   : > { %v5077_v9 = vcombine.low %v199_v7, %v5074_v8  ;;  %v1247_v11 = vld [vmem:[%s5067_s28 + $0x8] sm:$0xe]  ;;  %v5085_v13 = vld [vmem:[%s5067_s28 + $0xc] sm:$0xf]  ;;  %v341_v16 = vshll.u32 %v5080_v10, 16  ;;  %v345_v17 = vshrl.u32 %v5080_v10, 16 }
  0x13   : > { %v5092_v18 = vld [vmem:[%s5067_s28 + $0x10] sm:$0xff]   ;;  %v5098_v20 = vcombine.low %v1247_v11, %v5085_v13  ;;  %v5106_v28 = vld [vmem:[%s5067_s28 + $0x18] sm:$0xff]   ;;  %v5112_v34 = vld [vmem:[%s5067_s28 + $0x20] sm:$0xff]  }
  0x14   : > { %v334_v14 = vshrl.u32 %v5077_v9, 16  ;;  %v336_v15 = vshll.u32 %v5077_v9, 16  ;;  %v5095_v19 = vld [vmem:[%s5067_s28 + $0x10] sm:$0xff]   ;;  %v343_v22 = vrot.slane %v341_v16, 1  ;;  %v1702_v23 = vshrl.u32 %v5092_v18, 16  ;;  %v5109_v33 = vld [vmem:[%s5067_s28 + $0x18] sm:$0xff]  }
  0x15   : > { %v1705_v24 = vshll.u32 %v5092_v18, 16  ;;  %v1694_v25 = vshrl.u32 %v5098_v20, 16  ;;  %v1697_v26 = vshll.u32 %v5098_v20, 16  ;;  %v349_v27 = vshll.u32 %v5095_v19, 16  ;;  %v5127_v48 = vld [vmem:[%s5067_s28 + $0x20] sm:$0xff]   ;;  %v5130_v49 = vld [vmem:[%s5067_s28 + $0x28] sm:$0xff]  }
  0x16   : > { %v338_v21 = vrot.slane %v336_v15, 1  ;;  %v347_v30 = vor.u32 %v345_v17, %v343_v22  ;;  %v1704_v31 = vrot.slane %v1702_v23, 1  ;;  %v1711_v38 = vshrl.u32 %v5106_v28, 16  ;;  %v5136_v54 = vld [vmem:[%s5067_s28 + $0x28] sm:$0xff]   ;;  %v5142_v59 = vld [vmem:[%s5067_s28 + $0x30] sm:$0xff]   ;;  %v5166_v23 = vld [vmem:[%s5067_s28 + $0x38] sm:$0xff]  }
  0x17   : > { %v1707_v32 = vrot.slane %v1705_v24, 2  ;;  %v1696_v35 = vrot.slane %v1694_v25, 1  ;;  %v1699_v36 = vrot.slane %v1697_v26, 2  ;;  %v351_v37 = vrot.slane %v349_v27, 1  ;;  %v5147_v0 = vld [vmem:[%s5067_s28 + $0x30] sm:$0xff]  }
  0x18   : > { %v339_v29 = vor.u32 %v338_v21, %v334_v14  ;;  %v1714_v42 = vshll.u32 %v5106_v28, 16  ;;  %v353_v43 = vshrl.u32 %v5095_v19, 16  ;;  %v1713_v46 = vrot.slane %v1711_v38, 1 }
  0x19   : > { %v1708_v41 = vor.u32 %v1707_v32, %v1704_v31  ;;  %v1700_v44 = vor.u32 %v1699_v36, %v1696_v35  ;;  %v352_v45 = vsel %vm332_vm1, %v347_v30, %v351_v37  ;;  %v357_v47 = vshll.u32 %v5109_v33, 16  ;;  %v5175_v35 = vld [vmem:[%s5067_s28 + $0x38] sm:$0xff]  }
  0x1a   : > { %v344_v40 = vsel %vm332_vm1, %v339_v29, %v343_v22  ;;  %v1716_v50 = vrot.slane %v1714_v42, 2  ;;  %v355_v51 = vor.u32 %v353_v43, %v351_v37  ;;  %v1720_v52 = vshrl.u32 %v5112_v34, 16 }
  0x1b   : > { %4276 = vmatprep.mubr.msk.bf16.mxu1 %vm481_vm2, %v344_v40  ;;  %v1723_v53 = vshll.u32 %v5112_v34, 16  ;;  %v1709_v55 = vsel %vm1692_vm3, %v1700_v44, %v1708_v41  ;;  %v359_v56 = vrot.slane %v357_v47, 1  ;;  %v361_v57 = vshrl.u32 %v5109_v33, 16  ;;  %v5186_v44 = vld [vmem:[%s5067_s28 + $0x40] sm:$0xff]  }
  0x1c   : > { %4277 = vmatmul.mubr.msk.bf16.vlgmr.msra.gmra.mrb[0].mxu1 %vm481_vm2, %v352_v45  ;;  %v365_v58 = vshll.u32 %v5127_v48, 16  ;;  %4428 = vmatprep.mubr.msk.bf16.mxu0 %vm481_vm2, %v1709_v55  ;;  %v1717_v60 = vor.u32 %v1716_v50, %v1713_v46  ;;  %v1722_v61 = vrot.slane %v1720_v52, 1  ;;  %v1729_v63 = vshrl.u32 %v5130_v49, 16 }
  0x1d   : > { %4313 = vmatpush3.bf16.msra.mxu1 %v754_v12  ;;  %v1725_v62 = vrot.slane %v1723_v53, 2  ;;  %v360_v3 = vsel %vm332_vm1, %v355_v51, %v359_v56  ;;  %v363_v4 = vor.u32 %v361_v57, %v359_v56  ;;  %v1732_v7 = vshll.u32 %v5130_v49, 16  ;;  %v5191_v51 = vld [vmem:[%s5067_s28 + $0x40] sm:$0xff]  }
  0x1e   : > { %4908 = vmatprep.subr.msk.bf16.mxu1 %vm536_vm0, %v5118_v39  ;;  %v367_v5 = vrot.slane %v365_v58, 1  ;;  %v1718_v11 = vsel %vm1692_vm3, %v1708_v41, %v1717_v60  ;;  %4280 = vmatprep.mubr.msk.bf16.mxu1 %vm481_vm2, %v360_v3  ;;  %v1731_v14 = vrot.slane %v1729_v63, 1  ;;  %v369_v15 = vshrl.u32 %v5127_v48, 16  ;;  %v5202_v63 = vld [vmem:[%s5067_s28 + $0x48] sm:$0xff]  }
  0x1f   : > { %v1726_v12 = vor.u32 %v1725_v62, %v1722_v61  ;;  %4429 = vmatmul.mubr.msk.bf16.vlgmr.msra.gmra.mrb[0].mxu0 %vm481_vm2, %v1718_v11  ;;  %v1734_v17 = vrot.slane %v1732_v7, 2  ;;  %v373_v21 = vshll.u32 %v5136_v54, 16  ;;  %v1738_v22 = vshrl.u32 %v5142_v59, 16  ;;  %v5199_v62 = vld [vmem:[%s5067_s28 + $0x48] sm:$0xff]  }
  0x20   : > { %v368_v16 = vsel %vm332_vm1, %v363_v4, %v367_v5  ;;  %4465 = vmatpush3.bf16.msra.mxu0 %v5070_v6  ;;  %v371_v25 = vor.u32 %v369_v15, %v367_v5  ;;  %v1741_v26 = vshll.u32 %v5142_v59, 16  ;;  %v377_v27 = vshrl.u32 %v5136_v54, 16 }
  0x21   : > { %v1727_v24 = vsel %vm1692_vm3, %v1717_v60, %v1726_v12  ;;  %v1735_v29 = vor.u32 %v1734_v17, %v1731_v14  ;;  %v375_v30 = vrot.slane %v373_v21, 1  ;;  %v1740_v31 = vrot.slane %v1738_v22, 1  ;;  %4913 = vmatprep.subr.msk.bf16.mxu0 %vm536_vm0, %v5152_v1  ;;  %v5211_v14 = vld [vmem:[%s5067_s28 + $0x50] sm:$0xff]  }
  0x22   : > { %4432 = vmatprep.mubr.msk.bf16.mxu0 %vm481_vm2, %v1727_v24  ;;  %v381_v32 = vshll.u32 %v5147_v0, 16  ;;  %v1743_v6 = vrot.slane %v1741_v26, 2  ;;  %v1747_v36 = vshrl.u32 %v5166_v23, 16  ;;  %v1750_v37 = vshll.u32 %v5166_v23, 16 }
  0x23   : > { %v385_v38 = vshrl.u32 %v5147_v0, 16  ;;  %v1736_v40 = vsel %vm1692_vm3, %v1726_v12, %v1735_v29  ;;  %v376_v41 = vsel %vm332_vm1, %v371_v25, %v375_v30  ;;  %v379_v42 = vor.u32 %v377_v27, %v375_v30  ;;  %v5219_v25 = vld [vmem:[%s5067_s28 + $0x50] sm:$0xff]  }
  0x24   : > { %4281 = vmatmul.mubr.msk.bf16.gmra.mrb[4].mxu1 %vm481_vm2, %v368_v16  ;;  %v383_v43 = vrot.slane %v381_v32, 1  ;;  %v1744_v45 = vor.u32 %v1743_v6, %v1740_v31  ;;  %v1749_v46 = vrot.slane %v1747_v36, 1  ;;  %v1752_v47 = vrot.slane %v1750_v37, 2 }
  0x25   : > { %4284 = vmatprep.mubr.msk.bf16.mxu1 %vm481_vm2, %v376_v41  ;;  %v389_v50 = vshll.u32 %v5175_v35, 16  ;;  %v1756_v55 = vshrl.u32 %v5186_v44, 16  ;;  %v1759_v56 = vshll.u32 %v5186_v44, 16  ;;  %v393_v61 = vshrl.u32 %v5175_v35, 16  ;;  %v5229_v41 = vld [vmem:[%s5067_s28 + $0x58] sm:$0xff]  }
  0x26   : > { %v384_v52 = vsel %vm332_vm1, %v379_v42, %v383_v43  ;;  %v387_v53 = vor.u32 %v385_v38, %v383_v43  ;;  %v1745_v57 = vsel %vm1692_vm3, %v1735_v29, %v1744_v45  ;;  %v1753_v58 = vor.u32 %v1752_v47, %v1749_v46  ;;  %v5224_v29 = vld [vmem:[%s5067_s28 + $0x58] sm:$0xff]  }
  0x27   : > { %v391_v60 = vrot.slane %v389_v50, 1  ;;  %4433 = vmatmul.mubr.msk.bf16.gmra.mrb[4].mxu0 %vm481_vm2, %v1736_v40  ;;  %v1758_v3 = vrot.slane %v1756_v55, 1  ;;  %v1761_v4 = vrot.slane %v1759_v56, 2  ;;  %v397_v5 = vshll.u32 %v5191_v51, 16 }
  0x28   : > { %v401_v7 = vshrl.u32 %v5191_v51, 16  ;;  %4436 = vmatprep.mubr.msk.bf16.mxu0 %vm481_vm2, %v1745_v57  ;;  %v1765_v12 = vshrl.u32 %v5199_v62, 16  ;;  %v1768_v16 = vshll.u32 %v5199_v62, 16  ;;  %v405_v17 = vshll.u32 %v5202_v63, 16  ;;  %v2133_v57 = vld [vmem:[%s5067_s28 + $0x8] sm:$0xc] }
  0x29   : > { %v392_v11 = vsel %vm332_vm1, %v387_v53, %v391_v60  ;;  %v1762_v15 = vor.u32 %v1761_v4, %v1758_v3  ;;  %v399_v21 = vrot.slane %v397_v5, 1  ;;  %v1774_v22 = vshrl.u32 %v5211_v14, 16 }
  0x2a   : > { %v1777_v24 = vshll.u32 %v5211_v14, 16  ;;  %v1754_v26 = vsel %vm1692_vm3, %v1744_v45, %v1753_v58  ;;  %v395_v27 = vor.u32 %v393_v61, %v391_v60  ;;  %v1767_v30 = vrot.slane %v1765_v12, 1 }
  0x2b   : > { %v1770_v31 = vrot.slane %v1768_v16, 2  ;;  %v403_v32 = vor.u32 %v401_v7, %v399_v21  ;;  %v407_v6 = vrot.slane %v405_v17, 1  ;;  %v1763_v36 = vsel %vm1692_vm3, %v1753_v58, %v1762_v15  ;;  %v5243_v58 = vld [vmem:[%s5067_s28 + $0x60] sm:$0xff]  }
  0x2c   : > { %4285 = vmatmul.mubr.msk.bf16.gmra.mrb[8].mxu1 %vm481_vm2, %v384_v52  ;;  %v1776_v37 = vrot.slane %v1774_v22, 1  ;;  %v1779_v38 = vrot.slane %v1777_v24, 2  ;;  %v413_v40 = vshll.u32 %v5219_v25, 16  ;;  %v400_v42 = vsel %vm332_vm1, %v395_v27, %v399_v21 }
  0x2d   : > { %4288 = vmatprep.mubr.msk.bf16.mxu1 %vm481_vm2, %v392_v11  ;;  %v409_v43 = vshrl.u32 %v5202_v63, 16  ;;  %v1783_v45 = vshrl.u32 %v5224_v29, 16  ;;  %v1786_v46 = vshll.u32 %v5224_v29, 16  ;;  %v1771_v47 = vor.u32 %v1770_v31, %v1767_v30  ;;  %v5248_v11 = vld [vmem:[%s5067_s28 + $0x68] sm:$0xff]  }
  0x2e   : > { %v408_v50 = vsel %vm332_vm1, %v403_v32, %v407_v6  ;;  %v417_v52 = vshrl.u32 %v5219_v25, 16  ;;  %v421_v53 = vshll.u32 %v5229_v41, 16  ;;  %v1780_v55 = vor.u32 %v1779_v38, %v1776_v37  ;;  %v5265_v32 = vld [vmem:[%s5067_s28 + $0x70] sm:$0xff]  }
  0x2f   : > { %4437 = vmatmul.mubr.msk.bf16.gmra.mrb[8].mxu0 %vm481_vm2, %v1754_v26  ;;  %v415_v56 = vrot.slane %v413_v40, 1  ;;  %v411_v60 = vor.u32 %v409_v43, %v407_v6  ;;  %v1785_v61 = vrot.slane %v1783_v45, 1  ;;  %v1788_v3 = vrot.slane %v1786_v46, 2  ;;  %v5271_v40 = vld [vmem:[%s5067_s28 + $0x78] sm:$0xff]  }
  0x30   : > { %4440 = vmatprep.mubr.msk.bf16.mxu0 %vm481_vm2, %v1763_v36  ;;  %v1772_v4 = vsel %vm1692_vm3, %v1762_v15, %v1771_v47  ;;  %v423_v7 = vrot.slane %v421_v53, 1  ;;  %v1781_v12 = vsel %vm1692_vm3, %v1771_v47, %v1780_v55  ;;  %v4002_v16 = vcombine.low %v2133_v57, %v5085_v13 }
  0x31   : > { %v419_v5 = vor.u32 %v417_v52, %v415_v56  ;;  %v429_v17 = vshll.u32 %v5243_v58, 16  ;;  %v416_v21 = vsel %vm332_vm1, %v411_v60, %v415_v56  ;;  %v425_v22 = vshrl.u32 %v5229_v41, 16  ;;  %v5286_v56 = vld [vmem:[%s5067_s28 + $0x80] sm:$0xff]  }
  0x32   : > { %v5257_v15 = vor.u32 %v1788_v3, %v1785_v61  ;;  %v433_v26 = vshrl.u32 %v5243_v58, 16  ;;  %v437_v27 = vshll.u32 %v5248_v11, 16  ;;  %v2140_v13 = vrot.slane %v4002_v16, 2 }
  0x33   : > { %v424_v24 = vsel %vm332_vm1, %v419_v5, %v423_v7  ;;  %v2141_v30 = vrot.slane %v5092_v18, 2  ;;  %v431_v31 = vrot.slane %v429_v17, 1  ;;  %v427_v6 = vor.u32 %v425_v22, %v423_v7 }
  0x34   : > { %4289 = vmatmul.mubr.msk.bf16.gmra.mrb[12].mxu1 %vm481_vm2, %v400_v42  ;;  %v1790_v36 = vsel %vm1692_vm3, %v1780_v55, %v5257_v15  ;;  %v439_v38 = vrot.slane %v437_v27, 1  ;;  %v445_v18 = vshll.u32 %v5265_v32, 16  ;;  %v2143_v45 = vrot.slane %v5106_v28, 2  ;;  %v5316_v27 = vld [vmem:[%s5067_s28 + $0x90] ss:$0 sps:$4 sm:$0x11]  }
  0x35   : > { %4292 = vmatprep.mubr.msk.bf16.mxu1 %vm481_vm2, %v408_v50  ;;  %v435_v37 = vor.u32 %v433_v26, %v431_v31  ;;  %v2142_v42 = vsel %vm2139_vm4, %v2140_v13, %v2141_v30  ;;  %v432_v43 = vsel %vm332_vm1, %v427_v6, %v431_v31  ;;  %v441_v46 = vshrl.u32 %v5248_v11, 16 }
  0x36   : > { %v449_v50 = vshrl.u32 %v5265_v32, 16  ;;  %v453_v52 = vshll.u32 %v5271_v40, 16  ;;  %v2145_v53 = vrot.slane %v5112_v34, 2  ;;  %v447_v55 = vrot.slane %v445_v18, 1  ;;  %v5299_v34 = vld [vmem:[%s6007_s1 + $0xe] sm:$0x3] }
  0x37   : > { %4441 = vmatmul.mubr.msk.bf16.gmra.mrb[12].mxu0 %vm481_vm2, %v1772_v4  ;;  %v440_v47 = vsel %vm332_vm1, %v435_v37, %v439_v38  ;;  %v2671_v28 = vsel %vm536_vm0, %v5152_v1, 0  ;;  %v443_v57 = vor.u32 %v441_v46, %v439_v38  ;;  %v2144_v60 = vsel %vm2139_vm4, %v2141_v30, %v2143_v45  ;;  %v5293_v4 = vld [vmem:[%s5067_s28 + $0x88] sm:$0xff]  }
  0x38   : > { %4444 = vmatprep.mubr.msk.bf16.mxu0 %vm481_vm2, %v1781_v12  ;;  %v451_v61 = vor.u32 %v449_v50, %v447_v55  ;;  %v455_v3 = vrot.slane %v453_v52, 1  ;;  %v2146_v5 = vsel %vm2139_vm4, %v2143_v45, %v2145_v53  ;;  %v461_v7 = vshll.u32 %v5286_v56, 16 }
  0x39   : > { %v448_v1 = vsel %vm332_vm1, %v443_v57, %v447_v55  ;;  %v2147_v12 = vrot.slane %v5130_v49, 2  ;;  %v457_v16 = vshrl.u32 %v5271_v40, 16  ;;  %v469_v22 = vshll.u32 %v5293_v4, 16  ;;  %v5343_v55 = vld [vmem:[%s5067_s28 + $0x60] sm:$0xff]   ;;  %v5362_v57 = vld [vmem:[%s5067_s28 + $0x68] sm:$0xff]  }
  0x3a   : > { %v456_v17 = vsel %vm332_vm1, %v451_v61, %v455_v3  ;;  %v463_v26 = vrot.slane %v461_v7, 1  ;;  %v477_v37 = vshll.u32 %v5316_v27, 16  ;;  %v2151_v38 = vrot.slane %v5166_v23, 2  ;;  %v5380_v7 = vld [vmem:[%s5067_s28 + $0x78] sm:$0xff]  }
  0x3b   : > { %v459_v49 = vor.u32 %v457_v16, %v455_v3  ;;  %v2148_v13 = vsel %vm2139_vm4, %v2145_v53, %v2147_v12  ;;  %v471_v31 = vrot.slane %v469_v22, 1  ;;  %v2153_v18 = vrot.slane %v5186_v44, 2  ;;  %v5396_v22 = vld [vmem:[%s5067_s28 + $0x88] sm:$0xff]  }
  0x3c   : > { %4293 = vmatmul.mubr.msk.bf16.gmra.mrb[16].mxu1 %vm481_vm2, %v416_v21  ;;  %v465_v21 = vshrl.u32 %v5286_v56, 16  ;;  %v479_v45 = vrot.slane %v477_v37, 1  ;;  %v2155_v23 = vrot.slane %v5199_v62, 2  ;;  %v2157_v44 = vrot.slane %v5211_v14, 2 }
  0x3d   : > { %4296 = vmatprep.mubr.msk.bf16.mxu1 %vm481_vm2, %v424_v24  ;;  %v2149_v24 = vrot.slane %v5142_v59, 2  ;;  %v464_v59 = vsel %vm332_vm1, %v459_v49, %v463_v26  ;;  %v2159_v62 = vrot.slane %v5224_v29, 2  ;;  %v1032_v14 = vsel %vm536_vm0, %v5118_v39, 0 }
  0x3e   : > { %v467_v30 = vor.u32 %v465_v21, %v463_v26  ;;  %v2156_v52 = vsel %vm2139_vm4, %v2153_v18, %v2155_v23  ;;  %v2158_v53 = vsel %vm2139_vm4, %v2155_v23, %v2157_v44  ;;  %v2163_v61 = vrot.slane %v5362_v57, 2  ;;  %v5400_v26 = vld [vmem:[%s5067_s28 + $0x90] sm:$0xff]  }
  0x3f   : > { %4445 = vmatmul.mubr.msk.bf16.gmra.mrb[16].mxu0 %vm481_vm2, %v1790_v36  ;;  %v2150_v6 = vsel %vm2139_vm4, %v2147_v12, %v2149_v24  ;;  %v473_v36 = vshrl.u32 %v5293_v4, 16  ;;  %v2152_v46 = vsel %vm2139_vm4, %v2149_v24, %v2151_v38  ;;  %v2160_v29 = vsel %vm2139_vm4, %v2157_v44, %v2159_v62  ;;  %v5384_v12 = vld [vmem:[%s5067_s28 + $0x80] sm:$0xff]  }
  0x40   : > { %4466 = vmatprep.mubr.msk.bf16.mxu0 %vm481_vm2, %v2142_v42  ;;  %v472_v42 = vsel %vm332_vm1, %v467_v30, %v471_v31  ;;  %v2167_v16 = vrot.slane %v5380_v7, 2  ;;  %v2171_v49 = vrot.slane %v5396_v22, 2  ;;  %v2447_v30 = vld [vmem:[%s5067_s28 + $0x10] sm:$0xc] }
  0x44   : > { %4297 = vmatmul.mubr.msk.bf16.gmra.mrb[20].mxu1 %vm481_vm2, %v432_v43  ;;  %v475_v43 = vor.u32 %v473_v36, %v471_v31  ;;  %v5410_v31 = vld [vmem:[%s5067_s28 + $0x14] sm:$0xf] }
  0x45   : > { %4300 = vmatprep.mubr.msk.bf16.mxu1 %vm481_vm2, %v440_v47  ;;  %v2154_v47 = vsel %vm2139_vm4, %v2151_v38, %v2153_v18  ;;  %v5420_v37 = vcombine.low %v2447_v30, %v5410_v31  ;;  %v5423_v38 = vld [vmem:[%s5067_s28 + $0x18] sm:$0xff]  }
  0x46   : > { %v480_v50 = vsel %vm332_vm1, %v475_v43, %v479_v45  ;;  %v2580_v43 = vrot.slane %v5423_v38, 2 }
  0x47   : > { %4467 = vmatmul.mubr.msk.bf16.vlgmr.msra.gmra.mrb[0].mxu0 %vm481_vm2, %v2144_v60  ;;  %v5368_v60 = vld [vmem:[%s5067_s28 + $0x70] sm:$0xff]   ;;  %v2579_v18 = vrot.slane %v5420_v37, 2 }
  0x48   : > { %4503 = vmatpush3.bf16.msra.mxu0 %v2671_v28  ;;  %4470 = vmatprep.mubr.msk.bf16.mxu0 %vm481_vm2, %v2146_v5  ;;  %v2161_v28 = vrot.slane %v5343_v55, 2  ;;  %v2165_v3 = vrot.slane %v5368_v60, 2 }
  0x49   : > { %4914 = vmatprep.subr.msk.bf16.mxu0 %vm536_vm0, %v5299_v34 }
  0x4a   : > { %v2162_v39 = vsel %vm2139_vm4, %v2159_v62, %v2161_v28  ;;  %v2164_v5 = vsel %vm2139_vm4, %v2161_v28, %v2163_v61  ;;  %v2168_v21 = vsel %vm2139_vm4, %v2165_v3, %v2167_v16  ;;  %v3118_v62 = vsel %vm536_vm0, %v5299_v34, 0  ;;  %v5458_v28 = vld [vmem:[%s5067_s28 + $0x38] sm:$0xff]  }
  0x4c   : > { %4301 = vmatmul.mubr.msk.bf16.gmra.mrb[24].mxu1 %vm481_vm2, %v448_v1  ;;  %v2166_v1 = vsel %vm2139_vm4, %v2163_v61, %v2165_v3  ;;  %v2588_v61 = vrot.slane %v5458_v28, 2  ;;  %v5477_v3 = vld [vmem:[%s5067_s28 + $0x40] sm:$0xff]  }
  0x4d   : > { %4304 = vmatprep.mubr.msk.bf16.mxu1 %vm481_vm2, %v456_v17  ;;  %v2169_v17 = vrot.slane %v5384_v12, 2 }
  0x4f   : > { %4471 = vmatmul.mubr.msk.bf16.gmra.mrb[4].mxu0 %vm481_vm2, %v2148_v13  ;;  %v2170_v24 = vsel %vm2139_vm4, %v2167_v16, %v2169_v17  ;;  %v2173_v13 = vrot.slane %v5400_v26, 2  ;;  %v933_v16 = vld [vmem:[%s5067_s28] sm:$0xe] }
  0x50   : > { %4474 = vmatprep.mubr.msk.bf16.mxu0 %vm481_vm2, %v2150_v6  ;;  %v2172_v6 = vsel %vm2139_vm4, %v2169_v17, %v2171_v49  ;;  %v2590_v17 = vrot.slane %v5477_v3, 2 }
  0x51   : > { %v2174_v36 = vsel %vm2139_vm4, %v2171_v49, %v2173_v13 }
  0x52   : > { %v2591_v49 = vsel %vm2139_vm4, %v2588_v61, %v2590_v17 }
  0x54   : > { %4305 = vmatmul.mubr.msk.bf16.gmra.mrb[28].mxu1 %vm481_vm2, %v464_v59  ;;  %v5416_v59 = vld [vmem:[%s5067_s28 + $0x98] ss:$0 sps:$4 sm:$0x33]  }
  0x55   : > { %4308 = vmatprep.mubr.msk.bf16.mxu1 %vm481_vm2, %v472_v42  ;;  %v2175_v42 = vrot.slane %v5416_v59, 2 }
  0x57   : > { %4475 = vmatmul.mubr.msk.bf16.gmra.mrb[8].mxu0 %vm481_vm2, %v2152_v46  ;;  %v2176_v45 = vsel %vm2139_vm4, %v2173_v13, %v2175_v42  ;;  %v5436_v46 = vld [vmem:[%s5067_s28 + $0x20] sm:$0xff]   ;;  %v5495_v13 = vld [vmem:[%s5067_s28 + $0x50] sm:$0xff]  }
  0x58   : > { %4478 = vmatprep.mubr.msk.bf16.mxu0 %vm481_vm2, %v2154_v47  ;;  %v2581_v47 = vsel %vm2139_vm4, %v2579_v18, %v2580_v43  ;;  %v2582_v23 = vrot.slane %v5436_v46, 2  ;;  %v2594_v42 = vrot.slane %v5495_v13, 2 }
  0x5c   : > { %4309 = vmatmul.mubr.msk.bf16.gmra.mrb[32].mxu1 %vm481_vm2, %v480_v50  ;;  %v5440_v50 = vld [vmem:[%s5067_s28 + $0x28] sm:$0xff]  }
  0x5d   : > { %4314 = vmatprep.mubr.msk.bf16.mxu1 %vm481_vm2, %v5077_v9  ;;  %v5354_v9 = vld [vmem:[%s6007_s1 + $0x6] sm:$0x3]  ;;  %v2584_v44 = vrot.slane %v5440_v50, 2 }
  0x5f   : > { %4479 = vmatmul.mubr.msk.bf16.gmra.mrb[12].mxu0 %vm481_vm2, %v2156_v52  ;;  %v2583_v52 = vsel %vm2139_vm4, %v2580_v43, %v2582_v23 }
  0x60   : > { %4482 = vmatprep.mubr.msk.bf16.mxu0 %vm481_vm2, %v2158_v53  ;;  %v5452_v53 = vld [vmem:[%s5067_s28 + $0x30] sm:$0xff]  }
  0x64   : > { %4315 = vmatmul.mubr.msk.bf16.vlgmr.msra.gmra.mrb[0].mxu1 %vm481_vm2, %v5080_v10 }
  0x65   : > { %4318 = vmatprep.mubr.msk.bf16.mxu1 %vm481_vm2, %v5095_v19  ;;  %4351 = vmatpush3.bf16.msra.mxu1 %v1032_v14  ;;  %v2585_v14 = vsel %vm2139_vm4, %v2582_v23, %v2584_v44  ;;  %v945_v23 = vrot.slane %v5109_v33, 1 }
  0x66   : > { %4909 = vmatprep.subr.msk.bf16.mxu1 %vm536_vm0, %v5354_v9 }
  0x67   : > { %4483 = vmatmul.mubr.msk.bf16.gmra.mrb[16].mxu0 %vm481_vm2, %v2160_v29  ;;  %v5463_v29 = vld [vmem:[%s6007_s1 + $0x10] sm:$0x3] }
  0x68   : > { %4486 = vmatprep.mubr.msk.bf16.mxu0 %vm481_vm2, %v2162_v39  ;;  %v2586_v39 = vrot.slane %v5452_v53, 2 }
  0x6a   : > { %v2587_v34 = vsel %vm2139_vm4, %v2584_v44, %v2586_v39 }
  0x6c   : > { %4319 = vmatmul.mubr.msk.bf16.gmra.mrb[4].mxu1 %vm481_vm2, %v5109_v33 }
  0x6d   : > { %4322 = vmatprep.mubr.msk.bf16.mxu1 %vm481_vm2, %v5127_v48 }
  0x6f   : > { %4487 = vmatmul.mubr.msk.bf16.gmra.mrb[20].mxu0 %vm481_vm2, %v2164_v5  ;;  %v2589_v5 = vsel %vm2139_vm4, %v2586_v39, %v2588_v61  ;;  %v1471_v39 = vsel %vm536_vm0, %v5354_v9, 0  ;;  %v947_v61 = vrot.slane %v5127_v48, 1  ;;  %v4988_v9 = vld [vmem:[%s6007_s1 + $0x8] sm:$0x3] }
  0x70   : > { %4490 = vmatprep.mubr.msk.bf16.mxu0 %vm481_vm2, %v2166_v1  ;;  %v5481_v1 = vld [vmem:[%s5067_s28 + $0x48] sm:$0xff]  }
  0x71   : > { %v948_v48 = vsel %vm939_vm5, %v945_v23, %v947_v61 }
  0x74   : > { %4323 = vmatmul.mubr.msk.bf16.gmra.mrb[8].mxu1 %vm481_vm2, %v5136_v54 }
  0x75   : > { %4326 = vmatprep.mubr.msk.bf16.mxu1 %vm481_vm2, %v5147_v0 }
  0x77   : > { %4491 = vmatmul.mubr.msk.bf16.gmra.mrb[24].mxu0 %vm481_vm2, %v2168_v21  ;;  %v3924_v21 = vcombine.low %v933_v16, %v5074_v8  ;;  %v5500_v8 = vld [vmem:[%s5067_s28 + $0x58] sm:$0xff]   ;;  %v949_v16 = vrot.slane %v5136_v54, 1 }
  0x78   : > { %4494 = vmatprep.mubr.msk.bf16.mxu0 %vm481_vm2, %v2170_v24  ;;  %v2592_v24 = vrot.slane %v5481_v1, 2  ;;  %v2596_v43 = vrot.slane %v5500_v8, 2 }
  0x79   : > { %v940_v30 = vrot.slane %v3924_v21, 1  ;;  %v5542_v21 = vld [vmem:[%s5067_s28 + $0x78] sm:$0xff]   ;;  %v950_v54 = vsel %vm939_vm5, %v947_v61, %v949_v16 }
  0x7a   : > { %v2597_v44 = vsel %vm2139_vm4, %v2594_v42, %v2596_v43 }
  0x7c   : > { %4327 = vmatmul.mubr.msk.bf16.gmra.mrb[12].mxu1 %vm481_vm2, %v5175_v35 }
  0x7d   : > { %4330 = vmatprep.mubr.msk.bf16.mxu1 %vm481_vm2, %v5191_v51 }
  0x7f   : > { %4495 = vmatmul.mubr.msk.bf16.gmra.mrb[28].mxu0 %vm481_vm2, %v2172_v6  ;;  %v941_v6 = vrot.slane %v5080_v10, 1  ;;  %v943_v10 = vrot.slane %v5095_v19, 1 }
  0x80   : > { %4498 = vmatprep.mubr.msk.bf16.mxu0 %vm481_vm2, %v2174_v36  ;;  %v2593_v36 = vsel %vm2139_vm4, %v2590_v17, %v2592_v24 }
  0x81   : > { %v942_v18 = vsel %vm939_vm5, %v940_v30, %v941_v6  ;;  %v951_v30 = vrot.slane %v5147_v0, 1 }
  0x84   : > { %4331 = vmatmul.mubr.msk.bf16.gmra.mrb[16].mxu1 %vm481_vm2, %v5202_v63 }
  0x85   : > { %4334 = vmatprep.mubr.msk.bf16.mxu1 %vm481_vm2, %v5219_v25 }
  0x87   : > { %4499 = vmatmul.mubr.msk.bf16.gmra.mrb[32].mxu0 %vm481_vm2, %v2176_v45  ;;  %v2595_v45 = vsel %vm2139_vm4, %v2592_v24, %v2594_v42  ;;  %v953_v42 = vrot.slane %v5175_v35, 1  ;;  %v955_v35 = vrot.slane %v5191_v51, 1 }
  0x88   : > { %4504 = vmatprep.mubr.msk.bf16.mxu0 %vm481_vm2, %v2581_v47  ;;  %v5513_v47 = vld [vmem:[%s5067_s28 + $0x60] sm:$0xff]  }
  0x89   : > { %v2598_v19 = vrot.slane %v5513_v47, 2 }
  0x8c   : > { %4335 = vmatmul.mubr.msk.bf16.gmra.mrb[20].mxu1 %vm481_vm2, %v5229_v41 }
  0x8d   : > { %4338 = vmatprep.mubr.msk.bf16.mxu1 %vm481_vm2, %v5243_v58 }
  0x8f   : > { %4505 = vmatmul.mubr.msk.bf16.vlgmr.msra.gmra.mrb[0].mxu0 %vm481_vm2, %v2583_v52  ;;  %v5518_v52 = vld [vmem:[%s5067_s28 + $0x68] sm:$0xff]  }
  0x90   : > { %4541 = vmatpush3.bf16.msra.mxu0 %v3118_v62  ;;  %4508 = vmatprep.mubr.msk.bf16.mxu0 %vm481_vm2, %v2585_v14  ;;  %v944_v62 = vsel %vm939_vm5, %v941_v6, %v943_v10  ;;  %v946_v14 = vsel %vm939_vm5, %v943_v10, %v945_v23  ;;  %v2600_v33 = vrot.slane %v5518_v52, 2  ;;  %v952_v10 = vsel %vm939_vm5, %v949_v16, %v951_v30 }
  0x91   : > { %4915 = vmatprep.subr.msk.bf16.mxu0 %vm536_vm0, %v5463_v29  ;;  %v2894_v16 = vshrl.u32 %v5420_v37, 16 }
  0x92   : > { %v2601_v17 = vsel %vm2139_vm4, %v2598_v19, %v2600_v33 }
  0x94   : > { %4339 = vmatmul.mubr.msk.bf16.gmra.mrb[24].mxu1 %vm481_vm2, %v5248_v11 }
  0x95   : > { %4342 = vmatprep.mubr.msk.bf16.mxu1 %vm481_vm2, %v5265_v32 }
  0x97   : > { %4509 = vmatmul.mubr.msk.bf16.gmra.mrb[4].mxu0 %vm481_vm2, %v2587_v34  ;;  %v2599_v34 = vsel %vm2139_vm4, %v2596_v43, %v2598_v19  ;;  %v5560_v43 = vld [vmem:[%s5067_s28 + $0x88] sm:$0xff]   ;;  %v957_v19 = vrot.slane %v5202_v63, 1  ;;  %v2897_v63 = vshll.u32 %v5420_v37, 16 }
  0x98   : > { %4512 = vmatprep.mubr.msk.bf16.mxu0 %vm481_vm2, %v2589_v5  ;;  %v5533_v5 = vld [vmem:[%s5067_s28 + $0x70] sm:$0xff]   ;;  %v2608_v23 = vrot.slane %v5560_v43, 2 }
  0x99   : > { %v2602_v24 = vrot.slane %v5533_v5, 2  ;;  %v958_v51 = vsel %vm939_vm5, %v955_v35, %v957_v19 }
  0x9b   : > { %v2603_v6 = vsel %vm2139_vm4, %v2600_v33, %v2602_v24  ;;  %v956_v33 = vsel %vm939_vm5, %v953_v42, %v955_v35 }
  0x9c   : > { %4343 = vmatmul.mubr.msk.bf16.gmra.mrb[28].mxu1 %vm481_vm2, %v5271_v40 }
  0x9d   : > { %4346 = vmatprep.mubr.msk.bf16.mxu1 %vm481_vm2, %v5286_v56 }
  0x9f   : > { %4513 = vmatmul.mubr.msk.bf16.gmra.mrb[8].mxu0 %vm481_vm2, %v2591_v49  ;;  %v2604_v49 = vrot.slane %v5542_v21, 2 }
  0xa0   : > { %4516 = vmatprep.mubr.msk.bf16.mxu0 %vm481_vm2, %v2593_v36  ;;  %v5555_v36 = vld [vmem:[%s5067_s28 + $0x80] sm:$0xff]  }
  0xa1   : > { %v2606_v0 = vrot.slane %v5555_v36, 2 }
  0xa4   : > { %4347 = vmatmul.mubr.msk.bf16.gmra.mrb[32].mxu1 %vm481_vm2, %v5293_v4 }
  0xa5   : > { %4352 = vmatprep.mubr.msk.bf16.mxu1 %vm481_vm2, %v942_v18  ;;  %v2605_v18 = vsel %vm2139_vm4, %v2602_v24, %v2604_v49 }
  0xa7   : > { %4517 = vmatmul.mubr.msk.bf16.gmra.mrb[12].mxu0 %vm481_vm2, %v2595_v45  ;;  %v954_v45 = vsel %vm939_vm5, %v951_v30, %v953_v42  ;;  %v961_v30 = vrot.slane %v5229_v41, 1  ;;  %v2899_v42 = vrot.slane %v2897_v63, 3  ;;  %v2920_v41 = vshrl.u32 %v5440_v50, 16 }
  0xa8   : > { %4520 = vmatprep.mubr.msk.bf16.mxu0 %vm481_vm2, %v2597_v44  ;;  %v2607_v44 = vsel %vm2139_vm4, %v2604_v49, %v2606_v0  ;;  %v4984_v49 = vld [vmem:[%s5067_s28 + $0xa0] ss:$0 sps:$4 sm:$0x33]  }
  0xac   : > { %4353 = vmatmul.mubr.msk.bf16.vlgmr.msra.gmra.mrb[0].mxu1 %vm481_vm2, %v944_v62  ;;  %v5573_v62 = vld [vmem:[%s5067_s28 + $0x90] sm:$0xff]  }
  0xad   : > { %4356 = vmatprep.mubr.msk.bf16.mxu1 %vm481_vm2, %v946_v14  ;;  %4389 = vmatpush3.bf16.msra.mxu1 %v1471_v39  ;;  %v5577_v14 = vld [vmem:[%s5067_s28 + $0x98] sm:$0xff]   ;;  %v2609_v39 = vsel %vm2139_vm4, %v2606_v0, %v2608_v23  ;;  %v2610_v61 = vrot.slane %v5573_v62, 2  ;;  %v2614_v0 = vrot.slane %v4984_v49, 2 }
  0xae   : > { %4911 = vmatprep.subr.msk.bf16.mxu1 %vm536_vm0, %v4988_v9  ;;  %v2902_v9 = vshrl.u32 %v5423_v38, 16 }
  0xaf   : > { %4521 = vmatmul.mubr.msk.bf16.gmra.mrb[16].mxu0 %vm481_vm2, %v2599_v34  ;;  %v2612_v34 = vrot.slane %v5577_v14, 2  ;;  %v2611_v24 = vsel %vm2139_vm4, %v2608_v23, %v2610_v61  ;;  %v2914_v23 = vshll.u32 %v5436_v46, 16 }
  0xb0   : > { %4524 = vmatprep.mubr.msk.bf16.mxu0 %vm481_vm2, %v2601_v17  ;;  %v2905_v17 = vshll.u32 %v5423_v38, 16  ;;  %v2904_v37 = vrot.slane %v2902_v9, 2  ;;  %v2922_v9 = vrot.slane %v2920_v41, 2  ;;  %v2947_v41 = vshrl.u32 %v5477_v3, 16 }
  0xb4   : > { %4357 = vmatmul.mubr.msk.bf16.gmra.mrb[4].mxu1 %vm481_vm2, %v948_v48  ;;  %v959_v48 = vrot.slane %v5219_v25, 1 }
  0xb5   : > { %4360 = vmatprep.mubr.msk.bf16.mxu1 %vm481_vm2, %v950_v54  ;;  %v2613_v54 = vsel %vm2139_vm4, %v2610_v61, %v2612_v34 }
  0xb6   : > { %v962_v25 = vsel %vm939_vm5, %v959_v48, %v961_v30 }
  0xb7   : > { %4525 = vmatmul.mubr.msk.bf16.gmra.mrb[20].mxu0 %vm481_vm2, %v2603_v6  ;;  %v2896_v6 = vrot.slane %v2894_v16, 2  ;;  %v965_v16 = vrot.slane %v5248_v11, 1  ;;  %v2938_v11 = vshrl.u32 %v5458_v28, 16 }
  0xb8   : > { %4528 = vmatprep.mubr.msk.bf16.mxu0 %vm481_vm2, %v2605_v18  ;;  %v2907_v18 = vrot.slane %v2905_v17, 3 }
  0xb9   : > { %v2900_v35 = vor.u32 %v2899_v42, %v2896_v6  ;;  %v2941_v6 = vshll.u32 %v5458_v28, 16 }
  0xbc   : > { %4361 = vmatmul.mubr.msk.bf16.gmra.mrb[8].mxu1 %vm481_vm2, %v952_v10  ;;  %v960_v10 = vsel %vm939_vm5, %v957_v19, %v959_v48  ;;  %v963_v19 = vrot.slane %v5243_v58, 1  ;;  %v2929_v58 = vshrl.u32 %v5452_v53, 16 }
  0xbd   : > { %4364 = vmatprep.mubr.msk.bf16.mxu1 %vm481_vm2, %v954_v45  ;;  %v2911_v45 = vshrl.u32 %v5436_v46, 16 }
  0xbe   : > { %v964_v48 = vsel %vm939_vm5, %v961_v30, %v963_v19  ;;  %v967_v30 = vrot.slane %v5265_v32, 1  ;;  %v2950_v32 = vshll.u32 %v5477_v3, 16 }
  0xbf   : > { %4529 = vmatmul.mubr.msk.bf16.gmra.mrb[24].mxu0 %vm481_vm2, %v2607_v44  ;;  %v2908_v44 = vor.u32 %v2907_v18, %v2904_v37  ;;  %v2913_v61 = vrot.slane %v2911_v45, 2  ;;  %v2931_v37 = vrot.slane %v2929_v58, 2  ;;  %v2940_v45 = vrot.slane %v2938_v11, 2 }
  0xc0   : > { %4532 = vmatprep.mubr.msk.bf16.mxu0 %vm481_vm2, %v2609_v39  ;;  %v2923_v39 = vshll.u32 %v5440_v50, 16  ;;  %v2965_v58 = vshrl.u32 %v5495_v13, 16  ;;  %v2977_v11 = vshll.u32 %v5500_v8, 16 }
  0xc1   : > { %v2909_v63 = vsel %vm2892_vm6, %v2900_v35, %v2908_v44  ;;  %v968_v35 = vsel %vm939_vm5, %v965_v16, %v967_v30 }
  0xc2   : > { %v2925_v17 = vrot.slane %v2923_v39, 3 }
  0xc4   : > { %4365 = vmatmul.mubr.msk.bf16.gmra.mrb[12].mxu1 %vm481_vm2, %v956_v33  ;;  %v2615_v33 = vsel %vm2139_vm4, %v2612_v34, %v2614_v0  ;;  %v2932_v34 = vshll.u32 %v5452_v53, 16  ;;  %v2926_v49 = vor.u32 %v2925_v17, %v2922_v9  ;;  %v3432_v0 = vsel %vm536_vm0, %v5463_v29, 0 }
  0xc5   : > { %4368 = vmatprep.mubr.msk.bf16.mxu1 %vm481_vm2, %v958_v51  ;;  %v2916_v51 = vrot.slane %v2914_v23, 3  ;;  %v2943_v23 = vrot.slane %v2941_v6, 3  ;;  %v2956_v29 = vshrl.u32 %v5481_v1, 16 }
  0xc6   : > { %v2934_v18 = vrot.slane %v2932_v34, 3  ;;  %v2968_v34 = vshll.u32 %v5495_v13, 16 }
  0xc7   : > { %4533 = vmatmul.mubr.msk.bf16.gmra.mrb[28].mxu0 %vm481_vm2, %v2611_v24  ;;  %v2917_v24 = vor.u32 %v2916_v51, %v2913_v61  ;;  %v2944_v39 = vor.u32 %v2943_v23, %v2940_v45  ;;  %v2949_v61 = vrot.slane %v2947_v41, 2  ;;  %v2952_v51 = vrot.slane %v2950_v32, 3 }
  0xc8   : > { %4536 = vmatprep.mubr.msk.bf16.mxu0 %vm481_vm2, %v2613_v54  ;;  %v966_v54 = vsel %vm939_vm5, %v963_v19, %v965_v16  ;;  %v2959_v19 = vshll.u32 %v5481_v1, 16  ;;  %v2958_v17 = vrot.slane %v2956_v29, 2  ;;  %v2979_v23 = vrot.slane %v2977_v11, 3  ;;  %v4990_v29 = vld [vmem:[%s5067_s28 + $0x18] sm:$0xff]  }
  0xc9   : > { %v2918_v42 = vsel %vm2892_vm6, %v2908_v44, %v2917_v24  ;;  %v2935_v44 = vor.u32 %v2934_v18, %v2931_v37  ;;  %v2970_v37 = vrot.slane %v2968_v34, 3  ;;  %v1379_v18 = vrot.slane %v5098_v20, 1 }
  0xca   : > { %v2983_v32 = vshrl.u32 %v5513_v47, 16  ;;  %v2986_v20 = vshll.u32 %v5513_v47, 16  ;;  %v3004_v34 = vshll.u32 %v5533_v5, 16  ;;  %v3013_v11 = vshll.u32 %v5542_v21, 16 }
  0xcb   : > { %v2936_v16 = vsel %vm2892_vm6, %v2926_v49, %v2935_v44  ;;  %v2945_v9 = vsel %vm2892_vm6, %v2935_v44, %v2944_v39 }
  0xcc   : > { %4369 = vmatmul.mubr.msk.bf16.gmra.mrb[16].mxu1 %vm481_vm2, %v960_v10  ;;  %v969_v10 = vrot.slane %v5271_v40, 1 }
  0xcd   : > { %4372 = vmatprep.mubr.msk.bf16.mxu1 %vm481_vm2, %v962_v25  ;;  %v2927_v25 = vsel %vm2892_vm6, %v2917_v24, %v2926_v49 }
  0xce   : > { %v970_v40 = vsel %vm939_vm5, %v967_v30, %v969_v10  ;;  %v975_v30 = vrot.slane %v5316_v27, 1 }
  0xcf   : > { %4537 = vmatmul.mubr.msk.bf16.gmra.mrb[32].mxu0 %vm481_vm2, %v2615_v33  ;;  %v971_v33 = vrot.slane %v5286_v56, 1 }
  0xd0   : > { %4542 = vmatprep.mubr.msk.bf16.mxu0 %vm481_vm2, %v2909_v63  ;;  %v973_v63 = vrot.slane %v5293_v4, 1  ;;  %v2974_v4 = vshrl.u32 %v5500_v8, 16 }
  0xd1   : > { %v972_v24 = vsel %vm939_vm5, %v969_v10, %v971_v33  ;;  %v4989_v10 = vld [vmem:[%s5067_s28 + $0x10] sm:$0xff]  }
  0xd2   : > { %v974_v56 = vsel %vm939_vm5, %v971_v33, %v973_v63  ;;  %v2976_v45 = vrot.slane %v2974_v4, 2  ;;  %v3010_v4 = vshrl.u32 %v5542_v21, 16 }
  0xd4   : > { %4373 = vmatmul.mubr.msk.bf16.gmra.mrb[20].mxu1 %vm481_vm2, %v964_v48  ;;  %v2961_v48 = vrot.slane %v2959_v19, 3  ;;  %v2980_v44 = vor.u32 %v2979_v23, %v2976_v45  ;;  %v1382_v19 = vrot.slane %v4990_v29, 1  ;;  %v3012_v45 = vrot.slane %v3010_v4, 2 }
  0xd5   : > { %4376 = vmatprep.mubr.msk.bf16.mxu1 %vm481_vm2, %v966_v54  ;;  %v2953_v54 = vor.u32 %v2952_v51, %v2949_v61  ;;  %v2985_v61 = vrot.slane %v2983_v32, 2  ;;  %v2988_v51 = vrot.slane %v2986_v20, 3  ;;  %v3015_v23 = vrot.slane %v3013_v11, 3  ;;  %v4996_v11 = vld [vmem:[%s5067_s28 + $0x48] sm:$0xff]  }
  0xd6   : > { %v2962_v49 = vor.u32 %v2961_v48, %v2958_v17  ;;  %v3022_v32 = vshll.u32 %v5555_v36, 16  ;;  %v3049_v4 = vshll.u32 %v5577_v14, 16 }
  0xd7   : > { %4543 = vmatmul.mubr.msk.bf16.vlgmr.msra.gmra.mrb[0].mxu0 %vm481_vm2, %v2918_v42  ;;  %v2954_v6 = vsel %vm2892_vm6, %v2944_v39, %v2953_v54  ;;  %v2967_v42 = vrot.slane %v2965_v58, 2  ;;  %v2995_v39 = vshll.u32 %v5518_v52, 16  ;;  %v3001_v58 = vshrl.u32 %v5533_v5, 16 }
  0xd8   : > { %4579 = vmatpush3.bf16.msra.mxu0 %v3432_v0  ;;  %4546 = vmatprep.mubr.msk.bf16.mxu0 %vm481_vm2, %v2927_v25  ;;  %v1380_v0 = vrot.slane %v4989_v10, 1  ;;  %v2963_v25 = vsel %vm2892_vm6, %v2953_v54, %v2962_v49  ;;  %v2989_v54 = vor.u32 %v2988_v51, %v2985_v61  ;;  %v4993_v10 = vld [vmem:[%s5067_s28 + $0x30] sm:$0xff]   ;;  %v3016_v20 = vor.u32 %v3015_v23, %v3012_v45  ;;  %v4995_v51 = vld [vmem:[%s5067_s28 + $0x40] sm:$0xff]  }
  0xd9   : > { %v2971_v41 = vor.u32 %v2970_v37, %v2967_v42  ;;  %v2997_v48 = vrot.slane %v2995_v39, 3  ;;  %v3003_v37 = vrot.slane %v3001_v58, 2  ;;  %v4994_v39 = vld [vmem:[%s5067_s28 + $0x38] sm:$0xff]   ;;  %v3024_v61 = vrot.slane %v3022_v32, 3 }
  0xda   : > { %v1381_v27 = vsel %vm939_vm5, %v1379_v18, %v1380_v0  ;;  %v2990_v42 = vsel %vm2892_vm6, %v2980_v44, %v2989_v54  ;;  %v3006_v18 = vrot.slane %v3004_v34, 3  ;;  %v1390_v29 = vrot.slane %v4994_v39, 1 }
  0xdb   : > { %v2972_v33 = vsel %vm2892_vm6, %v2962_v49, %v2971_v41  ;;  %v3040_v58 = vshll.u32 %v5573_v62, 16  ;;  %v3051_v23 = vrot.slane %v3049_v4, 3  ;;  %v3345_v4 = vrot.slane %v5440_v50, 3 }
  0xdc   : > { %4377 = vmatmul.mubr.msk.bf16.gmra.mrb[24].mxu1 %vm481_vm2, %v968_v35  ;;  %v976_v35 = vsel %vm939_vm5, %v973_v63, %v975_v30  ;;  %v3347_v50 = vrot.slane %v5452_v53, 3 }
  0xdd   : > { %4380 = vmatprep.mubr.msk.bf16.mxu1 %vm481_vm2, %v970_v40  ;;  %v2992_v40 = vshrl.u32 %v5518_v52, 16 }
  0xdf   : > { %4547 = vmatmul.mubr.msk.bf16.gmra.mrb[4].mxu0 %vm481_vm2, %v2936_v16  ;;  %v4991_v16 = vld [vmem:[%s5067_s28 + $0x20] sm:$0xff]   ;;  %v2994_v17 = vrot.slane %v2992_v40, 2  ;;  %v3031_v40 = vshll.u32 %v5560_v43, 16 }
  0xe0   : > { %4550 = vmatprep.mubr.msk.bf16.mxu0 %vm481_vm2, %v2945_v9  ;;  %v1384_v63 = vrot.slane %v4991_v16, 1  ;;  %v2981_v9 = vsel %vm2892_vm6, %v2971_v41, %v2980_v44  ;;  %v3007_v41 = vor.u32 %v3006_v18, %v3003_v37  ;;  %v3028_v44 = vshrl.u32 %v5560_v43, 16  ;;  %v4997_v18 = vld [vmem:[%s5067_s28 + $0x50] sm:$0xff]  }
  0xe1   : > { %v2998_v49 = vor.u32 %v2997_v48, %v2994_v17  ;;  %v1392_v16 = vrot.slane %v4995_v51, 1  ;;  %v3033_v17 = vrot.slane %v3031_v40, 3  ;;  %v3042_v37 = vrot.slane %v3040_v58, 3  ;;  %v4998_v40 = vld [vmem:[%s5067_s28 + $0x58] sm:$0xff]  }
  0xe2   : > { %v1398_v39 = vrot.slane %v4998_v40, 1  ;;  %v1801_v40 = vshrl.u32 %v5362_v57, 16 }
  0xe4   : > { %4381 = vmatmul.mubr.msk.bf16.gmra.mrb[28].mxu1 %vm481_vm2, %v972_v24  ;;  %v1383_v24 = vsel %vm939_vm5, %v1380_v0, %v1382_v19  ;;  %v1388_v0 = vrot.slane %v4993_v10, 1  ;;  %v1396_v10 = vrot.slane %v4997_v18, 1  ;;  %v3349_v18 = vrot.slane %v5458_v28, 3 }
  0xe5   : > { %4384 = vmatprep.mubr.msk.bf16.mxu1 %vm481_vm2, %v974_v56  ;;  %v1385_v56 = vsel %vm939_vm5, %v1382_v19, %v1384_v63  ;;  %v3008_v19 = vsel %vm2892_vm6, %v2998_v49, %v3007_v41 }
  0xe6   : > { %v1391_v48 = vsel %vm939_vm5, %v1388_v0, %v1390_v29  ;;  %v3350_v53 = vsel %vm3339_vm7, %v3347_v50, %v3349_v18 }
  0xe7   : > { %4551 = vmatmul.mubr.msk.bf16.gmra.mrb[8].mxu0 %vm481_vm2, %v2954_v6  ;;  %v4992_v6 = vld [vmem:[%s5067_s28 + $0x28] sm:$0xff]  }
  0xe8   : > { %4554 = vmatprep.mubr.msk.bf16.mxu0 %vm481_vm2, %v2963_v25  ;;  %v1386_v30 = vrot.slane %v4992_v6, 1  ;;  %v2999_v25 = vsel %vm2892_vm6, %v2989_v54, %v2998_v49  ;;  %v1393_v54 = vsel %vm939_vm5, %v1390_v29, %v1392_v16  ;;  %v3046_v49 = vshrl.u32 %v5577_v14, 16 }
  0xe9   : > { %v1394_v6 = vrot.slane %v4996_v11, 1  ;;  %v1406_v11 = vrot.slane %v5380_v7, 1 }
  0xea   : > { %v3048_v45 = vrot.slane %v3046_v49, 2 }
  0xec   : > { %4385 = vmatmul.mubr.msk.bf16.gmra.mrb[32].mxu1 %vm481_vm2, %v976_v35  ;;  %v1387_v35 = vsel %vm939_vm5, %v1384_v63, %v1386_v30  ;;  %v3017_v63 = vsel %vm2892_vm6, %v3007_v41, %v3016_v20 }
  0xed   : > { %4390 = vmatprep.mubr.msk.bf16.mxu1 %vm481_vm2, %v1381_v27  ;;  %v3019_v27 = vshrl.u32 %v5555_v36, 16 }
  0xef   : > { %4555 = vmatmul.mubr.msk.bf16.gmra.mrb[12].mxu0 %vm481_vm2, %v2972_v33  ;;  %v3021_v33 = vrot.slane %v3019_v27, 2 }
  0xf0   : > { %4558 = vmatprep.mubr.msk.bf16.mxu0 %vm481_vm2, %v2981_v9  ;;  %v3030_v9 = vrot.slane %v3028_v44, 2  ;;  %v3333_v44 = vld [vmem:[%s5067_s28 + $0x10] sm:$0x8] }
  0xf2   : > { %v3034_v34 = vor.u32 %v3033_v17, %v3030_v9 }
  0xf4   : > { %4391 = vmatmul.mubr.msk.bf16.vlgmr.msra.gmra.mrb[0].mxu1 %vm481_vm2, %v1383_v24  ;;  %v3025_v24 = vor.u32 %v3024_v61, %v3021_v33  ;;  %v1400_v61 = vrot.slane %v5343_v55, 1 }
  0xf5   : > { %4394 = vmatprep.mubr.msk.bf16.mxu1 %vm481_vm2, %v1385_v56  ;;  %4617 = vmatpush3.bf16.msra.mxu1 %v5049_v2  ;;  %v1389_v2 = vsel %vm939_vm5, %v1386_v30, %v1388_v0  ;;  %v3037_v56 = vshrl.u32 %v5573_v62, 16  ;;  %v5713_v0 = vld [vmem:[%s5067_s28 + $0xa0] ss:$0 sps:$4 sm:$0x77]  }
  0xf6   : > { %v3026_v30 = vsel %vm2892_vm6, %v3016_v20, %v3025_v24  ;;  %v3055_v27 = vshrl.u32 %v5713_v0, 16  ;;  %v3058_v32 = vshll.u32 %v5713_v0, 16  ;;  %v3052_v20 = vor.u32 %v3051_v23, %v3048_v45 }
  0xf7   : > { %4559 = vmatmul.mubr.msk.bf16.gmra.mrb[16].mxu0 %vm481_vm2, %v2990_v42  ;;  %v3039_v42 = vrot.slane %v3037_v56, 2  ;;  %v1401_v17 = vsel %vm939_vm5, %v1398_v39, %v1400_v61  ;;  %v1404_v56 = vrot.slane %v5368_v60, 1  ;;  %v1412_v45 = vrot.slane %v5400_v26, 1 }
  0xf8   : > { %4562 = vmatprep.mubr.msk.bf16.mxu0 %vm481_vm2, %v2999_v25  ;;  %v3035_v25 = vsel %vm2892_vm6, %v3025_v24, %v3034_v34  ;;  %v3060_v33 = vrot.slane %v3058_v32, 3  ;;  %v3341_v24 = vrot.slane %v5423_v38, 3  ;;  %v3343_v38 = vrot.slane %v5436_v46, 3 }
  0xf9   : > { %v3043_v41 = vor.u32 %v3042_v37, %v3039_v42  ;;  %v1407_v46 = vsel %vm939_vm5, %v1404_v56, %v1406_v11  ;;  %v1792_v23 = vshrl.u32 %v5343_v55, 16 }
  0xfa   : > { %v3346_v42 = vsel %vm3339_vm7, %v3343_v38, %v3345_v4 }
  0xfb   : > { %v3044_v29 = vsel %vm2892_vm6, %v3034_v34, %v3043_v41  ;;  %v3053_v51 = vsel %vm2892_vm6, %v3043_v41, %v3052_v20  ;;  %v4987_v41 = vld [vmem:[%s5067_s28 + $0x98] ss:$0 sps:$4 sm:$0x11]   ;;  %v1794_v32 = vrot.slane %v1792_v23, 1 }
  0xfc   : > { %4395 = vmatmul.mubr.msk.bf16.gmra.mrb[4].mxu1 %vm481_vm2, %v1387_v35  ;;  %v1395_v35 = vsel %vm939_vm5, %v1392_v16, %v1394_v6  ;;  %v4080_v16 = vcombine.low %v3333_v44, %v5410_v31  ;;  %v3353_v44 = vrot.slane %v5481_v1, 3 }
  0xfd   : > { %4398 = vmatprep.mubr.msk.bf16.mxu1 %vm481_vm2, %v1389_v2  ;;  %v1397_v2 = vsel %vm939_vm5, %v1394_v6, %v1396_v10  ;;  %v3344_v6 = vsel %vm3339_vm7, %v3341_v24, %v3343_v38 }
  0xff   : > { %4563 = vmatmul.mubr.msk.bf16.gmra.mrb[20].mxu0 %vm481_vm2, %v3008_v19  ;;  %v3057_v19 = vrot.slane %v3055_v27, 2 }
 0x100   : > { %4566 = vmatprep.mubr.msk.bf16.mxu0 %vm481_vm2, %v3017_v63  ;;  %v1399_v63 = vsel %vm939_vm5, %v1396_v10, %v1398_v39  ;;  %v1410_v10 = vrot.slane %v5396_v22, 1  ;;  %v1804_v39 = vshll.u32 %v5362_v57, 16 }
 0x101   : > { %v3061_v9 = vor.u32 %v3060_v33, %v3057_v19  ;;  %v1813_v33 = vshll.u32 %v5368_v60, 16 }
 0x102   : > { %v1413_v27 = vsel %vm939_vm5, %v1410_v10, %v1412_v45 }
 0x103   : > { %v3062_v31 = vsel %vm2892_vm6, %v3052_v20, %v3061_v9 }
 0x104   : > { %4399 = vmatmul.mubr.msk.bf16.gmra.mrb[8].mxu1 %vm481_vm2, %v1391_v48  ;;  %v3340_v48 = vrot.slane %v4080_v16, 3  ;;  %v1806_v16 = vrot.slane %v1804_v39, 2 }
 0x105   : > { %4402 = vmatprep.mubr.msk.bf16.mxu1 %vm481_vm2, %v1393_v54  ;;  %v1402_v54 = vrot.slane %v5362_v57, 1 }
 0x106   : > { %v3342_v58 = vsel %vm3339_vm7, %v3340_v48, %v3341_v24  ;;  %v3357_v48 = vrot.slane %v5500_v8, 3  ;;  %v1819_v24 = vshrl.u32 %v5380_v7, 16 }
 0x107   : > { %4567 = vmatmul.mubr.msk.bf16.gmra.mrb[24].mxu0 %vm481_vm2, %v3026_v30  ;;  %v1403_v34 = vsel %vm939_vm5, %v1400_v61, %v1402_v54  ;;  %v1405_v49 = vsel %vm939_vm5, %v1402_v54, %v1404_v56  ;;  %v1408_v30 = vrot.slane %v5384_v12, 1  ;;  %v1822_v54 = vshll.u32 %v5380_v7, 16 }
 0x108   : > { %4570 = vmatprep.mubr.msk.bf16.mxu0 %vm481_vm2, %v3035_v25  ;;  %v3348_v25 = vsel %vm3339_vm7, %v3345_v4, %v3347_v50 }
 0x109   : > { %v1409_v37 = vsel %vm939_vm5, %v1406_v11, %v1408_v30  ;;  %v1411_v28 = vsel %vm939_vm5, %v1408_v30, %v1410_v10  ;;  %v1824_v38 = vrot.slane %v1822_v54, 2  ;;  %v1837_v30 = vshrl.u32 %v5396_v22, 16 }
 0x10b   : > { %v1839_v10 = vrot.slane %v1837_v30, 1 }
 0x10c   : > { %4403 = vmatmul.mubr.msk.bf16.gmra.mrb[12].mxu1 %vm481_vm2, %v1395_v35  ;;  %v1795_v35 = vshll.u32 %v5343_v55, 16  ;;  %v1414_v55 = vrot.slane %v4987_v41, 1  ;;  %v1858_v41 = vshll.u32 %v5416_v59, 16 }
 0x10d   : > { %4406 = vmatprep.mubr.msk.bf16.mxu1 %vm481_vm2, %v1397_v2  ;;  %v3351_v2 = vrot.slane %v5477_v3, 3  ;;  %v1810_v3 = vshrl.u32 %v5368_v60, 16 }
 0x10e   : > { %v1797_v20 = vrot.slane %v1795_v35, 2  ;;  %v1415_v1 = vsel %vm939_vm5, %v1412_v45, %v1414_v55  ;;  %v3363_v45 = vrot.slane %v5533_v5, 3 }
 0x10f   : > { %4571 = vmatmul.mubr.msk.bf16.gmra.mrb[28].mxu0 %vm481_vm2, %v3044_v29  ;;  %v3352_v29 = vsel %vm3339_vm7, %v3349_v18, %v3351_v2  ;;  %v3354_v61 = vsel %vm3339_vm7, %v3351_v2, %v3353_v44  ;;  %v1812_v9 = vrot.slane %v1810_v3, 1  ;;  %v3373_v3 = vrot.slane %v5577_v14, 3 }
 0x110   : > { %4574 = vmatprep.mubr.msk.bf16.mxu0 %vm481_vm2, %v3053_v51  ;;  %v1798_v19 = vor.u32 %v1797_v20, %v1794_v32  ;;  %v1803_v51 = vrot.slane %v1801_v40, 1  ;;  %v3369_v40 = vrot.slane %v5560_v43, 3 }
 0x112   : > { %v1799_v57 = vsel %vm1692_vm3, %v5257_v15, %v1798_v19  ;;  %v1807_v60 = vor.u32 %v1806_v16, %v1803_v51  ;;  %v1831_v15 = vshll.u32 %v5384_v12, 16 }
 0x114   : > { %4407 = vmatmul.mubr.msk.bf16.gmra.mrb[16].mxu1 %vm481_vm2, %v1399_v63  ;;  %v3355_v63 = vrot.slane %v5495_v13, 3  ;;  %v1828_v13 = vshrl.u32 %v5384_v12, 16  ;;  %v1808_v8 = vsel %vm1692_vm3, %v1798_v19, %v1807_v60  ;;  %v1833_v11 = vrot.slane %v1831_v15, 2 }
 0x115   : > { %4410 = vmatprep.mubr.msk.bf16.mxu1 %vm481_vm2, %v1401_v17  ;;  %v1815_v17 = vrot.slane %v1813_v33, 2 }
 0x116   : > { %v1830_v4 = vrot.slane %v1828_v13, 1 }
 0x117   : > { %4575 = vmatmul.mubr.msk.bf16.gmra.mrb[32].mxu0 %vm481_vm2, %v3062_v31  ;;  %v3356_v31 = vsel %vm3339_vm7, %v3353_v44, %v3355_v63  ;;  %v1816_v56 = vor.u32 %v1815_v17, %v1812_v9  ;;  %v3367_v44 = vrot.slane %v5555_v36, 3  ;;  %v3371_v36 = vrot.slane %v5573_v62, 3 }
 0x118   : > { %4580 = vmatprep.mubr.msk.bf16.mxu0 %vm481_vm2, %v3342_v58  ;;  %v3358_v58 = vsel %vm3339_vm7, %v3355_v63, %v3357_v48  ;;  %v1834_v50 = vor.u32 %v1833_v11, %v1830_v4  ;;  %v5877_v11 = vld [vmem:[%s6009_s3] ss:$0 sm:$0xff] }
 0x119   : > { %v1817_v7 = vsel %vm1692_vm3, %v1807_v60, %v1816_v56  ;;  %v3372_v43 = vsel %vm3339_vm7, %v3369_v40, %v3371_v36  ;;  %v3374_v33 = vsel %vm3339_vm7, %v3371_v36, %v3373_v3 }
 0x11c   : > { %4411 = vmatmul.mubr.msk.bf16.gmra.mrb[20].mxu1 %vm481_vm2, %v1403_v34  ;;  %v1821_v34 = vrot.slane %v1819_v24, 1 }
 0x11d   : > { %4414 = vmatprep.mubr.msk.bf16.mxu1 %vm481_vm2, %v1405_v49  ;;  %v3359_v49 = vrot.slane %v5513_v47, 3  ;;  %v1846_v47 = vshrl.u32 %v5400_v26, 16 }
 0x11e   : > { %v1825_v12 = vor.u32 %v1824_v38, %v1821_v34 }
 0x11f   : > { %4581 = vmatmul.mubr.msk.bf16.vlgmr.msra.gmra.mrb[0].mxu0 %vm481_vm2, %v3344_v6  ;;  %v3361_v6 = vrot.slane %v5518_v52, 3  ;;  %v1848_v23 = vrot.slane %v1846_v47, 1 }
 0x120   : > { %4584 = vmatprep.mubr.msk.bf16.mxu0 %vm481_vm2, %v3346_v42  ;;  %v1840_v42 = vshll.u32 %v5396_v22, 16  ;;  %v1826_v52 = vsel %vm1692_vm3, %v1816_v56, %v1825_v12  ;;  %v1835_v22 = vsel %vm1692_vm3, %v1825_v12, %v1834_v50 }
 0x121   : > { %v3362_v18 = vsel %vm3339_vm7, %v3359_v49, %v3361_v6  ;;  %v3364_v2 = vsel %vm3339_vm7, %v3361_v6, %v3363_v45 }
 0x124   : > { %4415 = vmatmul.mubr.msk.bf16.gmra.mrb[24].mxu1 %vm481_vm2, %v1407_v46  ;;  %v3360_v46 = vsel %vm3339_vm7, %v3357_v48, %v3359_v49  ;;  %v5871_v49 = vld [vmem:[%s6008_s2] ss:$0 sm:$0xff] }
 0x125   : > { %4418 = vmatprep.mubr.msk.bf16.mxu1 %vm481_vm2, %v1409_v37  ;;  %v1849_v37 = vshll.u32 %v5400_v26, 16 }
 0x127   : > { %4585 = vmatmul.mubr.msk.bf16.gmra.mrb[4].mxu0 %vm481_vm2, %v3348_v25  ;;  %v1842_v25 = vrot.slane %v1840_v42, 2  ;;  %v1851_v35 = vrot.slane %v1849_v37, 2 }
 0x128   : > { %4588 = vmatprep.mubr.msk.bf16.mxu0 %vm481_vm2, %v3350_v53  ;;  %v3365_v53 = vrot.slane %v5542_v21, 3  ;;  %v1860_v21 = vrot.slane %v1858_v41, 2 }
 0x129   : > { %v1843_v26 = vor.u32 %v1842_v25, %v1839_v10 }
 0x12a   : > { %v3366_v5 = vsel %vm3339_vm7, %v3363_v45, %v3365_v53  ;;  %v3368_v39 = vsel %vm3339_vm7, %v3365_v53, %v3367_v44 }
 0x12b   : > { %v1844_v32 = vsel %vm1692_vm3, %v1834_v50, %v1843_v26 }
 0x12c   : > { %4419 = vmatmul.mubr.msk.bf16.gmra.mrb[28].mxu1 %vm481_vm2, %v1411_v28  ;;  %v1855_v28 = vshrl.u32 %v5416_v59, 16 }
 0x12d   : > { %4422 = vmatprep.mubr.msk.bf16.mxu1 %vm481_vm2, %v1413_v27  ;;  %v1852_v27 = vor.u32 %v1851_v35, %v1848_v23 }
 0x12e   : > { %v1857_v20 = vrot.slane %v1855_v28, 1 }
 0x12f   : > { %4589 = vmatmul.mubr.msk.bf16.gmra.mrb[8].mxu0 %vm481_vm2, %v3352_v29  ;;  %v1853_v55 = vsel %vm1692_vm3, %v1843_v26, %v1852_v27  ;;  %v3370_v29 = vsel %vm3339_vm7, %v3367_v44, %v3369_v40 }
 0x130   : > { %4592 = vmatprep.mubr.msk.bf16.mxu0 %vm481_vm2, %v3354_v61  ;;  %v1861_v59 = vor.u32 %v1860_v21, %v1857_v20  ;;  %v3375_v61 = vrot.slane %v5713_v0, 3 }
 0x132   : > { %v1862_v19 = vsel %vm1692_vm3, %v1852_v27, %v1861_v59 }
 0x134   : > { %4423 = vmatmul.mubr.msk.bf16.gmra.mrb[32].mxu1 %vm481_vm2, %v1415_v1  ;;  %v3376_v1 = vsel %vm3339_vm7, %v3373_v3, %v3375_v61 }
 0x135   : > { %4448 = vmatprep.mubr.msk.bf16.mxu1 %vm481_vm2, %v1799_v57 }
 0x137   : > { %4593 = vmatmul.mubr.msk.bf16.gmra.mrb[12].mxu0 %vm481_vm2, %v3356_v31 }
 0x138   : > { %4596 = vmatprep.mubr.msk.bf16.mxu0 %vm481_vm2, %v3358_v58 }
 0x13c   : > { %4449 = vmatmul.mubr.msk.bf16.vlgmr.msra.gmra.mrb[20].mxu1 %vm481_vm2, %v1808_v8 }
 0x13d   : > { %4452 = vmatprep.mubr.msk.bf16.mxu1 %vm481_vm2, %v1817_v7 }
 0x13f   : > { %4597 = vmatmul.mubr.msk.bf16.gmra.mrb[16].mxu0 %vm481_vm2, %v3360_v46 }
 0x140   : > { %4600 = vmatprep.mubr.msk.bf16.mxu0 %vm481_vm2, %v3362_v18 }
 0x144   : > { %4453 = vmatmul.mubr.msk.bf16.gmra.mrb[24].mxu1 %vm481_vm2, %v1826_v52 }
 0x145   : > { %4456 = vmatprep.mubr.msk.bf16.mxu1 %vm481_vm2, %v1835_v22 }
 0x147   : > { %4601 = vmatmul.mubr.msk.bf16.gmra.mrb[20].mxu0 %vm481_vm2, %v3364_v2 }
 0x148   : > { %4604 = vmatprep.mubr.msk.bf16.mxu0 %vm481_vm2, %v3366_v5 }
 0x14c   : > { %4457 = vmatmul.mubr.msk.bf16.gmra.mrb[28].mxu1 %vm481_vm2, %v1844_v32 }
 0x14d   : > { %4460 = vmatprep.mubr.msk.bf16.mxu1 %vm481_vm2, %v1853_v55 }
 0x14f   : > { %4605 = vmatmul.mubr.msk.bf16.gmra.mrb[24].mxu0 %vm481_vm2, %v3368_v39 }
 0x150   : > { %4608 = vmatprep.mubr.msk.bf16.mxu0 %vm481_vm2, %v3370_v29 }
 0x154   : > { %4461 = vmatmul.mubr.msk.bf16.gmra.mrb[32].mxu1 %vm481_vm2, %v1862_v19 }
 0x157   : > { %4609 = vmatmul.mubr.msk.bf16.gmra.mrb[28].mxu0 %vm481_vm2, %v3372_v43 }
 0x158   : > { %4612 = vmatprep.mubr.msk.bf16.mxu0 %vm481_vm2, %v3374_v33 }
 0x15f   : > { %4613 = vmatmul.mubr.msk.bf16.gmra.mrb[32].mxu0 %vm481_vm2, %v3376_v1 }
 0x1c7   : > { %v4392_v51 = vpop.f32.mrb[0].mxu1 }
 0x1c8   : > { %v1507_v62 = vpop.f32.mrb[1].mxu1 }
 0x1c9   : > { %v4393_v16 = vpop.f32.mrb[2].mxu1 }
 0x1ca   : > { %v1510_v14 = vpop.f32.mrb[3].mxu1 }
 0x1cf   : > { %v4396_v63 = vpop.f32.mrb[4].mxu1 }
 0x1d0   : > { %v1523_v57 = vpop.f32.mrb[5].mxu1 }
 0x1d1   : > { %v4397_v9 = vpop.f32.mrb[6].mxu1 }
 0x1d2   : > { %v1526_v17 = vpop.f32.mrb[7].mxu1 }
 0x1d7   : > { %v4400_v48 = vpop.f32.mrb[8].mxu1 }
 0x1d8   : > { %v5846_v60 = vpop.f32.mrb[9].mxu1 }
 0x1d9   : > { %v5848_v24 = vpop.f32.mrb[10].mxu1 }
 0x1da   : > { %v5850_v54 = vpop.f32.mrb[11].mxu1 }
 0x1df   : > { %v5852_v0 = vpop.f32.mrb[12].mxu1 }
 0x1e0   : > { %v5854_v31 = vpop.f32.mrb[13].mxu1 }
 0x1e1   : > { %v5856_v56 = vpop.f32.mrb[14].mxu1 }
 0x1e2   : > { %v5858_v13 = vpop.f32.mrb[15].mxu1 }
 0x1e7   : > { %v5860_v15 = vpop.f32.mrb[16].mxu1 }
 0x1e8   : > { %v5862_v58 = vpop.f32.mrb[17].mxu1 }
 0x1e9   : > { %v5864_v8 = vpop.f32.mrb[18].mxu1 }
 0x1ea   : > { %v5866_v34 = vpop.f32.mrb[19].mxu1 }
 0x1f2   : > { %v4582_v38 = vpop.f32.mrb[0].mxu0 }
 0x1f3   : > { %v4618_v7 = vadd.f32 %v4582_v38, %v4392_v51  ;;  %v3468_v4 = vpop.f32.mrb[1].mxu0 }
 0x1f4   : > { %v4619_v6 = vadd.f32 %v3468_v4, %v1507_v62  ;;  %v4583_v12 = vpop.f32.mrb[2].mxu0 }
 0x1f5   : > { %v3656_v30 = vmul.f32 %v4618_v7, %v5871_v49  ;;  %v4620_v42 = vadd.f32 %v4583_v12, %v4393_v16  ;;  %v3471_v46 = vpop.f32.mrb[3].mxu0 }
 0x1f6   : > { %v3654_v50 = vmul.f32 %v4619_v6, %v5871_v49  ;;  %v4621_v47 = vadd.f32 %v3471_v46, %v1510_v14 }
 0x1f7   : > { %v3699_v37 = vadd.f32 %v5877_v11, %v3656_v30  ;;  %v3657_v18 = vmul.f32 %v4620_v42, %v5871_v49 }
 0x1f8   : > { %v3697_v52 = vadd.f32 %v5877_v11, %v3654_v50  ;;  %v3655_v10 = vmul.f32 %v4621_v47, %v5871_v49 }
 0x1f9   : > { %v3735_v25 = vmax.f32 %v3699_v37, 0.0  ;;  %v3700_v45 = vadd.f32 %v5877_v11, %v3657_v18 }
 0x1fa   : > { %v3733_v22 = vmax.f32 %v3697_v52, 0.0  ;;  %v3698_v23 = vadd.f32 %v5877_v11, %v3655_v10  ;;  %v4586_v35 = vpop.f32.mrb[4].mxu0 }
 0x1fb   : > { %3771 = vst [vmem:[%s5886_s23 + $0x10] sm:$0xff] %v3735_v25  ;;  %v3736_v53 = vmax.f32 %v3700_v45, 0.0  ;;  %v4622_v26 = vadd.f32 %v4586_v35, %v4396_v63  ;;  %v3484_v28 = vpop.f32.mrb[5].mxu0 }
 0x1fc   : > { %3769 = vst [vmem:[%s5886_s23] sm:$0xff] %v3733_v22  ;;  %v3734_v41 = vmax.f32 %v3698_v23, 0.0  ;;  %v4623_v2 = vadd.f32 %v3484_v28, %v1523_v57  ;;  %v4587_v27 = vpop.f32.mrb[6].mxu0 }
 0x1fd   : > { %3772 = vst [vmem:[%s5886_s23 + $0x18] sm:$0xff] %v3736_v53  ;;  %v3660_v5 = vmul.f32 %v4622_v26, %v5871_v49  ;;  %v4624_v32 = vadd.f32 %v4587_v27, %v4397_v9  ;;  %v3487_v20 = vpop.f32.mrb[7].mxu0 }
 0x1fe   : > { %3770 = vst [vmem:[%s5886_s23 + $0x8] sm:$0xff] %v3734_v41  ;;  %v3658_v21 = vmul.f32 %v4623_v2, %v5871_v49  ;;  %v4625_v44 = vadd.f32 %v3487_v20, %v1526_v17 }
 0x1ff   : > { %v3703_v55 = vadd.f32 %v5877_v11, %v3660_v5  ;;  %v3661_v40 = vmul.f32 %v4624_v32, %v5871_v49 }
 0x200   : > { %v3701_v59 = vadd.f32 %v5877_v11, %v3658_v21  ;;  %v3659_v39 = vmul.f32 %v4625_v44, %v5871_v49 }
 0x201   : > { %v3739_v29 = vmax.f32 %v3703_v55, 0.0  ;;  %v3704_v19 = vadd.f32 %v5877_v11, %v3661_v40 }
 0x202   : > { %v3737_v36 = vmax.f32 %v3701_v59, 0.0  ;;  %v3702_v3 = vadd.f32 %v5877_v11, %v3659_v39  ;;  %v4590_v43 = vpop.f32.mrb[8].mxu0 }
 0x203   : > { %3775 = vst [vmem:[%s5886_s23 + $0x30] sm:$0xff] %v3739_v29  ;;  %v3740_v33 = vmax.f32 %v3704_v19, 0.0  ;;  %v4626_v61 = vadd.f32 %v4590_v43, %v4400_v48  ;;  %v3500_v1 = vpop.f32.mrb[9].mxu0 }
 0x204   : > { %3773 = vst [vmem:[%s5886_s23 + $0x20] sm:$0xff] %v3737_v36  ;;  %v3738_v51 = vmax.f32 %v3702_v3, 0.0  ;;  %v4627_v62 = vadd.f32 %v3500_v1, %v5846_v60  ;;  %v4591_v16 = vpop.f32.mrb[10].mxu0 }
 0x205   : > { %3776 = vst [vmem:[%s5886_s23 + $0x38] sm:$0xff] %v3740_v33  ;;  %v3664_v14 = vmul.f32 %v4626_v61, %v5871_v49  ;;  %v4628_v63 = vadd.f32 %v4591_v16, %v5848_v24  ;;  %v3503_v57 = vpop.f32.mrb[11].mxu0 }
 0x206   : > { %3774 = vst [vmem:[%s5886_s23 + $0x28] sm:$0xff] %v3738_v51  ;;  %v3662_v9 = vmul.f32 %v4627_v62, %v5871_v49  ;;  %v4629_v17 = vadd.f32 %v3503_v57, %v5850_v54 }
 0x207   : > { %v3707_v48 = vadd.f32 %v5877_v11, %v3664_v14  ;;  %v3665_v38 = vmul.f32 %v4628_v63, %v5871_v49 }
 0x208   : > { %v3705_v60 = vadd.f32 %v5877_v11, %v3662_v9  ;;  %v3663_v7 = vmul.f32 %v4629_v17, %v5871_v49 }
 0x209   : > { %v3743_v4 = vmax.f32 %v3707_v48, 0.0  ;;  %v3708_v6 = vadd.f32 %v5877_v11, %v3665_v38 }
 0x20a   : > { %v3741_v24 = vmax.f32 %v3705_v60, 0.0  ;;  %v3706_v12 = vadd.f32 %v5877_v11, %v3663_v7  ;;  %v4594_v30 = vpop.f32.mrb[12].mxu0 }
 0x20b   : > { %3779 = vst [vmem:[%s5886_s23 + $0x50] sm:$0xff] %v3743_v4  ;;  %v3744_v42 = vmax.f32 %v3708_v6, 0.0  ;;  %v4630_v54 = vadd.f32 %v4594_v30, %v5852_v0  ;;  %v3516_v46 = vpop.f32.mrb[13].mxu0 }
 0x20c   : > { %3777 = vst [vmem:[%s5886_s23 + $0x40] sm:$0xff] %v3741_v24  ;;  %v3742_v50 = vmax.f32 %v3706_v12, 0.0  ;;  %v4631_v47 = vadd.f32 %v3516_v46, %v5854_v31  ;;  %v4595_v37 = vpop.f32.mrb[14].mxu0 }
 0x20d   : > { %3780 = vst [vmem:[%s5886_s23 + $0x58] sm:$0xff] %v3744_v42  ;;  %v3668_v18 = vmul.f32 %v4630_v54, %v5871_v49  ;;  %v4632_v52 = vadd.f32 %v4595_v37, %v5856_v56  ;;  %v3519_v10 = vpop.f32.mrb[15].mxu0 }
 0x20e   : > { %3778 = vst [vmem:[%s5886_s23 + $0x48] sm:$0xff] %v3742_v50  ;;  %v3666_v45 = vmul.f32 %v4631_v47, %v5871_v49  ;;  %v4633_v22 = vadd.f32 %v3519_v10, %v5858_v13 }
 0x20f   : > { %v4450_v25 = vpop.f32.mrb[20].mxu1  ;;  %v3711_v23 = vadd.f32 %v5877_v11, %v3668_v18  ;;  %v3669_v31 = vmul.f32 %v4632_v52, %v5871_v49 }
 0x210   : > { %v2034_v0 = vpop.f32.mrb[21].mxu1  ;;  %v3709_v53 = vadd.f32 %v5877_v11, %v3666_v45  ;;  %v3667_v56 = vmul.f32 %v4633_v22, %v5871_v49 }
 0x211   : > { %v4451_v35 = vpop.f32.mrb[22].mxu1  ;;  %v3747_v28 = vmax.f32 %v3711_v23, 0.0  ;;  %v3712_v41 = vadd.f32 %v5877_v11, %v3669_v31 }
 0x212   : > { %v2037_v26 = vpop.f32.mrb[23].mxu1  ;;  %v3745_v2 = vmax.f32 %v3709_v53, 0.0  ;;  %v3710_v13 = vadd.f32 %v5877_v11, %v3667_v56  ;;  %v4598_v27 = vpop.f32.mrb[16].mxu0 }
 0x213   : > { %3783 = vst [vmem:[%s5886_s23 + $0x70] sm:$0xff] %v3747_v28  ;;  %v3748_v5 = vmax.f32 %v3712_v41, 0.0  ;;  %v4634_v32 = vadd.f32 %v4598_v27, %v5860_v15  ;;  %v3532_v20 = vpop.f32.mrb[17].mxu0 }
 0x214   : > { %3781 = vst [vmem:[%s5886_s23 + $0x60] sm:$0xff] %v3745_v2  ;;  %v3746_v21 = vmax.f32 %v3710_v13, 0.0  ;;  %v4635_v44 = vadd.f32 %v3532_v20, %v5862_v58  ;;  %v4599_v55 = vpop.f32.mrb[18].mxu0 }
 0x215   : > { %3784 = vst [vmem:[%s5886_s23 + $0x78] sm:$0xff] %v3748_v5  ;;  %v3672_v40 = vmul.f32 %v4634_v32, %v5871_v49  ;;  %v4636_v59 = vadd.f32 %v4599_v55, %v5864_v8  ;;  %v3535_v39 = vpop.f32.mrb[19].mxu0 }
 0x216   : > { %3782 = vst [vmem:[%s5886_s23 + $0x68] sm:$0xff] %v3746_v21  ;;  %v3670_v19 = vmul.f32 %v4635_v44, %v5871_v49  ;;  %v4637_v36 = vadd.f32 %v3535_v39, %v5866_v34 }
 0x217   : > { %v4454_v29 = vpop.f32.mrb[24].mxu1  ;;  %v3715_v3 = vadd.f32 %v5877_v11, %v3672_v40  ;;  %v3673_v58 = vmul.f32 %v4636_v59, %v5871_v49 }
 0x218   : > { %v2050_v15 = vpop.f32.mrb[25].mxu1  ;;  %v3713_v33 = vadd.f32 %v5877_v11, %v3670_v19  ;;  %v3671_v8 = vmul.f32 %v4637_v36, %v5871_v49 }
 0x219   : > { %v4455_v43 = vpop.f32.mrb[26].mxu1  ;;  %v3751_v1 = vmax.f32 %v3715_v3, 0.0  ;;  %v3716_v51 = vadd.f32 %v5877_v11, %v3673_v58 }
 0x21a   : > { %v2053_v61 = vpop.f32.mrb[27].mxu1  ;;  %v3749_v62 = vmax.f32 %v3713_v33, 0.0  ;;  %v3714_v34 = vadd.f32 %v5877_v11, %v3671_v8  ;;  %v4602_v16 = vpop.f32.mrb[20].mxu0 }
 0x21b   : > { %3787 = vst [vmem:[%s5886_s23 + $0x90] sm:$0xff] %v3751_v1  ;;  %v3752_v14 = vmax.f32 %v3716_v51, 0.0  ;;  %v4638_v63 = vadd.f32 %v4602_v16, %v4450_v25  ;;  %v3548_v57 = vpop.f32.mrb[21].mxu0 }
 0x21c   : > { %3785 = vst [vmem:[%s5886_s23 + $0x80] sm:$0xff] %v3749_v62  ;;  %v3750_v9 = vmax.f32 %v3714_v34, 0.0  ;;  %v4639_v17 = vadd.f32 %v3548_v57, %v2034_v0  ;;  %v4603_v48 = vpop.f32.mrb[22].mxu0 }
 0x21d   : > { %3788 = vst [vmem:[%s5886_s23 + $0x98] sm:$0xff] %v3752_v14  ;;  %v3676_v38 = vmul.f32 %v4638_v63, %v5871_v49  ;;  %v4640_v60 = vadd.f32 %v4603_v48, %v4451_v35  ;;  %v3551_v7 = vpop.f32.mrb[23].mxu0 }
 0x21e   : > { %3786 = vst [vmem:[%s5886_s23 + $0x88] sm:$0xff] %v3750_v9  ;;  %v3674_v6 = vmul.f32 %v4639_v17, %v5871_v49  ;;  %v4641_v24 = vadd.f32 %v3551_v7, %v2037_v26 }
 0x21f   : > { %v4458_v4 = vpop.f32.mrb[28].mxu1  ;;  %v3719_v30 = vadd.f32 %v5877_v11, %v3676_v38  ;;  %v3677_v42 = vmul.f32 %v4640_v60, %v5871_v49 }
 0x220   : > { %v2066_v12 = vpop.f32.mrb[29].mxu1  ;;  %v3717_v46 = vadd.f32 %v5877_v11, %v3674_v6  ;;  %v3675_v50 = vmul.f32 %v4641_v24, %v5871_v49 }
 0x221   : > { %v4459_v54 = vpop.f32.mrb[30].mxu1  ;;  %v3755_v37 = vmax.f32 %v3719_v30, 0.0  ;;  %v3720_v18 = vadd.f32 %v5877_v11, %v3677_v42 }
 0x222   : > { %v2069_v47 = vpop.f32.mrb[31].mxu1  ;;  %v3753_v52 = vmax.f32 %v3717_v46, 0.0  ;;  %v3718_v10 = vadd.f32 %v5877_v11, %v3675_v50  ;;  %v4606_v25 = vpop.f32.mrb[24].mxu0 }
 0x223   : > { %3791 = vst [vmem:[%s5886_s23 + $0xb0] sm:$0xff] %v3755_v37  ;;  %v3756_v45 = vmax.f32 %v3720_v18, 0.0  ;;  %v4642_v22 = vadd.f32 %v4606_v25, %v4454_v29  ;;  %v3564_v0 = vpop.f32.mrb[25].mxu0 }
 0x224   : > { %3789 = vst [vmem:[%s5886_s23 + $0xa0] sm:$0xff] %v3753_v52  ;;  %v3754_v23 = vmax.f32 %v3718_v10, 0.0  ;;  %v4643_v31 = vadd.f32 %v3564_v0, %v2050_v15  ;;  %v4607_v35 = vpop.f32.mrb[26].mxu0 }
 0x225   : > { %3792 = vst [vmem:[%s5886_s23 + $0xb8] sm:$0xff] %v3756_v45  ;;  %v3680_v53 = vmul.f32 %v4642_v22, %v5871_v49  ;;  %v4644_v56 = vadd.f32 %v4607_v35, %v4455_v43  ;;  %v3567_v26 = vpop.f32.mrb[27].mxu0 }
 0x226   : > { %3790 = vst [vmem:[%s5886_s23 + $0xa8] sm:$0xff] %v3754_v23  ;;  %v3678_v41 = vmul.f32 %v4643_v31, %v5871_v49  ;;  %v4645_v2 = vadd.f32 %v3567_v26, %v2053_v61 }
 0x227   : > { %v4462_v28 = vpop.f32.mrb[32].mxu1  ;;  %v3723_v27 = vadd.f32 %v5877_v11, %v3680_v53  ;;  %v3681_v5 = vmul.f32 %v4644_v56, %v5871_v49 }
 0x228   : > { %v2082_v13 = vpop.f32.mrb[33].mxu1  ;;  %v3721_v20 = vadd.f32 %v5877_v11, %v3678_v41  ;;  %v3679_v21 = vmul.f32 %v4645_v2, %v5871_v49 }
 0x229   : > { %v4463_v32 = vpop.f32.mrb[34].mxu1  ;;  %v3759_v55 = vmax.f32 %v3723_v27, 0.0  ;;  %v3724_v40 = vadd.f32 %v5877_v11, %v3681_v5 }
 0x22a   : > { %v2085_v44 = vpop.f32.mrb[35].mxu1  ;;  %v3757_v59 = vmax.f32 %v3721_v20, 0.0  ;;  %v3722_v39 = vadd.f32 %v5877_v11, %v3679_v21  ;;  %v4610_v29 = vpop.f32.mrb[28].mxu0 }
 0x22b   : > { %3795 = vst [vmem:[%s5886_s23 + $0xd0] sm:$0xff] %v3759_v55  ;;  %v3760_v19 = vmax.f32 %v3724_v40, 0.0  ;;  %v4646_v36 = vadd.f32 %v4610_v29, %v4458_v4  ;;  %v3580_v15 = vpop.f32.mrb[29].mxu0 }
 0x22c   : > { %3793 = vst [vmem:[%s5886_s23 + $0xc0] sm:$0xff] %v3757_v59  ;;  %v3758_v3 = vmax.f32 %v3722_v39, 0.0  ;;  %v4647_v58 = vadd.f32 %v3580_v15, %v2066_v12  ;;  %v4611_v43 = vpop.f32.mrb[30].mxu0 }
 0x22d   : > { %3796 = vst [vmem:[%s5886_s23 + $0xd8] sm:$0xff] %v3760_v19  ;;  %v3684_v33 = vmul.f32 %v4646_v36, %v5871_v49  ;;  %v4648_v8 = vadd.f32 %v4611_v43, %v4459_v54  ;;  %v3583_v61 = vpop.f32.mrb[31].mxu0 }
 0x22e   : > { %3794 = vst [vmem:[%s5886_s23 + $0xc8] sm:$0xff] %v3758_v3  ;;  %v3682_v1 = vmul.f32 %v4647_v58, %v5871_v49  ;;  %v4649_v51 = vadd.f32 %v3583_v61, %v2069_v47 }
 0x22f   : > { %v3727_v62 = vadd.f32 %v5877_v11, %v3684_v33  ;;  %v3685_v34 = vmul.f32 %v4648_v8, %v5871_v49 }
 0x230   : > { %v3725_v16 = vadd.f32 %v5877_v11, %v3682_v1  ;;  %v3683_v14 = vmul.f32 %v4649_v51, %v5871_v49 }
 0x231   : > { %v3763_v63 = vmax.f32 %v3727_v62, 0.0  ;;  %v3728_v57 = vadd.f32 %v5877_v11, %v3685_v34 }
 0x232   : > { %v3761_v9 = vmax.f32 %v3725_v16, 0.0  ;;  %v3726_v17 = vadd.f32 %v5877_v11, %v3683_v14  ;;  %v4614_v48 = vpop.f32.mrb[32].mxu0 }
 0x233   : > { %3799 = vst [vmem:[%s5886_s23 + $0xf0] sm:$0xff] %v3763_v63  ;;  %v3764_v38 = vmax.f32 %v3728_v57, 0.0  ;;  %v4650_v60 = vadd.f32 %v4614_v48, %v4462_v28  ;;  %v3596_v7 = vpop.f32.mrb[33].mxu0 }
 0x234   : > { %3797 = vst [vmem:[%s5886_s23 + $0xe0] sm:$0xff] %v3761_v9  ;;  %v3762_v4 = vmax.f32 %v3726_v17, 0.0  ;;  %v4651_v6 = vadd.f32 %v3596_v7, %v2082_v13  ;;  %v4615_v24 = vpop.f32.mrb[34].mxu0 }
 0x235   : > { %3800 = vst [vmem:[%s5886_s23 + $0xf8] sm:$0xff] %v3764_v38  ;;  %v3688_v12 = vmul.f32 %v4650_v60, %v5871_v49  ;;  %v4652_v30 = vadd.f32 %v4615_v24, %v4463_v32  ;;  %v3599_v42 = vpop.f32.mrb[35].mxu0 }
 0x236   : > { %3798 = vst [vmem:[%s5886_s23 + $0xe8] sm:$0xff] %v3762_v4  ;;  %v3686_v54 = vmul.f32 %v4651_v6, %v5871_v49  ;;  %v4653_v46 = vadd.f32 %v3599_v42, %v2085_v44 }
 0x237   : > { %v3731_v50 = vadd.f32 %v5877_v11, %v3688_v12  ;;  %v3689_v47 = vmul.f32 %v4652_v30, %v5871_v49 }
 0x238   : > { %v3729_v37 = vadd.f32 %v5877_v11, %v3686_v54  ;;  %v3687_v18 = vmul.f32 %v4653_v46, %v5871_v49 }
 0x239   : > { %v3767_v52 = vmax.f32 %v3731_v50, 0.0  ;;  %v3732_v10 = vadd.f32 %v5877_v11, %v3689_v47 }
 0x23a   : > { %v3765_v25 = vmax.f32 %v3729_v37, 0.0  ;;  %v3730_v45 = vadd.f32 %v5877_v11, %v3687_v18 }
 0x23b   : > { %3803 = vst [vmem:[%s5886_s23 + $0x110] sm:$0xff] %v3767_v52  ;;  %v3768_v22 = vmax.f32 %v3732_v10, 0.0 }
 0x23c   : > { %3801 = vst [vmem:[%s5886_s23 + $0x100] sm:$0xff] %v3765_v25  ;;  %v3766_v0 = vmax.f32 %v3730_v45, 0.0 }
 0x23d   : > { %3804 = vst [vmem:[%s5886_s23 + $0x118] sm:$0xff] %v3768_v22 }
 0x23e   : > { %3802 = vst [vmem:[%s5886_s23 + $0x108] sm:$0xff] %v3766_v0 }
 0x23f PF: > { %s14_s15 = sadd.s32 1, %s5005_s15  }
 0x240   : > { %p11_p4 = scmp.ge.s32.totalorder %s14_s15, 4  }
 0x242   :  { %13 = sbr.rel (!%p11_p4) target bundleno = 1 (0x1), region = 74 }

// kernel: conv_bn_relu.2
= control target key start
LH: loop header
LB: loop body
LE: loop exit
PB: predicated region body
PF: predicated region fallthrough
CT: control target
= control target key end

     0   :  { %s5304_s15 = smov 0   ;;  %s6351_s0 = inlined_call_operand.vmem [shape: bf16[2,326,4], index: 0, kind: input, shape index: {}]   ;;  %s6352_s1 = inlined_call_operand.vmem [shape: bf16[9,4,128], index: 1, kind: input, shape index: {}]   ;;  %s6353_s2 = inlined_call_operand.vmem [shape: f32[288,1], index: 2, kind: input, shape index: {}]   ;;  %s6354_s3 = inlined_call_operand.vmem [shape: f32[2,1,128], index: 3, kind: output, shape index: {0}]   ;;  %s6355_s4 = inlined_call_operand.vmem [shape: f32[2,1,128], index: 4, kind: output, shape index: {1}]  }
   0x1 LB: > { %s4132_s16 = sadd.s32 4294967295, %s5276_s15   ;;  %p4136_p0 = scmp.ge.s32.totalorder %s5276_s15, 1  ;;  %s5276_s15 = sphi %s5304_s15, %s15_s15  }
   0x2   : > { %p165_p1 = scmp.lt.s32.totalorder %s5276_s15, 3 }
   0x4   : > { %p166_p2 = pnand %p4136_p0, %p165_p1 }
   0x5   : > { %vm541_vm0 = vcmask (!%p166_p2), 1041408   ;;  %v4252_v0 = vld [vmem:[%s6352_s1 + $0x8] sm:$0x3] (!%p166_p2)  ;;  %v4138_v1 = vld [vmem:[%s6352_s1 + $0x2] sm:$0x3] (!%p166_p2)  ;;  %p192_p3 = scmp.lt.s32.totalorder (!%p166_p2), %s4132_s16, 1 }
   0x6   : > { %169 = sbr.rel (%p166_p2) target bundleno = 592 (0x250), region = 32  ;;  %5179 = vmatprep.subr.msk.bf16.mxu0 (!%p166_p2), %vm541_vm0, %v4252_v0  ;;  %5175 = vmatprep.subr.msk.bf16.mxu1 (!%p166_p2), %vm541_vm0, %v4138_v1  ;;  %v5321_v2 = vsel (!%p166_p2), %vm541_vm0, %v4252_v0, 0  ;;  %v543_v3 = vsel (!%p166_p2), %vm541_vm0, %v4138_v1, 0  ;;  %v4272_v4 = vld [vmem:[%s6352_s1 + $0xa] sm:$0x3] (!%p166_p2)  ;;  %vm486_vm2 = vcmask (!%p166_p2), 31744  }
   0x7   : > { %4696 = vmatpush3.bf16.msra.mxu0 (!%p166_p2), %v5321_v2  ;;  %4544 = vmatpush3.bf16.msra.mxu1 (!%p166_p2), %v543_v3  ;;  %v240_v5 = vld [vmem:[%s6352_s1] sm:$0x3] (!%p166_p2)  ;;  %vm337_vm1 = vsmask.f32 (!%p166_p2), 7424  ;;  %v5342_v6 = vsel (!%p166_p2), %vm541_vm0, %v4272_v4, 0  ;;  %vm2144_vm4 = vcmask (!%p166_p2), 1045504  }
   0x8   : > { %5181 = vmatprep.subr.msk.bf16.mxu0 (!%p166_p2), %vm541_vm0, %v4272_v4  ;;  %5176 = vmatprep.subr.msk.bf16.mxu1 (!%p166_p2), %vm541_vm0, %v240_v5  ;;  %vm1697_vm3 = vsmask.f32 (!%p166_p2), 6400  ;;  %v759_v12 = vsel (!%p166_p2), %vm541_vm0, %v240_v5, 0  ;;  %v5390_v39 = vld [vmem:[%s6352_s1 + $0x4] sm:$0x3] (!%p166_p2)  ;;  %vm944_vm5 = vcmask (!%p166_p2), 1046528  }
   0x9   : > { %v5424_v1 = vld [vmem:[%s6352_s1 + $0xc] sm:$0x3] (!%p166_p2)  ;;  %vm2897_vm6 = vsmask.f32 (!%p166_p2), 5376  ;;  %vm3344_vm7 = vcmask (!%p166_p2), 1044480  }
   0xd   : > { %s6357_s16 = smov (!%p192_p3, %s4132_s16), 1 }
   0xe   : > { %s5185_s25 = smul.u32 164, %s6357_s16  ;;  %s199_s21 = scalar_lea.vmem %s6354_s3, %s6357_s16 }
   0xf   : > { %s202_s24 = scalar_lea.vmem %s6355_s4, %s6357_s16 }
  0x10   : > { %s5339_s28 = scalar_lea.vmem %s6351_s0, %s5185_s25 }
  0x11   : > { %v204_v7 = vld [vmem:[%s5339_s28] sm:$0xf]  ;;  %v5346_v8 = vld [vmem:[%s5339_s28 + $0x4] sm:$0xf]  ;;  %v5352_v10 = vld [vmem:[%s5339_s28 + $0x8] sm:$0xff]  }
  0x12   : > { %v5349_v9 = vcombine.low %v204_v7, %v5346_v8  ;;  %v1252_v11 = vld [vmem:[%s5339_s28 + $0x8] sm:$0xe]  ;;  %v5357_v13 = vld [vmem:[%s5339_s28 + $0xc] sm:$0xf]  ;;  %v346_v16 = vshll.u32 %v5352_v10, 16  ;;  %v350_v17 = vshrl.u32 %v5352_v10, 16 }
  0x13   : > { %v5364_v18 = vld [vmem:[%s5339_s28 + $0x10] sm:$0xff]   ;;  %v5370_v20 = vcombine.low %v1252_v11, %v5357_v13  ;;  %v5378_v28 = vld [vmem:[%s5339_s28 + $0x18] sm:$0xff]   ;;  %v5384_v34 = vld [vmem:[%s5339_s28 + $0x20] sm:$0xff]  }
  0x14   : > { %v339_v14 = vshrl.u32 %v5349_v9, 16  ;;  %v341_v15 = vshll.u32 %v5349_v9, 16  ;;  %v5367_v19 = vld [vmem:[%s5339_s28 + $0x10] sm:$0xff]   ;;  %v348_v22 = vrot.slane %v346_v16, 1  ;;  %v1707_v23 = vshrl.u32 %v5364_v18, 16  ;;  %v5381_v33 = vld [vmem:[%s5339_s28 + $0x18] sm:$0xff]  }
  0x15   : > { %v1710_v24 = vshll.u32 %v5364_v18, 16  ;;  %v1699_v25 = vshrl.u32 %v5370_v20, 16  ;;  %v1702_v26 = vshll.u32 %v5370_v20, 16  ;;  %v354_v27 = vshll.u32 %v5367_v19, 16  ;;  %v5399_v48 = vld [vmem:[%s5339_s28 + $0x20] sm:$0xff]   ;;  %v5402_v49 = vld [vmem:[%s5339_s28 + $0x28] sm:$0xff]  }
  0x16   : > { %v343_v21 = vrot.slane %v341_v15, 1  ;;  %v352_v30 = vor.u32 %v350_v17, %v348_v22  ;;  %v1709_v31 = vrot.slane %v1707_v23, 1  ;;  %v1716_v38 = vshrl.u32 %v5378_v28, 16  ;;  %v5408_v54 = vld [vmem:[%s5339_s28 + $0x28] sm:$0xff]   ;;  %v5414_v59 = vld [vmem:[%s5339_s28 + $0x30] sm:$0xff]   ;;  %v5438_v23 = vld [vmem:[%s5339_s28 + $0x38] sm:$0xff]  }
  0x17   : > { %v1712_v32 = vrot.slane %v1710_v24, 2  ;;  %v1701_v35 = vrot.slane %v1699_v25, 1  ;;  %v1704_v36 = vrot.slane %v1702_v26, 2  ;;  %v356_v37 = vrot.slane %v354_v27, 1  ;;  %v5419_v0 = vld [vmem:[%s5339_s28 + $0x30] sm:$0xff]  }
  0x18   : > { %v344_v29 = vor.u32 %v343_v21, %v339_v14  ;;  %v1719_v42 = vshll.u32 %v5378_v28, 16  ;;  %v358_v43 = vshrl.u32 %v5367_v19, 16  ;;  %v1718_v46 = vrot.slane %v1716_v38, 1 }
  0x19   : > { %v1713_v41 = vor.u32 %v1712_v32, %v1709_v31  ;;  %v1705_v44 = vor.u32 %v1704_v36, %v1701_v35  ;;  %v357_v45 = vsel %vm337_vm1, %v352_v30, %v356_v37  ;;  %v362_v47 = vshll.u32 %v5381_v33, 16  ;;  %v5447_v35 = vld [vmem:[%s5339_s28 + $0x38] sm:$0xff]  }
  0x1a   : > { %v349_v40 = vsel %vm337_vm1, %v344_v29, %v348_v22  ;;  %v1721_v50 = vrot.slane %v1719_v42, 2  ;;  %v360_v51 = vor.u32 %v358_v43, %v356_v37  ;;  %v1725_v52 = vshrl.u32 %v5384_v34, 16 }
  0x1b   : > { %4545 = vmatprep.mubr.msk.bf16.mxu1 %vm486_vm2, %v349_v40  ;;  %v1728_v53 = vshll.u32 %v5384_v34, 16  ;;  %v1714_v55 = vsel %vm1697_vm3, %v1705_v44, %v1713_v41  ;;  %v364_v56 = vrot.slane %v362_v47, 1  ;;  %v366_v57 = vshrl.u32 %v5381_v33, 16  ;;  %v5458_v44 = vld [vmem:[%s5339_s28 + $0x40] sm:$0xff]  }
  0x1c   : > { %4546 = vmatmul.mubr.msk.bf16.vlgmr.msra.gmra.mrb[0].mxu1 %vm486_vm2, %v357_v45  ;;  %v370_v58 = vshll.u32 %v5399_v48, 16  ;;  %4697 = vmatprep.mubr.msk.bf16.mxu0 %vm486_vm2, %v1714_v55  ;;  %v1722_v60 = vor.u32 %v1721_v50, %v1718_v46  ;;  %v1727_v61 = vrot.slane %v1725_v52, 1  ;;  %v1734_v63 = vshrl.u32 %v5402_v49, 16 }
  0x1d   : > { %4582 = vmatpush3.bf16.msra.mxu1 %v759_v12  ;;  %v1730_v62 = vrot.slane %v1728_v53, 2  ;;  %v365_v3 = vsel %vm337_vm1, %v360_v51, %v364_v56  ;;  %v368_v4 = vor.u32 %v366_v57, %v364_v56  ;;  %v1737_v7 = vshll.u32 %v5402_v49, 16  ;;  %v5463_v51 = vld [vmem:[%s5339_s28 + $0x40] sm:$0xff]  }
  0x1e   : > { %5177 = vmatprep.subr.msk.bf16.mxu1 %vm541_vm0, %v5390_v39  ;;  %v372_v5 = vrot.slane %v370_v58, 1  ;;  %v1723_v11 = vsel %vm1697_vm3, %v1713_v41, %v1722_v60  ;;  %4549 = vmatprep.mubr.msk.bf16.mxu1 %vm486_vm2, %v365_v3  ;;  %v1736_v14 = vrot.slane %v1734_v63, 1  ;;  %v374_v15 = vshrl.u32 %v5399_v48, 16  ;;  %v5474_v63 = vld [vmem:[%s5339_s28 + $0x48] sm:$0xff]  }
  0x1f   : > { %v1731_v12 = vor.u32 %v1730_v62, %v1727_v61  ;;  %4698 = vmatmul.mubr.msk.bf16.vlgmr.msra.gmra.mrb[0].mxu0 %vm486_vm2, %v1723_v11  ;;  %v1739_v17 = vrot.slane %v1737_v7, 2  ;;  %v378_v21 = vshll.u32 %v5408_v54, 16  ;;  %v1743_v22 = vshrl.u32 %v5414_v59, 16  ;;  %v5471_v62 = vld [vmem:[%s5339_s28 + $0x48] sm:$0xff]  }
  0x20   : > { %v373_v16 = vsel %vm337_vm1, %v368_v4, %v372_v5  ;;  %4734 = vmatpush3.bf16.msra.mxu0 %v5342_v6  ;;  %v376_v25 = vor.u32 %v374_v15, %v372_v5  ;;  %v1746_v26 = vshll.u32 %v5414_v59, 16  ;;  %v382_v27 = vshrl.u32 %v5408_v54, 16 }
  0x21   : > { %v1732_v24 = vsel %vm1697_vm3, %v1722_v60, %v1731_v12  ;;  %v1740_v29 = vor.u32 %v1739_v17, %v1736_v14  ;;  %v380_v30 = vrot.slane %v378_v21, 1  ;;  %v1745_v31 = vrot.slane %v1743_v22, 1  ;;  %5182 = vmatprep.subr.msk.bf16.mxu0 %vm541_vm0, %v5424_v1  ;;  %v5483_v14 = vld [vmem:[%s5339_s28 + $0x50] sm:$0xff]  }
  0x22   : > { %4701 = vmatprep.mubr.msk.bf16.mxu0 %vm486_vm2, %v1732_v24  ;;  %v386_v32 = vshll.u32 %v5419_v0, 16  ;;  %v1748_v6 = vrot.slane %v1746_v26, 2  ;;  %v1752_v36 = vshrl.u32 %v5438_v23, 16  ;;  %v1755_v37 = vshll.u32 %v5438_v23, 16 }
  0x23   : > { %v390_v38 = vshrl.u32 %v5419_v0, 16  ;;  %v1741_v40 = vsel %vm1697_vm3, %v1731_v12, %v1740_v29  ;;  %v381_v41 = vsel %vm337_vm1, %v376_v25, %v380_v30  ;;  %v384_v42 = vor.u32 %v382_v27, %v380_v30  ;;  %v5491_v25 = vld [vmem:[%s5339_s28 + $0x50] sm:$0xff]  }
  0x24   : > { %4550 = vmatmul.mubr.msk.bf16.gmra.mrb[4].mxu1 %vm486_vm2, %v373_v16  ;;  %v388_v43 = vrot.slane %v386_v32, 1  ;;  %v1749_v45 = vor.u32 %v1748_v6, %v1745_v31  ;;  %v1754_v46 = vrot.slane %v1752_v36, 1  ;;  %v1757_v47 = vrot.slane %v1755_v37, 2 }
  0x25   : > { %4553 = vmatprep.mubr.msk.bf16.mxu1 %vm486_vm2, %v381_v41  ;;  %v394_v50 = vshll.u32 %v5447_v35, 16  ;;  %v1761_v55 = vshrl.u32 %v5458_v44, 16  ;;  %v1764_v56 = vshll.u32 %v5458_v44, 16  ;;  %v398_v61 = vshrl.u32 %v5447_v35, 16  ;;  %v5501_v41 = vld [vmem:[%s5339_s28 + $0x58] sm:$0xff]  }
  0x26   : > { %v389_v52 = vsel %vm337_vm1, %v384_v42, %v388_v43  ;;  %v392_v53 = vor.u32 %v390_v38, %v388_v43  ;;  %v1750_v57 = vsel %vm1697_vm3, %v1740_v29, %v1749_v45  ;;  %v1758_v58 = vor.u32 %v1757_v47, %v1754_v46  ;;  %v5496_v29 = vld [vmem:[%s5339_s28 + $0x58] sm:$0xff]  }
  0x27   : > { %v396_v60 = vrot.slane %v394_v50, 1  ;;  %4702 = vmatmul.mubr.msk.bf16.gmra.mrb[4].mxu0 %vm486_vm2, %v1741_v40  ;;  %v1763_v3 = vrot.slane %v1761_v55, 1  ;;  %v1766_v4 = vrot.slane %v1764_v56, 2  ;;  %v402_v5 = vshll.u32 %v5463_v51, 16 }
  0x28   : > { %v406_v7 = vshrl.u32 %v5463_v51, 16  ;;  %4705 = vmatprep.mubr.msk.bf16.mxu0 %vm486_vm2, %v1750_v57  ;;  %v1770_v12 = vshrl.u32 %v5471_v62, 16  ;;  %v1773_v16 = vshll.u32 %v5471_v62, 16  ;;  %v410_v17 = vshll.u32 %v5474_v63, 16  ;;  %v2138_v57 = vld [vmem:[%s5339_s28 + $0x8] sm:$0xc] }
  0x29   : > { %v397_v11 = vsel %vm337_vm1, %v392_v53, %v396_v60  ;;  %v1767_v15 = vor.u32 %v1766_v4, %v1763_v3  ;;  %v404_v21 = vrot.slane %v402_v5, 1  ;;  %v1779_v22 = vshrl.u32 %v5483_v14, 16 }
  0x2a   : > { %v1782_v24 = vshll.u32 %v5483_v14, 16  ;;  %v1759_v26 = vsel %vm1697_vm3, %v1749_v45, %v1758_v58  ;;  %v400_v27 = vor.u32 %v398_v61, %v396_v60  ;;  %v1772_v30 = vrot.slane %v1770_v12, 1 }
  0x2b   : > { %v1775_v31 = vrot.slane %v1773_v16, 2  ;;  %v408_v32 = vor.u32 %v406_v7, %v404_v21  ;;  %v412_v6 = vrot.slane %v410_v17, 1  ;;  %v1768_v36 = vsel %vm1697_vm3, %v1758_v58, %v1767_v15  ;;  %v5515_v58 = vld [vmem:[%s5339_s28 + $0x60] sm:$0xff]  }
  0x2c   : > { %4554 = vmatmul.mubr.msk.bf16.gmra.mrb[8].mxu1 %vm486_vm2, %v389_v52  ;;  %v1781_v37 = vrot.slane %v1779_v22, 1  ;;  %v1784_v38 = vrot.slane %v1782_v24, 2  ;;  %v418_v40 = vshll.u32 %v5491_v25, 16  ;;  %v405_v42 = vsel %vm337_vm1, %v400_v27, %v404_v21 }
  0x2d   : > { %4557 = vmatprep.mubr.msk.bf16.mxu1 %vm486_vm2, %v397_v11  ;;  %v414_v43 = vshrl.u32 %v5474_v63, 16  ;;  %v1788_v45 = vshrl.u32 %v5496_v29, 16  ;;  %v1791_v46 = vshll.u32 %v5496_v29, 16  ;;  %v1776_v47 = vor.u32 %v1775_v31, %v1772_v30  ;;  %v5520_v11 = vld [vmem:[%s5339_s28 + $0x68] sm:$0xff]  }
  0x2e   : > { %v413_v50 = vsel %vm337_vm1, %v408_v32, %v412_v6  ;;  %v422_v52 = vshrl.u32 %v5491_v25, 16  ;;  %v426_v53 = vshll.u32 %v5501_v41, 16  ;;  %v1785_v55 = vor.u32 %v1784_v38, %v1781_v37  ;;  %v5537_v32 = vld [vmem:[%s5339_s28 + $0x70] sm:$0xff]  }
  0x2f   : > { %4706 = vmatmul.mubr.msk.bf16.gmra.mrb[8].mxu0 %vm486_vm2, %v1759_v26  ;;  %v420_v56 = vrot.slane %v418_v40, 1  ;;  %v416_v60 = vor.u32 %v414_v43, %v412_v6  ;;  %v1790_v61 = vrot.slane %v1788_v45, 1  ;;  %v1793_v3 = vrot.slane %v1791_v46, 2  ;;  %v5543_v40 = vld [vmem:[%s5339_s28 + $0x78] sm:$0xff]  }
  0x30   : > { %4709 = vmatprep.mubr.msk.bf16.mxu0 %vm486_vm2, %v1768_v36  ;;  %v1777_v4 = vsel %vm1697_vm3, %v1767_v15, %v1776_v47  ;;  %v428_v7 = vrot.slane %v426_v53, 1  ;;  %v1786_v12 = vsel %vm1697_vm3, %v1776_v47, %v1785_v55  ;;  %v4273_v16 = vcombine.low %v2138_v57, %v5357_v13 }
  0x31   : > { %v424_v5 = vor.u32 %v422_v52, %v420_v56  ;;  %v434_v17 = vshll.u32 %v5515_v58, 16  ;;  %v421_v21 = vsel %vm337_vm1, %v416_v60, %v420_v56  ;;  %v430_v22 = vshrl.u32 %v5501_v41, 16  ;;  %v5558_v56 = vld [vmem:[%s5339_s28 + $0x80] sm:$0xff]  }
  0x32   : > { %v5529_v15 = vor.u32 %v1793_v3, %v1790_v61  ;;  %v438_v26 = vshrl.u32 %v5515_v58, 16  ;;  %v442_v27 = vshll.u32 %v5520_v11, 16  ;;  %v2145_v13 = vrot.slane %v4273_v16, 2 }
  0x33   : > { %v429_v24 = vsel %vm337_vm1, %v424_v5, %v428_v7  ;;  %v2146_v30 = vrot.slane %v5364_v18, 2  ;;  %v436_v31 = vrot.slane %v434_v17, 1  ;;  %v432_v6 = vor.u32 %v430_v22, %v428_v7 }
  0x34   : > { %4558 = vmatmul.mubr.msk.bf16.gmra.mrb[12].mxu1 %vm486_vm2, %v405_v42  ;;  %v1795_v36 = vsel %vm1697_vm3, %v1785_v55, %v5529_v15  ;;  %v444_v38 = vrot.slane %v442_v27, 1  ;;  %v450_v18 = vshll.u32 %v5537_v32, 16  ;;  %v2148_v45 = vrot.slane %v5378_v28, 2  ;;  %v5588_v27 = vld [vmem:[%s5339_s28 + $0x90] ss:$0 sps:$4 sm:$0x11]  }
  0x35   : > { %4561 = vmatprep.mubr.msk.bf16.mxu1 %vm486_vm2, %v413_v50  ;;  %v440_v37 = vor.u32 %v438_v26, %v436_v31  ;;  %v2147_v42 = vsel %vm2144_vm4, %v2145_v13, %v2146_v30  ;;  %v437_v43 = vsel %vm337_vm1, %v432_v6, %v436_v31  ;;  %v446_v46 = vshrl.u32 %v5520_v11, 16 }
  0x36   : > { %v454_v50 = vshrl.u32 %v5537_v32, 16  ;;  %v458_v52 = vshll.u32 %v5543_v40, 16  ;;  %v2150_v53 = vrot.slane %v5384_v34, 2  ;;  %v452_v55 = vrot.slane %v450_v18, 1  ;;  %v5571_v34 = vld [vmem:[%s6352_s1 + $0xe] sm:$0x3] }
  0x37   : > { %4710 = vmatmul.mubr.msk.bf16.gmra.mrb[12].mxu0 %vm486_vm2, %v1777_v4  ;;  %v445_v47 = vsel %vm337_vm1, %v440_v37, %v444_v38  ;;  %v2676_v28 = vsel %vm541_vm0, %v5424_v1, 0  ;;  %v448_v57 = vor.u32 %v446_v46, %v444_v38  ;;  %v2149_v60 = vsel %vm2144_vm4, %v2146_v30, %v2148_v45  ;;  %v5565_v4 = vld [vmem:[%s5339_s28 + $0x88] sm:$0xff]  }
  0x38   : > { %4713 = vmatprep.mubr.msk.bf16.mxu0 %vm486_vm2, %v1786_v12  ;;  %v456_v61 = vor.u32 %v454_v50, %v452_v55  ;;  %v460_v3 = vrot.slane %v458_v52, 1  ;;  %v2151_v5 = vsel %vm2144_vm4, %v2148_v45, %v2150_v53  ;;  %v466_v7 = vshll.u32 %v5558_v56, 16 }
  0x39   : > { %v453_v1 = vsel %vm337_vm1, %v448_v57, %v452_v55  ;;  %v2152_v12 = vrot.slane %v5402_v49, 2  ;;  %v462_v16 = vshrl.u32 %v5543_v40, 16  ;;  %v474_v22 = vshll.u32 %v5565_v4, 16  ;;  %v5615_v55 = vld [vmem:[%s5339_s28 + $0x60] sm:$0xff]   ;;  %v5634_v57 = vld [vmem:[%s5339_s28 + $0x68] sm:$0xff]  }
  0x3a   : > { %v461_v17 = vsel %vm337_vm1, %v456_v61, %v460_v3  ;;  %v468_v26 = vrot.slane %v466_v7, 1  ;;  %v482_v37 = vshll.u32 %v5588_v27, 16  ;;  %v2156_v38 = vrot.slane %v5438_v23, 2  ;;  %v5652_v7 = vld [vmem:[%s5339_s28 + $0x78] sm:$0xff]  }
  0x3b   : > { %v464_v49 = vor.u32 %v462_v16, %v460_v3  ;;  %v2153_v13 = vsel %vm2144_vm4, %v2150_v53, %v2152_v12  ;;  %v476_v31 = vrot.slane %v474_v22, 1  ;;  %v2158_v18 = vrot.slane %v5458_v44, 2  ;;  %v5668_v22 = vld [vmem:[%s5339_s28 + $0x88] sm:$0xff]  }
  0x3c   : > { %4562 = vmatmul.mubr.msk.bf16.gmra.mrb[16].mxu1 %vm486_vm2, %v421_v21  ;;  %v470_v21 = vshrl.u32 %v5558_v56, 16  ;;  %v484_v45 = vrot.slane %v482_v37, 1  ;;  %v2160_v23 = vrot.slane %v5471_v62, 2  ;;  %v2162_v44 = vrot.slane %v5483_v14, 2 }
  0x3d   : > { %4565 = vmatprep.mubr.msk.bf16.mxu1 %vm486_vm2, %v429_v24  ;;  %v2154_v24 = vrot.slane %v5414_v59, 2  ;;  %v469_v59 = vsel %vm337_vm1, %v464_v49, %v468_v26  ;;  %v2164_v62 = vrot.slane %v5496_v29, 2  ;;  %v1037_v14 = vsel %vm541_vm0, %v5390_v39, 0 }
  0x3e   : > { %v472_v30 = vor.u32 %v470_v21, %v468_v26  ;;  %v2161_v52 = vsel %vm2144_vm4, %v2158_v18, %v2160_v23  ;;  %v2163_v53 = vsel %vm2144_vm4, %v2160_v23, %v2162_v44  ;;  %v2168_v61 = vrot.slane %v5634_v57, 2  ;;  %v5672_v26 = vld [vmem:[%s5339_s28 + $0x90] sm:$0xff]  }
  0x3f   : > { %4714 = vmatmul.mubr.msk.bf16.gmra.mrb[16].mxu0 %vm486_vm2, %v1795_v36  ;;  %v2155_v6 = vsel %vm2144_vm4, %v2152_v12, %v2154_v24  ;;  %v478_v36 = vshrl.u32 %v5565_v4, 16  ;;  %v2157_v46 = vsel %vm2144_vm4, %v2154_v24, %v2156_v38  ;;  %v2165_v29 = vsel %vm2144_vm4, %v2162_v44, %v2164_v62  ;;  %v5656_v12 = vld [vmem:[%s5339_s28 + $0x80] sm:$0xff]  }
  0x40   : > { %4735 = vmatprep.mubr.msk.bf16.mxu0 %vm486_vm2, %v2147_v42  ;;  %v477_v42 = vsel %vm337_vm1, %v472_v30, %v476_v31  ;;  %v2172_v16 = vrot.slane %v5652_v7, 2  ;;  %v2176_v49 = vrot.slane %v5668_v22, 2  ;;  %v2452_v30 = vld [vmem:[%s5339_s28 + $0x10] sm:$0xc] }
  0x44   : > { %4566 = vmatmul.mubr.msk.bf16.gmra.mrb[20].mxu1 %vm486_vm2, %v437_v43  ;;  %v480_v43 = vor.u32 %v478_v36, %v476_v31  ;;  %v5682_v31 = vld [vmem:[%s5339_s28 + $0x14] sm:$0xf] }
  0x45   : > { %4569 = vmatprep.mubr.msk.bf16.mxu1 %vm486_vm2, %v445_v47  ;;  %v2159_v47 = vsel %vm2144_vm4, %v2156_v38, %v2158_v18  ;;  %v5692_v37 = vcombine.low %v2452_v30, %v5682_v31  ;;  %v5695_v38 = vld [vmem:[%s5339_s28 + $0x18] sm:$0xff]  }
  0x46   : > { %v485_v50 = vsel %vm337_vm1, %v480_v43, %v484_v45  ;;  %v2585_v43 = vrot.slane %v5695_v38, 2 }
  0x47   : > { %4736 = vmatmul.mubr.msk.bf16.vlgmr.msra.gmra.mrb[0].mxu0 %vm486_vm2, %v2149_v60  ;;  %v5640_v60 = vld [vmem:[%s5339_s28 + $0x70] sm:$0xff]   ;;  %v2584_v18 = vrot.slane %v5692_v37, 2 }
  0x48   : > { %4772 = vmatpush3.bf16.msra.mxu0 %v2676_v28  ;;  %4739 = vmatprep.mubr.msk.bf16.mxu0 %vm486_vm2, %v2151_v5  ;;  %v2166_v28 = vrot.slane %v5615_v55, 2  ;;  %v2170_v3 = vrot.slane %v5640_v60, 2 }
  0x49   : > { %5183 = vmatprep.subr.msk.bf16.mxu0 %vm541_vm0, %v5571_v34 }
  0x4a   : > { %v2167_v39 = vsel %vm2144_vm4, %v2164_v62, %v2166_v28  ;;  %v2169_v5 = vsel %vm2144_vm4, %v2166_v28, %v2168_v61  ;;  %v2173_v21 = vsel %vm2144_vm4, %v2170_v3, %v2172_v16  ;;  %v3123_v62 = vsel %vm541_vm0, %v5571_v34, 0  ;;  %v5730_v28 = vld [vmem:[%s5339_s28 + $0x38] sm:$0xff]  }
  0x4c   : > { %4570 = vmatmul.mubr.msk.bf16.gmra.mrb[24].mxu1 %vm486_vm2, %v453_v1  ;;  %v2171_v1 = vsel %vm2144_vm4, %v2168_v61, %v2170_v3  ;;  %v2593_v61 = vrot.slane %v5730_v28, 2  ;;  %v5749_v3 = vld [vmem:[%s5339_s28 + $0x40] sm:$0xff]  }
  0x4d   : > { %4573 = vmatprep.mubr.msk.bf16.mxu1 %vm486_vm2, %v461_v17  ;;  %v2174_v17 = vrot.slane %v5656_v12, 2 }
  0x4f   : > { %4740 = vmatmul.mubr.msk.bf16.gmra.mrb[4].mxu0 %vm486_vm2, %v2153_v13  ;;  %v2175_v24 = vsel %vm2144_vm4, %v2172_v16, %v2174_v17  ;;  %v2178_v13 = vrot.slane %v5672_v26, 2  ;;  %v938_v16 = vld [vmem:[%s5339_s28] sm:$0xe] }
  0x50   : > { %4743 = vmatprep.mubr.msk.bf16.mxu0 %vm486_vm2, %v2155_v6  ;;  %v2177_v6 = vsel %vm2144_vm4, %v2174_v17, %v2176_v49  ;;  %v2595_v17 = vrot.slane %v5749_v3, 2 }
  0x51   : > { %v2179_v36 = vsel %vm2144_vm4, %v2176_v49, %v2178_v13 }
  0x52   : > { %v2596_v49 = vsel %vm2144_vm4, %v2593_v61, %v2595_v17 }
  0x54   : > { %4574 = vmatmul.mubr.msk.bf16.gmra.mrb[28].mxu1 %vm486_vm2, %v469_v59  ;;  %v5688_v59 = vld [vmem:[%s5339_s28 + $0x98] ss:$0 sps:$4 sm:$0x33]  }
  0x55   : > { %4577 = vmatprep.mubr.msk.bf16.mxu1 %vm486_vm2, %v477_v42  ;;  %v2180_v42 = vrot.slane %v5688_v59, 2 }
  0x57   : > { %4744 = vmatmul.mubr.msk.bf16.gmra.mrb[8].mxu0 %vm486_vm2, %v2157_v46  ;;  %v2181_v45 = vsel %vm2144_vm4, %v2178_v13, %v2180_v42  ;;  %v5708_v46 = vld [vmem:[%s5339_s28 + $0x20] sm:$0xff]   ;;  %v5767_v13 = vld [vmem:[%s5339_s28 + $0x50] sm:$0xff]  }
  0x58   : > { %4747 = vmatprep.mubr.msk.bf16.mxu0 %vm486_vm2, %v2159_v47  ;;  %v2586_v47 = vsel %vm2144_vm4, %v2584_v18, %v2585_v43  ;;  %v2587_v23 = vrot.slane %v5708_v46, 2  ;;  %v2599_v42 = vrot.slane %v5767_v13, 2 }
  0x5c   : > { %4578 = vmatmul.mubr.msk.bf16.gmra.mrb[32].mxu1 %vm486_vm2, %v485_v50  ;;  %v5712_v50 = vld [vmem:[%s5339_s28 + $0x28] sm:$0xff]  }
  0x5d   : > { %4583 = vmatprep.mubr.msk.bf16.mxu1 %vm486_vm2, %v5349_v9  ;;  %v5626_v9 = vld [vmem:[%s6352_s1 + $0x6] sm:$0x3]  ;;  %v2589_v44 = vrot.slane %v5712_v50, 2 }
  0x5f   : > { %4748 = vmatmul.mubr.msk.bf16.gmra.mrb[12].mxu0 %vm486_vm2, %v2161_v52  ;;  %v2588_v52 = vsel %vm2144_vm4, %v2585_v43, %v2587_v23 }
  0x60   : > { %4751 = vmatprep.mubr.msk.bf16.mxu0 %vm486_vm2, %v2163_v53  ;;  %v5724_v53 = vld [vmem:[%s5339_s28 + $0x30] sm:$0xff]  }
  0x64   : > { %4584 = vmatmul.mubr.msk.bf16.vlgmr.msra.gmra.mrb[0].mxu1 %vm486_vm2, %v5352_v10 }
  0x65   : > { %4587 = vmatprep.mubr.msk.bf16.mxu1 %vm486_vm2, %v5367_v19  ;;  %4620 = vmatpush3.bf16.msra.mxu1 %v1037_v14  ;;  %v2590_v14 = vsel %vm2144_vm4, %v2587_v23, %v2589_v44  ;;  %v950_v23 = vrot.slane %v5381_v33, 1 }
  0x66   : > { %5178 = vmatprep.subr.msk.bf16.mxu1 %vm541_vm0, %v5626_v9 }
  0x67   : > { %4752 = vmatmul.mubr.msk.bf16.gmra.mrb[16].mxu0 %vm486_vm2, %v2165_v29  ;;  %v5735_v29 = vld [vmem:[%s6352_s1 + $0x10] sm:$0x3] }
  0x68   : > { %4755 = vmatprep.mubr.msk.bf16.mxu0 %vm486_vm2, %v2167_v39  ;;  %v2591_v39 = vrot.slane %v5724_v53, 2 }
  0x6a   : > { %v2592_v34 = vsel %vm2144_vm4, %v2589_v44, %v2591_v39 }
  0x6c   : > { %4588 = vmatmul.mubr.msk.bf16.gmra.mrb[4].mxu1 %vm486_vm2, %v5381_v33 }
  0x6d   : > { %4591 = vmatprep.mubr.msk.bf16.mxu1 %vm486_vm2, %v5399_v48 }
  0x6f   : > { %4756 = vmatmul.mubr.msk.bf16.gmra.mrb[20].mxu0 %vm486_vm2, %v2169_v5  ;;  %v2594_v5 = vsel %vm2144_vm4, %v2591_v39, %v2593_v61  ;;  %v1476_v39 = vsel %vm541_vm0, %v5626_v9, 0  ;;  %v952_v61 = vrot.slane %v5399_v48, 1 }
  0x70   : > { %4759 = vmatprep.mubr.msk.bf16.mxu0 %vm486_vm2, %v2171_v1  ;;  %v5753_v1 = vld [vmem:[%s5339_s28 + $0x48] sm:$0xff]  }
  0x71   : > { %v953_v48 = vsel %vm944_vm5, %v950_v23, %v952_v61 }
  0x74   : > { %4592 = vmatmul.mubr.msk.bf16.gmra.mrb[8].mxu1 %vm486_vm2, %v5408_v54 }
  0x75   : > { %4595 = vmatprep.mubr.msk.bf16.mxu1 %vm486_vm2, %v5419_v0 }
  0x77   : > { %4760 = vmatmul.mubr.msk.bf16.gmra.mrb[24].mxu0 %vm486_vm2, %v2173_v21  ;;  %v4195_v21 = vcombine.low %v938_v16, %v5346_v8  ;;  %v5772_v8 = vld [vmem:[%s5339_s28 + $0x58] sm:$0xff]   ;;  %v954_v16 = vrot.slane %v5408_v54, 1  ;;  %v3654_v54 = vld [vmem:[%s6353_s2 + $0x10] sm:$0xff] }
  0x78   : > { %4763 = vmatprep.mubr.msk.bf16.mxu0 %vm486_vm2, %v2175_v24  ;;  %v2597_v24 = vrot.slane %v5753_v1, 2  ;;  %v2601_v43 = vrot.slane %v5772_v8, 2 }
  0x79   : > { %v945_v30 = vrot.slane %v4195_v21, 1  ;;  %v5814_v21 = vld [vmem:[%s5339_s28 + $0x78] sm:$0xff]  }
  0x7a   : > { %v2602_v44 = vsel %vm2144_vm4, %v2599_v42, %v2601_v43 }
  0x7c   : > { %4596 = vmatmul.mubr.msk.bf16.gmra.mrb[12].mxu1 %vm486_vm2, %v5447_v35 }
  0x7d   : > { %4599 = vmatprep.mubr.msk.bf16.mxu1 %vm486_vm2, %v5463_v51 }
  0x7f   : > { %4764 = vmatmul.mubr.msk.bf16.gmra.mrb[28].mxu0 %vm486_vm2, %v2177_v6  ;;  %v946_v6 = vrot.slane %v5352_v10, 1  ;;  %v948_v10 = vrot.slane %v5367_v19, 1 }
  0x80   : > { %4767 = vmatprep.mubr.msk.bf16.mxu0 %vm486_vm2, %v2179_v36  ;;  %v2598_v36 = vsel %vm2144_vm4, %v2595_v17, %v2597_v24  ;;  %v5259_v17 = vld [vmem:[%s6352_s1 + $0x8] sm:$0x3] }
  0x81   : > { %v947_v18 = vsel %vm944_vm5, %v945_v30, %v946_v6  ;;  %v955_v30 = vsel %vm944_vm5, %v952_v61, %v954_v16  ;;  %v3658_v61 = vld [vmem:[%s6353_s2 + $0x30] sm:$0xff] }
  0x84   : > { %4600 = vmatmul.mubr.msk.bf16.gmra.mrb[16].mxu1 %vm486_vm2, %v5474_v63 }
  0x85   : > { %4603 = vmatprep.mubr.msk.bf16.mxu1 %vm486_vm2, %v5491_v25 }
  0x87   : > { %4768 = vmatmul.mubr.msk.bf16.gmra.mrb[32].mxu0 %vm486_vm2, %v2181_v45  ;;  %v2600_v45 = vsel %vm2144_vm4, %v2597_v24, %v2599_v42  ;;  %v3652_v24 = vld [vmem:[%s6353_s2] sm:$0xff]  ;;  %v3653_v42 = vld [vmem:[%s6353_s2 + $0x8] sm:$0xff] }
  0x88   : > { %4773 = vmatprep.mubr.msk.bf16.mxu0 %vm486_vm2, %v2586_v47  ;;  %v5785_v47 = vld [vmem:[%s5339_s28 + $0x60] sm:$0xff]  }
  0x89   : > { %v2603_v19 = vrot.slane %v5785_v47, 2 }
  0x8c   : > { %4604 = vmatmul.mubr.msk.bf16.gmra.mrb[20].mxu1 %vm486_vm2, %v5501_v41 }
  0x8d   : > { %4607 = vmatprep.mubr.msk.bf16.mxu1 %vm486_vm2, %v5515_v58 }
  0x8f   : > { %4774 = vmatmul.mubr.msk.bf16.vlgmr.msra.gmra.mrb[0].mxu0 %vm486_vm2, %v2588_v52  ;;  %v5790_v52 = vld [vmem:[%s5339_s28 + $0x68] sm:$0xff]  }
  0x90   : > { %4810 = vmatpush3.bf16.msra.mxu0 %v3123_v62  ;;  %4777 = vmatprep.mubr.msk.bf16.mxu0 %vm486_vm2, %v2590_v14  ;;  %v949_v62 = vsel %vm944_vm5, %v946_v6, %v948_v10  ;;  %v951_v14 = vsel %vm944_vm5, %v948_v10, %v950_v23  ;;  %v2605_v33 = vrot.slane %v5790_v52, 2  ;;  %v5278_v6 = vmov 0   ;;  %v5836_v10 = vld [vmem:[%s5339_s28 + $0x80] sm:$0xff]  }
  0x91   : > { %5184 = vmatprep.subr.msk.bf16.mxu0 %vm541_vm0, %v5735_v29  ;;  %5195 = vset.pattern.permute.xlu0 %v5278_v6 }
  0x92   : > { %v2606_v9 = vsel %vm2144_vm4, %v2603_v19, %v2605_v33  ;;  %3690 = vperm.xlu0 %5195, %v3652_v24   ;;  %5196 = vset.pattern.permute.xlu1 %v5278_v6 }
  0x93   : > { %3700 = vperm.xlu1 %5196, %v3654_v54  }
  0x94   : > { %4608 = vmatmul.mubr.msk.bf16.gmra.mrb[24].mxu1 %vm486_vm2, %v5520_v11 }
  0x95   : > { %4611 = vmatprep.mubr.msk.bf16.mxu1 %vm486_vm2, %v5537_v32 }
  0x96   : > { %3695 = vperm.xlu0 %5195, %v3653_v42   ;;  %v2902_v42 = vshll.u32 %v5692_v37, 16 }
  0x97   : > { %4778 = vmatmul.mubr.msk.bf16.gmra.mrb[4].mxu0 %vm486_vm2, %v2592_v34  ;;  %v2604_v34 = vsel %vm2144_vm4, %v2601_v43, %v2603_v19  ;;  %v3656_v19 = vld [vmem:[%s6353_s2 + $0x20] sm:$0xff] }
  0x98   : > { %4781 = vmatprep.mubr.msk.bf16.mxu0 %vm486_vm2, %v2594_v5  ;;  %v5805_v5 = vld [vmem:[%s5339_s28 + $0x70] sm:$0xff]  }
  0x9a   : > { %3710 = vperm.xlu0 %5195, %v3656_v19   ;;  %v5255_v19 = vld [vmem:[%s5339_s28 + $0xa0] ss:$0 sps:$4 sm:$0x33]  }
  0x9c   : > { %4612 = vmatmul.mubr.msk.bf16.gmra.mrb[28].mxu1 %vm486_vm2, %v5543_v40 }
  0x9d   : > { %4615 = vmatprep.mubr.msk.bf16.mxu1 %vm486_vm2, %v5558_v56 }
  0x9e   : > { %3720 = vperm.xlu0 %5195, %v3658_v61  }
  0x9f   : > { %4782 = vmatmul.mubr.msk.bf16.gmra.mrb[8].mxu0 %vm486_vm2, %v2596_v49  ;;  %v2607_v49 = vrot.slane %v5805_v5, 2 }
  0xa0   : > { %4785 = vmatprep.mubr.msk.bf16.mxu0 %vm486_vm2, %v2598_v36  ;;  %v2609_v36 = vrot.slane %v5814_v21, 2 }
  0xa1   : > { %v2608_v43 = vsel %vm2144_vm4, %v2605_v33, %v2607_v49  ;;  %v3657_v33 = vld [vmem:[%s6353_s2 + $0x28] sm:$0xff] }
  0xa2   : > { %v2610_v23 = vsel %vm2144_vm4, %v2607_v49, %v2609_v36  ;;  %v3660_v49 = vld [vmem:[%s6353_s2 + $0x40] sm:$0xff] }
  0xa3   : > { %3730 = vperm.xlu0 %5195, %v3660_v49  }
  0xa4   : > { %4616 = vmatmul.mubr.msk.bf16.gmra.mrb[32].mxu1 %vm486_vm2, %v5565_v4 }
  0xa5   : > { %4621 = vmatprep.mubr.msk.bf16.mxu1 %vm486_vm2, %v947_v18  ;;  %v956_v18 = vrot.slane %v5419_v0, 1  ;;  %v3655_v0 = vld [vmem:[%s6353_s2 + $0x18] sm:$0xff] }
  0xa6   : > { %3705 = vperm.xlu1 %5196, %v3655_v0  }
  0xa7   : > { %4786 = vmatmul.mubr.msk.bf16.gmra.mrb[12].mxu0 %vm486_vm2, %v2600_v45  ;;  %v958_v45 = vrot.slane %v5447_v35, 1  ;;  %v2611_v35 = vrot.slane %v5836_v10, 2 }
  0xa8   : > { %4789 = vmatprep.mubr.msk.bf16.mxu0 %vm486_vm2, %v2602_v44  ;;  %v5841_v44 = vld [vmem:[%s5339_s28 + $0x88] sm:$0xff]  }
  0xaa   : > { %3715 = vperm.xlu1 %5196, %v3657_v33   ;;  %v2904_v33 = vrot.slane %v2902_v42, 3  ;;  %v3666_v42 = vld [vmem:[%s6353_s2 + $0x70] sm:$0xff] }
  0xac   : > { %4622 = vmatmul.mubr.msk.bf16.vlgmr.msra.gmra.mrb[0].mxu1 %vm486_vm2, %v949_v62  ;;  %v957_v62 = vsel %vm944_vm5, %v954_v16, %v956_v18  ;;  %v2612_v16 = vsel %vm2144_vm4, %v2609_v36, %v2611_v35  ;;  %v2899_v36 = vshrl.u32 %v5692_v37, 16 }
  0xad   : > { %4625 = vmatprep.mubr.msk.bf16.mxu1 %vm486_vm2, %v951_v14  ;;  %4658 = vmatpush3.bf16.msra.mxu1 %v1476_v39  ;;  %v959_v14 = vsel %vm944_vm5, %v956_v18, %v958_v45  ;;  %v2613_v39 = vrot.slane %v5841_v44, 2  ;;  %v2907_v18 = vshrl.u32 %v5695_v38, 16 }
  0xae   : > { %5180 = vmatprep.subr.msk.bf16.mxu1 %vm541_vm0, %v5259_v17  ;;  %v5866_v17 = vld [vmem:[%s5339_s28 + $0x90] sm:$0xff]  }
  0xaf   : > { %4790 = vmatmul.mubr.msk.bf16.gmra.mrb[16].mxu0 %vm486_vm2, %v2604_v34  ;;  %v960_v34 = vrot.slane %v5463_v51, 1  ;;  %v2614_v24 = vsel %vm2144_vm4, %v2611_v35, %v2613_v39  ;;  %v3659_v51 = vld [vmem:[%s6353_s2 + $0x38] sm:$0xff]  ;;  %v966_v35 = vrot.slane %v5501_v41, 1  ;;  %v2909_v61 = vrot.slane %v2907_v18, 2 }
  0xb0   : > { %4793 = vmatprep.mubr.msk.bf16.mxu0 %vm486_vm2, %v2606_v9  ;;  %v962_v9 = vrot.slane %v5474_v63, 1  ;;  %v2615_v63 = vrot.slane %v5866_v17, 2  ;;  %3725 = vperm.xlu1 %5196, %v3659_v51   ;;  %v2619_v41 = vrot.slane %v5255_v19, 2  ;;  %v2919_v51 = vshll.u32 %v5708_v46, 16 }
  0xb1   : > { %v961_v54 = vsel %vm944_vm5, %v958_v45, %v960_v34  ;;  %v3661_v45 = vld [vmem:[%s6353_s2 + $0x48] sm:$0xff]  ;;  %v968_v18 = vrot.slane %v5515_v58, 1  ;;  %v3667_v58 = vld [vmem:[%s6353_s2 + $0x78] sm:$0xff] }
  0xb2   : > { %v2616_v37 = vsel %vm2144_vm4, %v2613_v39, %v2615_v63  ;;  %v3664_v39 = vld [vmem:[%s6353_s2 + $0x60] sm:$0xff] }
  0xb4   : > { %4626 = vmatmul.mubr.msk.bf16.gmra.mrb[4].mxu1 %vm486_vm2, %v953_v48  ;;  %v5870_v48 = vld [vmem:[%s5339_s28 + $0x98] sm:$0xff]   ;;  %3735 = vperm.xlu1 %5196, %v3661_v45  }
  0xb5   : > { %4629 = vmatprep.mubr.msk.bf16.mxu1 %vm486_vm2, %v955_v30  ;;  %v963_v30 = vsel %vm944_vm5, %v960_v34, %v962_v9  ;;  %v2617_v6 = vrot.slane %v5870_v48, 2 }
  0xb7   : > { %4794 = vmatmul.mubr.msk.bf16.gmra.mrb[20].mxu0 %vm486_vm2, %v2608_v43  ;;  %v2910_v43 = vshll.u32 %v5695_v38, 16  ;;  %v2618_v0 = vsel %vm2144_vm4, %v2615_v63, %v2617_v6  ;;  %v2925_v63 = vshrl.u32 %v5712_v50, 16 }
  0xb8   : > { %4797 = vmatprep.mubr.msk.bf16.mxu0 %vm486_vm2, %v2610_v23  ;;  %v3662_v23 = vld [vmem:[%s6353_s2 + $0x50] sm:$0xff] }
  0xb9   : > { %v2912_v34 = vrot.slane %v2910_v43, 3  ;;  %3740 = vperm.xlu0 %5195, %v3662_v23   ;;  %v2620_v43 = vsel %vm2144_vm4, %v2617_v6, %v2619_v41  ;;  %v2921_v23 = vrot.slane %v2919_v51, 3  ;;  %v3668_v6 = vld [vmem:[%s6353_s2 + $0x80] sm:$0xff]  ;;  %v3670_v41 = vld [vmem:[%s6353_s2 + $0x90] sm:$0xff] }
  0xbc   : > { %4630 = vmatmul.mubr.msk.bf16.gmra.mrb[8].mxu1 %vm486_vm2, %v957_v62  ;;  %v964_v62 = vrot.slane %v5491_v25, 1  ;;  %v3663_v25 = vld [vmem:[%s6353_s2 + $0x58] sm:$0xff] }
  0xbd   : > { %4633 = vmatprep.mubr.msk.bf16.mxu1 %vm486_vm2, %v959_v14  ;;  %v2901_v14 = vrot.slane %v2899_v36, 2  ;;  %3745 = vperm.xlu1 %5196, %v3663_v25   ;;  %v3665_v36 = vld [vmem:[%s6353_s2 + $0x68] sm:$0xff]  ;;  %v2946_v25 = vshll.u32 %v5730_v28, 16 }
  0xbe   : > { %3750 = vperm.xlu0 %5195, %v3664_v39   ;;  %v3669_v39 = vld [vmem:[%s6353_s2 + $0x88] sm:$0xff] }
  0xbf   : > { %4798 = vmatmul.mubr.msk.bf16.gmra.mrb[24].mxu0 %vm486_vm2, %v2612_v16  ;;  %v965_v16 = vsel %vm944_vm5, %v962_v9, %v964_v62  ;;  %v2905_v49 = vor.u32 %v2904_v33, %v2901_v14  ;;  %v2913_v9 = vor.u32 %v2912_v34, %v2909_v61  ;;  %v969_v14 = vsel %vm944_vm5, %v966_v35, %v968_v18 }
  0xc0   : > { %4801 = vmatprep.mubr.msk.bf16.mxu0 %vm486_vm2, %v2614_v24  ;;  %v967_v24 = vsel %vm944_vm5, %v964_v62, %v966_v35  ;;  %v970_v62 = vrot.slane %v5520_v11, 1  ;;  %v2934_v61 = vshrl.u32 %v5724_v53, 16  ;;  %v2937_v34 = vshll.u32 %v5724_v53, 16 }
  0xc1   : > { %3755 = vperm.xlu1 %5196, %v3665_v36   ;;  %v2943_v35 = vshrl.u32 %v5730_v28, 16 }
  0xc2   : > { %3760 = vperm.xlu0 %5195, %v3666_v42   ;;  %v971_v33 = vsel %vm944_vm5, %v968_v18, %v970_v62  ;;  %v2936_v51 = vrot.slane %v2934_v61, 2  ;;  %v2948_v18 = vrot.slane %v2946_v25, 3  ;;  %v978_v61 = vrot.slane %v5565_v4, 1 }
  0xc3   : > { %v2945_v42 = vrot.slane %v2943_v35, 2 }
  0xc4   : > { %4634 = vmatmul.mubr.msk.bf16.gmra.mrb[12].mxu1 %vm486_vm2, %v961_v54  ;;  %v2916_v54 = vshrl.u32 %v5708_v46, 16 }
  0xc5   : > { %4637 = vmatprep.mubr.msk.bf16.mxu1 %vm486_vm2, %v963_v30  ;;  %v2928_v30 = vshll.u32 %v5712_v50, 16  ;;  %3765 = vperm.xlu1 %5196, %v3667_v58   ;;  %v976_v58 = vrot.slane %v5558_v56, 1  ;;  %v3675_v56 = vld [vmem:[%s6353_s2 + $0xb8] sm:$0xff] }
  0xc6   : > { %v2918_v45 = vrot.slane %v2916_v54, 2  ;;  %3770 = vperm.xlu0 %5195, %v3668_v6  }
  0xc7   : > { %4802 = vmatmul.mubr.msk.bf16.gmra.mrb[28].mxu0 %vm486_vm2, %v2616_v37  ;;  %v2914_v37 = vsel %vm2897_vm6, %v2905_v49, %v2913_v9  ;;  %v2930_v19 = vrot.slane %v2928_v30, 3  ;;  %v2939_v49 = vrot.slane %v2937_v34, 3  ;;  %v3437_v30 = vsel %vm541_vm0, %v5735_v29, 0  ;;  %v3672_v29 = vld [vmem:[%s6353_s2 + $0xa0] sm:$0xff] }
  0xc8   : > { %4805 = vmatprep.mubr.msk.bf16.mxu0 %vm486_vm2, %v2618_v0  ;;  %v2927_v0 = vrot.slane %v2925_v63, 2  ;;  %v2922_v11 = vor.u32 %v2921_v23, %v2918_v45  ;;  %v974_v63 = vrot.slane %v5543_v40, 1  ;;  %v3671_v40 = vld [vmem:[%s6353_s2 + $0x98] sm:$0xff]  ;;  %v979_v4 = vsel %vm944_vm5, %v976_v58, %v978_v61 }
  0xc9   : > { %3775 = vperm.xlu1 %5196, %v3669_v39   ;;  %v2940_v45 = vor.u32 %v2939_v49, %v2936_v51  ;;  %v2979_v49 = vshrl.u32 %v5772_v8, 16 }
  0xca   : > { %v2923_v54 = vsel %vm2897_vm6, %v2913_v9, %v2922_v11  ;;  %3780 = vperm.xlu0 %5195, %v3670_v41   ;;  %v2955_v9 = vshll.u32 %v5749_v3, 16  ;;  %v977_v39 = vsel %vm944_vm5, %v974_v63, %v976_v58  ;;  %v2991_v58 = vshll.u32 %v5785_v47, 16 }
  0xcc   : > { %4638 = vmatmul.mubr.msk.bf16.gmra.mrb[16].mxu1 %vm486_vm2, %v965_v16  ;;  %v2931_v16 = vor.u32 %v2930_v19, %v2927_v0  ;;  %v2964_v0 = vshll.u32 %v5753_v1, 16  ;;  %v3673_v19 = vld [vmem:[%s6353_s2 + $0xa8] sm:$0xff] }
  0xcd   : > { %4641 = vmatprep.mubr.msk.bf16.mxu1 %vm486_vm2, %v967_v24  ;;  %v972_v24 = vrot.slane %v5537_v32, 1  ;;  %v2952_v32 = vshrl.u32 %v5749_v3, 16  ;;  %3785 = vperm.xlu1 %5196, %v3671_v40   ;;  %v5260_v40 = vld [vmem:[%s5339_s28 + $0x10] sm:$0xff]  }
  0xce   : > { %v2932_v36 = vsel %vm2897_vm6, %v2922_v11, %v2931_v16  ;;  %3790 = vperm.xlu0 %5195, %v3672_v29   ;;  %v2957_v11 = vrot.slane %v2955_v9, 3  ;;  %v2966_v25 = vrot.slane %v2964_v0, 3  ;;  %v1384_v9 = vrot.slane %v5370_v20, 1 }
  0xcf   : > { %4806 = vmatmul.mubr.msk.bf16.gmra.mrb[32].mxu0 %vm486_vm2, %v2620_v43  ;;  %v973_v43 = vsel %vm944_vm5, %v970_v62, %v972_v24  ;;  %v975_v23 = vsel %vm944_vm5, %v972_v24, %v974_v63  ;;  %v2961_v62 = vshrl.u32 %v5753_v1, 16  ;;  %v2954_v6 = vrot.slane %v2952_v32, 2 }
  0xd0   : > { %4811 = vmatprep.mubr.msk.bf16.mxu0 %vm486_vm2, %v2914_v37  ;;  %v2949_v37 = vor.u32 %v2948_v18, %v2945_v42  ;;  %v2970_v24 = vshrl.u32 %v5767_v13, 16  ;;  %v2982_v63 = vshll.u32 %v5772_v8, 16  ;;  %v980_v18 = vrot.slane %v5588_v27, 1  ;;  %v3680_v27 = vld [vmem:[%s6353_s2 + $0xe0] sm:$0xff] }
  0xd1   : > { %v2963_v35 = vrot.slane %v2961_v62, 2  ;;  %3795 = vperm.xlu1 %5196, %v3673_v19   ;;  %v2958_v41 = vor.u32 %v2957_v11, %v2954_v6  ;;  %v1385_v29 = vrot.slane %v5260_v40, 1  ;;  %v2997_v11 = vshrl.u32 %v5790_v52, 16 }
  0xd2   : > { %v2950_v34 = vsel %vm2897_vm6, %v2940_v45, %v2949_v37  ;;  %v2984_v62 = vrot.slane %v2982_v63, 3  ;;  %v981_v20 = vsel %vm944_vm5, %v978_v61, %v980_v18  ;;  %v3681_v61 = vld [vmem:[%s6353_s2 + $0xe8] sm:$0xff]  ;;  %v3683_v63 = vld [vmem:[%s6353_s2 + $0xf8] sm:$0xff]  ;;  %v3006_v18 = vshrl.u32 %v5805_v5, 16 }
  0xd3   : > { %v2967_v51 = vor.u32 %v2966_v25, %v2963_v35  ;;  %v2959_v42 = vsel %vm2897_vm6, %v2949_v37, %v2958_v41  ;;  %v3679_v37 = vld [vmem:[%s6353_s2 + $0xd8] sm:$0xff]  ;;  %v1386_v19 = vsel %vm944_vm5, %v1384_v9, %v1385_v29  ;;  %v3015_v9 = vshrl.u32 %v5814_v21, 16 }
  0xd4   : > { %4642 = vmatmul.mubr.msk.bf16.gmra.mrb[20].mxu1 %vm486_vm2, %v969_v14  ;;  %v3674_v14 = vld [vmem:[%s6353_s2 + $0xb0] sm:$0xff]  ;;  %v5261_v35 = vld [vmem:[%s5339_s28 + $0x18] sm:$0xff]   ;;  %v3018_v40 = vshll.u32 %v5814_v21, 16 }
  0xd5   : > { %4645 = vmatprep.mubr.msk.bf16.mxu1 %vm486_vm2, %v971_v33  ;;  %v2941_v33 = vsel %vm2897_vm6, %v2931_v16, %v2940_v45  ;;  %3800 = vperm.xlu0 %5195, %v3674_v14   ;;  %v3676_v16 = vld [vmem:[%s6353_s2 + $0xc0] sm:$0xff]  ;;  %v2968_v45 = vsel %vm2897_vm6, %v2958_v41, %v2967_v51  ;;  %v2988_v14 = vshrl.u32 %v5785_v47, 16  ;;  %v1387_v25 = vrot.slane %v5261_v35, 1 }
  0xd6   : > { %3805 = vperm.xlu1 %5196, %v3675_v56   ;;  %v2993_v56 = vrot.slane %v2991_v58, 3  ;;  %v3017_v58 = vrot.slane %v3015_v9, 2  ;;  %v3027_v35 = vshll.u32 %v5836_v10, 16  ;;  %v3045_v9 = vshll.u32 %v5866_v17, 16 }
  0xd7   : > { %4812 = vmatmul.mubr.msk.bf16.vlgmr.msra.gmra.mrb[0].mxu0 %vm486_vm2, %v2923_v54  ;;  %v2973_v54 = vshll.u32 %v5767_v13, 16  ;;  %v2990_v41 = vrot.slane %v2988_v14, 2 }
  0xd8   : > { %4848 = vmatpush3.bf16.msra.mxu0 %v3437_v30  ;;  %4815 = vmatprep.mubr.msk.bf16.mxu0 %vm486_vm2, %v2932_v36  ;;  %v3677_v30 = vld [vmem:[%s6353_s2 + $0xc8] sm:$0xff]  ;;  %v3678_v36 = vld [vmem:[%s6353_s2 + $0xd0] sm:$0xff] }
  0xd9   : > { %3810 = vperm.xlu0 %5195, %v3676_v16   ;;  %v2975_v32 = vrot.slane %v2973_v54, 3  ;;  %v5262_v16 = vld [vmem:[%s5339_s28 + $0x20] sm:$0xff]   ;;  %v2999_v54 = vrot.slane %v2997_v11, 2  ;;  %v3020_v11 = vrot.slane %v3018_v40, 3 }
  0xda   : > { %3815 = vperm.xlu1 %5196, %v3677_v30   ;;  %v3684_v30 = vld [vmem:[%s6353_s2 + $0x100] sm:$0xff] }
  0xdc   : > { %4646 = vmatmul.mubr.msk.bf16.gmra.mrb[24].mxu1 %vm486_vm2, %v973_v43  ;;  %v2972_v43 = vrot.slane %v2970_v24, 2 }
  0xdd   : > { %4649 = vmatprep.mubr.msk.bf16.mxu1 %vm486_vm2, %v975_v23  ;;  %v2981_v23 = vrot.slane %v2979_v49, 2  ;;  %3820 = vperm.xlu0 %5195, %v3678_v36   ;;  %v2994_v36 = vor.u32 %v2993_v56, %v2990_v41  ;;  %v3036_v41 = vshll.u32 %v5841_v44, 16  ;;  %v5265_v56 = vld [vmem:[%s5339_s28 + $0x38] sm:$0xff]  }
  0xde   : > { %v2976_v0 = vor.u32 %v2975_v32, %v2972_v43  ;;  %3825 = vperm.xlu1 %5196, %v3679_v37   ;;  %v3009_v43 = vshll.u32 %v5805_v5, 16 }
  0xdf   : > { %4816 = vmatmul.mubr.msk.bf16.gmra.mrb[4].mxu0 %vm486_vm2, %v2941_v33  ;;  %v2985_v6 = vor.u32 %v2984_v62, %v2981_v23  ;;  %v3000_v33 = vshll.u32 %v5790_v52, 16  ;;  %v5263_v23 = vld [vmem:[%s5339_s28 + $0x28] sm:$0xff]  }
  0xe0   : > { %4819 = vmatprep.mubr.msk.bf16.mxu0 %vm486_vm2, %v2950_v34  ;;  %v3682_v34 = vld [vmem:[%s6353_s2 + $0xf0] sm:$0xff]  ;;  %v1391_v62 = vrot.slane %v5263_v23, 1  ;;  %v5267_v23 = vld [vmem:[%s5339_s28 + $0x48] sm:$0xff]  }
  0xe1   : > { %3830 = vperm.xlu0 %5195, %v3680_v27   ;;  %v2986_v24 = vsel %vm2897_vm6, %v2976_v0, %v2985_v6  ;;  %v3002_v49 = vrot.slane %v3000_v33, 3  ;;  %v2995_v37 = vsel %vm2897_vm6, %v2985_v6, %v2994_v36  ;;  %v3008_v27 = vrot.slane %v3006_v18, 2  ;;  %v3687_v33 = vld [vmem:[%s6353_s2 + $0x118] sm:$0xff] }
  0xe2   : > { %3835 = vperm.xlu1 %5196, %v3681_v61  }
  0xe3   : > { %v3003_v32 = vor.u32 %v3002_v49, %v2999_v54  ;;  %v3029_v54 = vrot.slane %v3027_v35, 3  ;;  %v5266_v49 = vld [vmem:[%s5339_s28 + $0x40] sm:$0xff]  }
  0xe4   : > { %4650 = vmatmul.mubr.msk.bf16.gmra.mrb[28].mxu1 %vm486_vm2, %v977_v39  ;;  %v2977_v39 = vsel %vm2897_vm6, %v2967_v51, %v2976_v0  ;;  %v1388_v51 = vsel %vm944_vm5, %v1385_v29, %v1387_v25  ;;  %v3685_v29 = vld [vmem:[%s6353_s2 + $0x108] sm:$0xff]  ;;  %v5264_v0 = vld [vmem:[%s5339_s28 + $0x30] sm:$0xff]  }
  0xe5   : > { %4653 = vmatprep.mubr.msk.bf16.mxu1 %vm486_vm2, %v979_v4  ;;  %v1389_v4 = vrot.slane %v5262_v16, 1  ;;  %3840 = vperm.xlu0 %5195, %v3682_v34   ;;  %v3004_v14 = vsel %vm2897_vm6, %v2994_v36, %v3003_v32  ;;  %v3024_v34 = vshrl.u32 %v5836_v10, 16  ;;  %v1395_v16 = vrot.slane %v5265_v56, 1 }
  0xe6   : > { %3845 = vperm.xlu1 %5196, %v3683_v63   ;;  %v1397_v63 = vrot.slane %v5266_v49, 1  ;;  %v3038_v36 = vrot.slane %v3036_v41, 3  ;;  %v5269_v41 = vld [vmem:[%s5339_s28 + $0x58] sm:$0xff]  }
  0xe7   : > { %4820 = vmatmul.mubr.msk.bf16.gmra.mrb[8].mxu0 %vm486_vm2, %v2959_v42  ;;  %v1390_v42 = vsel %vm944_vm5, %v1387_v25, %v1389_v4  ;;  %v3021_v25 = vor.u32 %v3020_v11, %v3017_v58  ;;  %v1403_v56 = vrot.slane %v5269_v41, 1  ;;  %v1806_v41 = vshrl.u32 %v5634_v57, 16 }
  0xe8   : > { %4823 = vmatprep.mubr.msk.bf16.mxu0 %vm486_vm2, %v2968_v45  ;;  %v3686_v45 = vld [vmem:[%s6353_s2 + $0x110] sm:$0xff] }
  0xe9   : > { %3850 = vperm.xlu0 %5195, %v3684_v30  }
  0xea   : > { %3855 = vperm.xlu1 %5196, %v3685_v29   ;;  %v3051_v29 = vshrl.u32 %v5870_v48, 16 }
  0xec   : > { %4654 = vmatmul.mubr.msk.bf16.gmra.mrb[32].mxu1 %vm486_vm2, %v981_v20  ;;  %v3011_v20 = vrot.slane %v3009_v43, 3  ;;  %v1398_v43 = vsel %vm944_vm5, %v1395_v16, %v1397_v63  ;;  %v3053_v11 = vrot.slane %v3051_v29, 2 }
  0xed   : > { %4659 = vmatprep.mubr.msk.bf16.mxu1 %vm486_vm2, %v1386_v19  ;;  %v1393_v19 = vrot.slane %v5264_v0, 1  ;;  %3860 = vperm.xlu0 %5195, %v3686_v45   ;;  %v3054_v45 = vshll.u32 %v5870_v48, 16  ;;  %v5268_v0 = vld [vmem:[%s5339_s28 + $0x50] sm:$0xff]  }
  0xee   : > { %v3012_v6 = vor.u32 %v3011_v20, %v3008_v27  ;;  %3865 = vperm.xlu1 %5196, %v3687_v33   ;;  %v3047_v20 = vrot.slane %v3045_v9, 3 }
  0xef   : > { %4824 = vmatmul.mubr.msk.bf16.gmra.mrb[12].mxu0 %vm486_vm2, %v2977_v39  ;;  %v1394_v61 = vsel %vm944_vm5, %v1391_v62, %v1393_v19  ;;  %v3033_v39 = vshrl.u32 %v5841_v44, 16  ;;  %v3056_v33 = vrot.slane %v3054_v45, 3  ;;  %v3350_v45 = vrot.slane %v5712_v50, 3 }
  0xf0   : > { %4827 = vmatprep.mubr.msk.bf16.mxu0 %vm486_vm2, %v2986_v24  ;;  %v3026_v24 = vrot.slane %v3024_v34, 2  ;;  %v3022_v30 = vsel %vm2897_vm6, %v3012_v6, %v3021_v25  ;;  %v3352_v50 = vrot.slane %v5724_v53, 3 }
  0xf2   : > { %v3030_v18 = vor.u32 %v3029_v54, %v3026_v24  ;;  %v1405_v54 = vrot.slane %v5615_v55, 1 }
  0xf4   : > { %4660 = vmatmul.mubr.msk.bf16.vlgmr.msra.gmra.mrb[0].mxu1 %vm486_vm2, %v1388_v51  ;;  %v3035_v51 = vrot.slane %v3033_v39, 2  ;;  %v3338_v39 = vld [vmem:[%s5339_s28 + $0x10] sm:$0x8] }
  0xf5   : > { %4663 = vmatprep.mubr.msk.bf16.mxu1 %vm486_vm2, %v1390_v42  ;;  %4886 = vmatpush3.bf16.msra.mxu1 %v5321_v2  ;;  %v1392_v2 = vsel %vm944_vm5, %v1389_v4, %v1391_v62  ;;  %v3013_v4 = vsel %vm2897_vm6, %v3003_v32, %v3012_v6  ;;  %v1396_v42 = vsel %vm944_vm5, %v1393_v19, %v1395_v16  ;;  %v3042_v32 = vshrl.u32 %v5866_v17, 16 }
  0xf6   : > { %v3039_v40 = vor.u32 %v3038_v36, %v3035_v51  ;;  %v1399_v62 = vrot.slane %v5267_v23, 1  ;;  %v1401_v19 = vrot.slane %v5268_v0, 1  ;;  %v1406_v36 = vsel %vm944_vm5, %v1403_v56, %v1405_v54 }
  0xf7   : > { %4828 = vmatmul.mubr.msk.bf16.gmra.mrb[16].mxu0 %vm486_vm2, %v2995_v37  ;;  %v3031_v37 = vsel %vm2897_vm6, %v3021_v25, %v3030_v18  ;;  %v3044_v27 = vrot.slane %v3042_v32, 2  ;;  %v3057_v25 = vor.u32 %v3056_v33, %v3053_v11  ;;  %v1409_v32 = vrot.slane %v5640_v60, 1 }
  0xf8   : > { %4831 = vmatprep.mubr.msk.bf16.mxu0 %vm486_vm2, %v3004_v14  ;;  %v6093_v14 = vld [vmem:[%s5339_s28 + $0xa0] ss:$0 sps:$4 sm:$0x77]   ;;  %v3040_v58 = vsel %vm2897_vm6, %v3030_v18, %v3039_v40  ;;  %v3346_v18 = vrot.slane %v5695_v38, 3  ;;  %v3348_v38 = vrot.slane %v5708_v46, 3  ;;  %v1411_v23 = vrot.slane %v5652_v7, 1 }
  0xf9   : > { %v3048_v6 = vor.u32 %v3047_v20, %v3044_v27  ;;  %v3060_v34 = vshrl.u32 %v6093_v14, 16  ;;  %v3063_v35 = vshll.u32 %v6093_v14, 16  ;;  %v3354_v0 = vrot.slane %v5730_v28, 3 }
  0xfa   : > { %v3351_v27 = vsel %vm3344_vm7, %v3348_v38, %v3350_v45  ;;  %v1412_v46 = vsel %vm944_vm5, %v1409_v32, %v1411_v23  ;;  %v1417_v11 = vrot.slane %v5672_v26, 1  ;;  %v1797_v33 = vshrl.u32 %v5615_v55, 16 }
  0xfb   : > { %v3049_v16 = vsel %vm2897_vm6, %v3039_v40, %v3048_v6  ;;  %v3065_v24 = vrot.slane %v3063_v35, 3  ;;  %v3058_v49 = vsel %vm2897_vm6, %v3048_v6, %v3057_v25  ;;  %v3355_v53 = vsel %vm3344_vm7, %v3352_v50, %v3354_v0  ;;  %v5258_v6 = vld [vmem:[%s5339_s28 + $0x98] ss:$0 sps:$4 sm:$0x11]  }
  0xfc   : > { %4664 = vmatmul.mubr.msk.bf16.gmra.mrb[4].mxu1 %vm486_vm2, %v1392_v2  ;;  %v1400_v2 = vsel %vm944_vm5, %v1397_v63, %v1399_v62  ;;  %v4351_v63 = vcombine.low %v3338_v39, %v5682_v31  ;;  %v1799_v35 = vrot.slane %v1797_v33, 1  ;;  %v3358_v39 = vrot.slane %v5753_v1, 3 }
  0xfd   : > { %4667 = vmatprep.mubr.msk.bf16.mxu1 %vm486_vm2, %v1394_v61  ;;  %v1402_v61 = vsel %vm944_vm5, %v1399_v62, %v1401_v19  ;;  %v3349_v62 = vsel %vm3344_vm7, %v3346_v18, %v3348_v38 }
  0xff   : > { %4832 = vmatmul.mubr.msk.bf16.gmra.mrb[20].mxu0 %vm486_vm2, %v3013_v4  ;;  %v3062_v4 = vrot.slane %v3060_v34, 2 }
 0x100   : > { %4835 = vmatprep.mubr.msk.bf16.mxu0 %vm486_vm2, %v3022_v30  ;;  %v1404_v30 = vsel %vm944_vm5, %v1401_v19, %v1403_v56  ;;  %v1415_v19 = vrot.slane %v5668_v22, 1  ;;  %v1809_v56 = vshll.u32 %v5634_v57, 16 }
 0x101   : > { %v3066_v51 = vor.u32 %v3065_v24, %v3062_v4  ;;  %v1818_v24 = vshll.u32 %v5640_v60, 16 }
 0x102   : > { %v1418_v34 = vsel %vm944_vm5, %v1415_v19, %v1417_v11 }
 0x103   : > { %v3067_v31 = vsel %vm2897_vm6, %v3057_v25, %v3066_v51 }
 0x104   : > { %4668 = vmatmul.mubr.msk.bf16.gmra.mrb[8].mxu1 %vm486_vm2, %v1396_v42  ;;  %v3345_v42 = vrot.slane %v4351_v63, 3  ;;  %v1811_v63 = vrot.slane %v1809_v56, 2 }
 0x105   : > { %4671 = vmatprep.mubr.msk.bf16.mxu1 %vm486_vm2, %v1398_v43  ;;  %v1407_v43 = vrot.slane %v5634_v57, 1 }
 0x106   : > { %v3347_v9 = vsel %vm3344_vm7, %v3345_v42, %v3346_v18  ;;  %v3362_v42 = vrot.slane %v5772_v8, 3  ;;  %v1824_v18 = vshrl.u32 %v5652_v7, 16 }
 0x107   : > { %4836 = vmatmul.mubr.msk.bf16.gmra.mrb[24].mxu0 %vm486_vm2, %v3031_v37  ;;  %v1408_v40 = vsel %vm944_vm5, %v1405_v54, %v1407_v43  ;;  %v1410_v29 = vsel %vm944_vm5, %v1407_v43, %v1409_v32  ;;  %v1413_v37 = vrot.slane %v5656_v12, 1  ;;  %v1827_v43 = vshll.u32 %v5652_v7, 16 }
 0x108   : > { %4839 = vmatprep.mubr.msk.bf16.mxu0 %vm486_vm2, %v3040_v58  ;;  %v3353_v58 = vsel %vm3344_vm7, %v3350_v45, %v3352_v50 }
 0x109   : > { %v1414_v20 = vsel %vm944_vm5, %v1411_v23, %v1413_v37  ;;  %v1416_v28 = vsel %vm944_vm5, %v1413_v37, %v1415_v19  ;;  %v1829_v38 = vrot.slane %v1827_v43, 2  ;;  %v1842_v37 = vshrl.u32 %v5668_v22, 16 }
 0x10b   : > { %v1844_v19 = vrot.slane %v1842_v37, 1 }
 0x10c   : > { %4672 = vmatmul.mubr.msk.bf16.gmra.mrb[12].mxu1 %vm486_vm2, %v1400_v2  ;;  %v1800_v2 = vshll.u32 %v5615_v55, 16  ;;  %v1419_v55 = vrot.slane %v5258_v6, 1  ;;  %v1863_v6 = vshll.u32 %v5688_v59, 16 }
 0x10d   : > { %4675 = vmatprep.mubr.msk.bf16.mxu1 %vm486_vm2, %v1402_v61  ;;  %v3356_v61 = vrot.slane %v5749_v3, 3  ;;  %v1815_v3 = vshrl.u32 %v5640_v60, 16 }
 0x10e   : > { %v1802_v25 = vrot.slane %v1800_v2, 2  ;;  %v1420_v1 = vsel %vm944_vm5, %v1417_v11, %v1419_v55  ;;  %v3368_v11 = vrot.slane %v5805_v5, 3 }
 0x10f   : > { %4840 = vmatmul.mubr.msk.bf16.gmra.mrb[28].mxu0 %vm486_vm2, %v3049_v16  ;;  %v3357_v16 = vsel %vm3344_vm7, %v3354_v0, %v3356_v61  ;;  %v3359_v54 = vsel %vm3344_vm7, %v3356_v61, %v3358_v39  ;;  %v1817_v51 = vrot.slane %v1815_v3, 1  ;;  %v3378_v3 = vrot.slane %v5870_v48, 3 }
 0x110   : > { %4843 = vmatprep.mubr.msk.bf16.mxu0 %vm486_vm2, %v3058_v49  ;;  %v1803_v4 = vor.u32 %v1802_v25, %v1799_v35  ;;  %v1808_v49 = vrot.slane %v1806_v41, 1  ;;  %v3374_v41 = vrot.slane %v5841_v44, 3 }
 0x112   : > { %v1804_v57 = vsel %vm1697_vm3, %v5529_v15, %v1803_v4  ;;  %v1812_v60 = vor.u32 %v1811_v63, %v1808_v49  ;;  %v1836_v15 = vshll.u32 %v5656_v12, 16 }
 0x114   : > { %4676 = vmatmul.mubr.msk.bf16.gmra.mrb[16].mxu1 %vm486_vm2, %v1404_v30  ;;  %v3360_v30 = vrot.slane %v5767_v13, 3  ;;  %v1833_v13 = vshrl.u32 %v5656_v12, 16  ;;  %v1813_v8 = vsel %vm1697_vm3, %v1803_v4, %v1812_v60  ;;  %v1838_v23 = vrot.slane %v1836_v15, 2 }
 0x115   : > { %4679 = vmatprep.mubr.msk.bf16.mxu1 %vm486_vm2, %v1406_v36  ;;  %v1820_v36 = vrot.slane %v1818_v24, 2 }
 0x116   : > { %v1835_v45 = vrot.slane %v1833_v13, 1 }
 0x117   : > { %4844 = vmatmul.mubr.msk.bf16.gmra.mrb[32].mxu0 %vm486_vm2, %v3067_v31  ;;  %v3361_v31 = vsel %vm3344_vm7, %v3358_v39, %v3360_v30  ;;  %v1821_v32 = vor.u32 %v1820_v36, %v1817_v51  ;;  %v3372_v39 = vrot.slane %v5836_v10, 3  ;;  %v3376_v10 = vrot.slane %v5866_v17, 3 }
 0x118   : > { %4849 = vmatprep.mubr.msk.bf16.mxu0 %vm486_vm2, %v3347_v9  ;;  %v3363_v9 = vsel %vm3344_vm7, %v3360_v30, %v3362_v42  ;;  %v1839_v50 = vor.u32 %v1838_v23, %v1835_v45 }
 0x119   : > { %v1822_v7 = vsel %vm1697_vm3, %v1812_v60, %v1821_v32  ;;  %v3377_v44 = vsel %vm3344_vm7, %v3374_v41, %v3376_v10  ;;  %v3379_v24 = vsel %vm3344_vm7, %v3376_v10, %v3378_v3 }
 0x11c   : > { %4680 = vmatmul.mubr.msk.bf16.gmra.mrb[20].mxu1 %vm486_vm2, %v1408_v40  ;;  %v1826_v40 = vrot.slane %v1824_v18, 1  ;;  %v3701_v18 = vpop.permute.xlu1 %3700 }
 0x11d   : > { %4683 = vmatprep.mubr.msk.bf16.mxu1 %vm486_vm2, %v1410_v29  ;;  %v3364_v29 = vrot.slane %v5785_v47, 3  ;;  %v1851_v47 = vshrl.u32 %v5672_v26, 16 }
 0x11e   : > { %v1830_v12 = vor.u32 %v1829_v38, %v1826_v40 }
 0x11f   : > { %4850 = vmatmul.mubr.msk.bf16.vlgmr.msra.gmra.mrb[0].mxu0 %vm486_vm2, %v3349_v62  ;;  %v3366_v62 = vrot.slane %v5790_v52, 3  ;;  %v1853_v33 = vrot.slane %v1851_v47, 1 }
 0x120   : > { %4853 = vmatprep.mubr.msk.bf16.mxu0 %vm486_vm2, %v3351_v27  ;;  %v1845_v27 = vshll.u32 %v5668_v22, 16  ;;  %v1831_v52 = vsel %vm1697_vm3, %v1821_v32, %v1830_v12  ;;  %v1840_v22 = vsel %vm1697_vm3, %v1830_v12, %v1839_v50 }
 0x121   : > { %v3367_v0 = vsel %vm3344_vm7, %v3364_v29, %v3366_v62  ;;  %v3369_v61 = vsel %vm3344_vm7, %v3366_v62, %v3368_v11 }
 0x124   : > { %4684 = vmatmul.mubr.msk.bf16.gmra.mrb[24].mxu1 %vm486_vm2, %v1412_v46  ;;  %v3365_v46 = vsel %vm3344_vm7, %v3362_v42, %v3364_v29  ;;  %v3691_v42 = vpop.permute.xlu0 %3690 }
 0x125   : > { %4687 = vmatprep.mubr.msk.bf16.mxu1 %vm486_vm2, %v1414_v20  ;;  %v1854_v20 = vshll.u32 %v5672_v26, 16  ;;  %v3706_v13 = vpop.permute.xlu1 %3705 }
 0x127   : > { %4854 = vmatmul.mubr.msk.bf16.gmra.mrb[4].mxu0 %vm486_vm2, %v3353_v58  ;;  %v1847_v58 = vrot.slane %v1845_v27, 2  ;;  %v1856_v2 = vrot.slane %v1854_v20, 2 }
 0x128   : > { %4857 = vmatprep.mubr.msk.bf16.mxu0 %vm486_vm2, %v3355_v53  ;;  %v3370_v53 = vrot.slane %v5814_v21, 3  ;;  %v1865_v21 = vrot.slane %v1863_v6, 2 }
 0x129   : > { %v1848_v26 = vor.u32 %v1847_v58, %v1844_v19  ;;  %v3716_v29 = vpop.permute.xlu1 %3715 }
 0x12a   : > { %v3371_v5 = vsel %vm3344_vm7, %v3368_v11, %v3370_v53  ;;  %v3373_v56 = vsel %vm3344_vm7, %v3370_v53, %v3372_v39 }
 0x12b   : > { %v1849_v35 = vsel %vm1697_vm3, %v1839_v50, %v1848_v26 }
 0x12c   : > { %4688 = vmatmul.mubr.msk.bf16.gmra.mrb[28].mxu1 %vm486_vm2, %v1416_v28  ;;  %v1860_v28 = vshrl.u32 %v5688_v59, 16 }
 0x12d   : > { %4691 = vmatprep.mubr.msk.bf16.mxu1 %vm486_vm2, %v1418_v34  ;;  %v1857_v34 = vor.u32 %v1856_v2, %v1853_v33 }
 0x12e   : > { %v1862_v25 = vrot.slane %v1860_v28, 1 }
 0x12f   : > { %4858 = vmatmul.mubr.msk.bf16.gmra.mrb[8].mxu0 %vm486_vm2, %v3357_v16  ;;  %v1858_v55 = vsel %vm1697_vm3, %v1848_v26, %v1857_v34  ;;  %v3375_v16 = vsel %vm3344_vm7, %v3372_v39, %v3374_v41  ;;  %v6250_v12 = vpop.permute.xlu1 %3725 }
 0x130   : > { %4861 = vmatprep.mubr.msk.bf16.mxu0 %vm486_vm2, %v3359_v54  ;;  %v1866_v59 = vor.u32 %v1865_v21, %v1862_v25  ;;  %v3380_v54 = vrot.slane %v6093_v14, 3  ;;  %v3696_v14 = vpop.permute.xlu0 %3695 }
 0x132   : > { %v1867_v4 = vsel %vm1697_vm3, %v1857_v34, %v1866_v59 }
 0x134   : > { %4692 = vmatmul.mubr.msk.bf16.gmra.mrb[32].mxu1 %vm486_vm2, %v1420_v1  ;;  %v3381_v1 = vsel %vm3344_vm7, %v3378_v3, %v3380_v54 }
 0x135   : > { %4717 = vmatprep.mubr.msk.bf16.mxu1 %vm486_vm2, %v1804_v57 }
 0x137   : > { %4862 = vmatmul.mubr.msk.bf16.gmra.mrb[12].mxu0 %vm486_vm2, %v3361_v31 }
 0x138   : > { %4865 = vmatprep.mubr.msk.bf16.mxu0 %vm486_vm2, %v3363_v9  ;;  %v3711_v9 = vpop.permute.xlu0 %3710 }
 0x13c   : > { %4718 = vmatmul.mubr.msk.bf16.vlgmr.msra.gmra.mrb[20].mxu1 %vm486_vm2, %v1813_v8 }
 0x13d   : > { %4721 = vmatprep.mubr.msk.bf16.mxu1 %vm486_vm2, %v1822_v7  ;;  %v6242_v7 = vpop.permute.xlu0 %3720 }
 0x13f   : > { %4866 = vmatmul.mubr.msk.bf16.gmra.mrb[16].mxu0 %vm486_vm2, %v3365_v46  ;;  %v6256_v46 = vpop.permute.xlu1 %3735 }
 0x140   : > { %4869 = vmatprep.mubr.msk.bf16.mxu0 %vm486_vm2, %v3367_v0 }
 0x141   : > { %v6254_v27 = vpop.permute.xlu0 %3730 }
 0x144   : > { %4722 = vmatmul.mubr.msk.bf16.gmra.mrb[24].mxu1 %vm486_vm2, %v1831_v52  ;;  %v6260_v52 = vpop.permute.xlu1 %3745 }
 0x145   : > { %4725 = vmatprep.mubr.msk.bf16.mxu1 %vm486_vm2, %v1840_v22  ;;  %v6258_v50 = vpop.permute.xlu0 %3740 }
 0x147   : > { %4870 = vmatmul.mubr.msk.bf16.gmra.mrb[20].mxu0 %vm486_vm2, %v3369_v61 }
 0x148   : > { %4873 = vmatprep.mubr.msk.bf16.mxu0 %vm486_vm2, %v3371_v5  ;;  %v6264_v5 = vpop.permute.xlu1 %3755 }
 0x149   : > { %v6262_v33 = vpop.permute.xlu0 %3750 }
 0x14c   : > { %4726 = vmatmul.mubr.msk.bf16.gmra.mrb[28].mxu1 %vm486_vm2, %v1849_v35 }
 0x14d   : > { %4729 = vmatprep.mubr.msk.bf16.mxu1 %vm486_vm2, %v1858_v55 }
 0x14f   : > { %4874 = vmatmul.mubr.msk.bf16.gmra.mrb[24].mxu0 %vm486_vm2, %v3373_v56 }
 0x150   : > { %4877 = vmatprep.mubr.msk.bf16.mxu0 %vm486_vm2, %v3375_v16  ;;  %v6266_v16 = vpop.permute.xlu0 %3760 }
 0x154   : > { %4730 = vmatmul.mubr.msk.bf16.gmra.mrb[32].mxu1 %vm486_vm2, %v1867_v4 }
 0x157   : > { %4878 = vmatmul.mubr.msk.bf16.gmra.mrb[28].mxu0 %vm486_vm2, %v3377_v44 }
 0x158   : > { %4881 = vmatprep.mubr.msk.bf16.mxu0 %vm486_vm2, %v3379_v24 }
 0x15f   : > { %4882 = vmatmul.mubr.msk.bf16.gmra.mrb[32].mxu0 %vm486_vm2, %v3381_v1 }
 0x1c7   : > { %v4661_v49 = vpop.f32.mrb[0].mxu1 }
 0x1c8   : > { %v1512_v17 = vpop.f32.mrb[1].mxu1 }
 0x1c9   : > { %v4662_v63 = vpop.f32.mrb[2].mxu1 }
 0x1ca   : > { %v1515_v48 = vpop.f32.mrb[3].mxu1 }
 0x1cf   : > { %v4665_v30 = vpop.f32.mrb[4].mxu1 }
 0x1d0   : > { %v1528_v57 = vpop.f32.mrb[5].mxu1 }
 0x1d1   : > { %v4666_v51 = vpop.f32.mrb[6].mxu1 }
 0x1d2   : > { %v1531_v36 = vpop.f32.mrb[7].mxu1 }
 0x1d7   : > { %v6226_v60 = vpop.f32.mrb[8].mxu1 }
 0x1d8   : > { %v6228_v43 = vpop.f32.mrb[9].mxu1 }
 0x1d9   : > { %v6230_v31 = vpop.f32.mrb[10].mxu1 }
 0x1da   : > { %v6232_v32 = vpop.f32.mrb[11].mxu1 }
 0x1df   : > { %v6234_v15 = vpop.f32.mrb[12].mxu1 }
 0x1e0   : > { %v6236_v8 = vpop.f32.mrb[13].mxu1 }
 0x1e1   : > { %v6238_v40 = vpop.f32.mrb[14].mxu1 }
 0x1e2   : > { %v6240_v38 = vpop.f32.mrb[15].mxu1 }
 0x1e7   : > { %v6244_v45 = vpop.f32.mrb[16].mxu1 }
 0x1e8   : > { %v6246_v23 = vpop.f32.mrb[17].mxu1 }
 0x1e9   : > { %v6248_v62 = vpop.f32.mrb[18].mxu1 }
 0x1ea   : > { %v6252_v37 = vpop.f32.mrb[19].mxu1 }
 0x1f2   : > { %v4851_v47 = vpop.f32.mrb[0].mxu0 }
 0x1f3   : > { %v4887_v20 = vadd.f32 %v4851_v47, %v4661_v49  ;;  %v3473_v0 = vpop.f32.mrb[1].mxu0 }
 0x1f4   : > { %v4888_v19 = vadd.f32 %v3473_v0, %v1512_v17  ;;  %v4852_v58 = vpop.f32.mrb[2].mxu0 }
 0x1f5   : > { %v4889_v11 = vadd.f32 %v4852_v58, %v4662_v63  ;;  %v3476_v22 = vpop.f32.mrb[3].mxu0  ;;  %v3948_v26 = vmul.f32 %v4887_v20, %v4887_v20  ;;  %v3870_v35 = vmul.f32 %v4887_v20, %v3701_v18 }
 0x1f6   : > { %v3946_v2 = vmul.f32 %v4888_v19, %v4888_v19  ;;  %v4890_v53 = vadd.f32 %v3476_v22, %v1515_v48  ;;  %v3868_v28 = vmul.f32 %v4888_v19, %v3691_v42 }
 0x1f7   : > { %v3949_v34 = vmul.f32 %v4889_v11, %v4889_v11  ;;  %v3984_v41 = vmul.f32 %v3948_v26, %v3701_v18  ;;  %v3871_v4 = vmul.f32 %v4889_v11, %v3706_v13  ;;  %v6270_v11 = vpop.permute.xlu0 %3770 }
 0x1f8   : > { %v3869_v6 = vmul.f32 %v4890_v53, %v3696_v14  ;;  %v3947_v61 = vmul.f32 %v4890_v53, %v4890_v53  ;;  %v3982_v25 = vmul.f32 %v3946_v2, %v3691_v42 }
 0x1f9   : > { %v3985_v54 = vmul.f32 %v3949_v34, %v3706_v13 }
 0x1fa   : > { %v3904_v21 = vadd.f32 %v3869_v6, %v3868_v28  ;;  %v3983_v39 = vmul.f32 %v3947_v61, %v3696_v14  ;;  %v4855_v55 = vpop.f32.mrb[4].mxu0  ;;  %v6268_v14 = vpop.permute.xlu1 %3765 }
 0x1fb   : > { %v4891_v59 = vadd.f32 %v4855_v55, %v4665_v30  ;;  %v3489_v56 = vpop.f32.mrb[5].mxu0 }
 0x1fc   : > { %v3905_v10 = vadd.f32 %v3904_v21, %v3870_v35  ;;  %v4018_v3 = vadd.f32 %v3983_v39, %v3982_v25  ;;  %v4892_v44 = vadd.f32 %v3489_v56, %v1528_v57  ;;  %v4856_v24 = vpop.f32.mrb[6].mxu0  ;;  %v6283_v56 = vpop.permute.xlu0 %3780 }
 0x1fd   : > { %v4893_v1 = vadd.f32 %v4856_v24, %v4666_v51  ;;  %v3492_v49 = vpop.f32.mrb[7].mxu0  ;;  %v3952_v0 = vmul.f32 %v4891_v59, %v4891_v59  ;;  %v3874_v57 = vmul.f32 %v4891_v59, %v6242_v7 }
 0x1fe   : > { %v4019_v17 = vadd.f32 %v4018_v3, %v3984_v41  ;;  %v3872_v63 = vmul.f32 %v4892_v44, %v3711_v9  ;;  %v3906_v48 = vadd.f32 %v3905_v10, %v3871_v4  ;;  %v3950_v42 = vmul.f32 %v4892_v44, %v4892_v44  ;;  %v6277_v21 = vpop.permute.xlu1 %3775 }
 0x1ff   : > { %v4894_v47 = vadd.f32 %v3492_v49, %v1531_v36  ;;  %v3953_v22 = vmul.f32 %v4893_v1, %v4893_v1  ;;  %v3875_v61 = vmul.f32 %v4893_v1, %v6250_v12 }
 0x200   : > { %v3907_v18 = vadd.f32 %v3906_v48, %v3872_v63  ;;  %v3986_v30 = vmul.f32 %v3950_v42, %v3711_v9  ;;  %v4020_v20 = vadd.f32 %v4019_v17, %v3985_v54  ;;  %v3988_v9 = vmul.f32 %v3952_v0, %v6242_v7 }
 0x201   : > { %v3873_v19 = vmul.f32 %v4894_v47, %v3716_v29  ;;  %v3951_v58 = vmul.f32 %v4894_v47, %v4894_v47  ;;  %v3989_v41 = vmul.f32 %v3953_v22, %v6250_v12 }
 0x202   : > { %v4021_v13 = vadd.f32 %v4020_v20, %v3986_v30  ;;  %v4859_v51 = vpop.f32.mrb[8].mxu0  ;;  %v6290_v48 = vpop.permute.xlu1 %3785 }
 0x203   : > { %v3908_v2 = vadd.f32 %v3907_v18, %v3873_v19  ;;  %v3987_v53 = vmul.f32 %v3951_v58, %v3716_v29  ;;  %v4895_v26 = vadd.f32 %v4859_v51, %v6226_v60  ;;  %v3505_v36 = vpop.f32.mrb[9].mxu0  ;;  %v6295_v58 = vpop.permute.xlu0 %3790 }
 0x204   : > { %v4896_v28 = vadd.f32 %v3505_v36, %v6228_v43  ;;  %v4860_v6 = vpop.f32.mrb[10].mxu0 }
 0x205   : > { %v3909_v34 = vadd.f32 %v3908_v2, %v3874_v57  ;;  %v4022_v35 = vadd.f32 %v4021_v13, %v3987_v53  ;;  %v3508_v25 = vpop.f32.mrb[11].mxu0  ;;  %v4897_v29 = vadd.f32 %v4860_v6, %v6230_v31  ;;  %v3956_v10 = vmul.f32 %v4895_v26, %v4895_v26 }
 0x206   : > { %v3876_v39 = vmul.f32 %v4896_v28, %v6254_v27  ;;  %v3954_v55 = vmul.f32 %v4896_v28, %v4896_v28  ;;  %v4898_v60 = vadd.f32 %v3508_v25, %v6232_v32  ;;  %v3878_v54 = vmul.f32 %v4895_v26, %v6258_v50 }
 0x207   : > { %v4023_v43 = vadd.f32 %v4022_v35, %v3988_v9  ;;  %v3910_v59 = vadd.f32 %v3909_v34, %v3875_v61  ;;  %v3957_v1 = vmul.f32 %v4897_v29, %v4897_v29  ;;  %v3992_v47 = vmul.f32 %v3956_v10, %v6258_v50  ;;  %v6305_v34 = vpop.permute.xlu1 %3795 }
 0x208   : > { %v3990_v7 = vmul.f32 %v3954_v55, %v6254_v27  ;;  %v3877_v4 = vmul.f32 %v4898_v60, %v6256_v46  ;;  %v3955_v24 = vmul.f32 %v4898_v60, %v4898_v60  ;;  %v3879_v18 = vmul.f32 %v4897_v29, %v6260_v52  ;;  %v6310_v29 = vpop.permute.xlu0 %3800 }
 0x209   : > { %v3911_v3 = vadd.f32 %v3910_v59, %v3876_v39  ;;  %v4024_v44 = vadd.f32 %v4023_v43, %v3989_v41 }
 0x20a   : > { %v4863_v31 = vpop.f32.mrb[12].mxu0  ;;  %v3991_v12 = vmul.f32 %v3955_v24, %v6256_v46 }
 0x20b   : > { %v4025_v49 = vadd.f32 %v4024_v44, %v3990_v7  ;;  %v3912_v32 = vadd.f32 %v3911_v3, %v3877_v4  ;;  %v4899_v17 = vadd.f32 %v4863_v31, %v6234_v15  ;;  %v3521_v63 = vpop.f32.mrb[13].mxu0 }
 0x20c   : > { %v4900_v27 = vadd.f32 %v3521_v63, %v6236_v8  ;;  %v4864_v42 = vpop.f32.mrb[14].mxu0  ;;  %v3993_v8 = vmul.f32 %v3957_v1, %v6260_v52 }
 0x20d   : > { %v3913_v30 = vadd.f32 %v3912_v32, %v3878_v54  ;;  %v4026_v20 = vadd.f32 %v4025_v49, %v3991_v12  ;;  %v3524_v0 = vpop.f32.mrb[15].mxu0  ;;  %v4901_v15 = vadd.f32 %v4864_v42, %v6238_v40  ;;  %v3960_v28 = vmul.f32 %v4899_v17, %v4899_v17 }
 0x20e   : > { %v3880_v46 = vmul.f32 %v4900_v27, %v6262_v33  ;;  %v3958_v57 = vmul.f32 %v4900_v27, %v4900_v27  ;;  %v4902_v13 = vadd.f32 %v3524_v0, %v6240_v38  ;;  %v3882_v40 = vmul.f32 %v4899_v17, %v6266_v16 }
 0x20f   : > { %v4719_v19 = vpop.f32.mrb[20].mxu1  ;;  %v4027_v22 = vadd.f32 %v4026_v20, %v3992_v47  ;;  %v3914_v50 = vadd.f32 %v3913_v30, %v3879_v18  ;;  %v3961_v38 = vmul.f32 %v4901_v15, %v4901_v15  ;;  %v3996_v43 = vmul.f32 %v3960_v28, %v6266_v16  ;;  %v6321_v16 = vpop.permute.xlu1 %3805 }
 0x210   : > { %v2039_v51 = vpop.f32.mrb[21].mxu1  ;;  %v3994_v53 = vmul.f32 %v3958_v57, %v6262_v33  ;;  %v3881_v26 = vmul.f32 %v4902_v13, %v6264_v5  ;;  %v3959_v61 = vmul.f32 %v4902_v13, %v4902_v13  ;;  %v3883_v59 = vmul.f32 %v4901_v15, %v6268_v14 }
 0x211   : > { %v6301_v2 = vpop.f32.mrb[22].mxu1  ;;  %v3915_v6 = vadd.f32 %v3914_v50, %v3880_v46  ;;  %v4028_v9 = vadd.f32 %v4027_v22, %v3993_v8  ;;  %v3997_v1 = vmul.f32 %v3961_v38, %v6268_v14  ;;  %v3811_v14 = vpop.permute.xlu0 %3810 }
 0x212   : > { %v2042_v36 = vpop.f32.mrb[23].mxu1  ;;  %v4867_v35 = vpop.f32.mrb[16].mxu0  ;;  %v3995_v39 = vmul.f32 %v3959_v61, %v6264_v5 }
 0x213   : > { %v4029_v52 = vadd.f32 %v4028_v9, %v3994_v53  ;;  %v3916_v25 = vadd.f32 %v3915_v6, %v3881_v26  ;;  %v4903_v55 = vadd.f32 %v4867_v35, %v6244_v45  ;;  %v3537_v33 = vpop.f32.mrb[17].mxu0  ;;  %v3816_v28 = vpop.permute.xlu1 %3815 }
 0x214   : > { %v4904_v60 = vadd.f32 %v3537_v33, %v6246_v23  ;;  %v4868_v41 = vpop.f32.mrb[18].mxu0 }
 0x215   : > { %v3917_v7 = vadd.f32 %v3916_v25, %v3882_v40  ;;  %v4030_v4 = vadd.f32 %v4029_v52, %v3995_v39  ;;  %v3540_v10 = vpop.f32.mrb[19].mxu0  ;;  %v4905_v5 = vadd.f32 %v4868_v41, %v6248_v62  ;;  %v3964_v63 = vmul.f32 %v4903_v55, %v4903_v55  ;;  %v3821_v39 = vpop.permute.xlu0 %3820 }
 0x216   : > { %v3884_v44 = vmul.f32 %v4904_v60, %v6270_v11  ;;  %v3962_v24 = vmul.f32 %v4904_v60, %v4904_v60  ;;  %v4906_v45 = vadd.f32 %v3540_v10, %v6252_v37  ;;  %v3886_v37 = vmul.f32 %v4903_v55, %v6283_v56 }
 0x217   : > { %v4723_v3 = vpop.f32.mrb[24].mxu1  ;;  %v4031_v23 = vadd.f32 %v4030_v4, %v3996_v43  ;;  %v3918_v31 = vadd.f32 %v3917_v7, %v3883_v59  ;;  %v3965_v47 = vmul.f32 %v4905_v5, %v4905_v5  ;;  %v4000_v13 = vmul.f32 %v3964_v63, %v6283_v56 }
 0x218   : > { %v2055_v54 = vpop.f32.mrb[25].mxu1  ;;  %v3998_v32 = vmul.f32 %v3962_v24, %v6270_v11  ;;  %v3885_v12 = vmul.f32 %v4906_v45, %v6277_v21  ;;  %v3963_v62 = vmul.f32 %v4906_v45, %v4906_v45  ;;  %v3887_v8 = vmul.f32 %v4905_v5, %v6290_v48 }
 0x219   : > { %v6319_v49 = vpop.f32.mrb[26].mxu1  ;;  %v3919_v27 = vadd.f32 %v3918_v31, %v3884_v44  ;;  %v4032_v42 = vadd.f32 %v4031_v23, %v3997_v1  ;;  %v3826_v44 = vpop.permute.xlu1 %3825 }
 0x21a   : > { %v2058_v17 = vpop.f32.mrb[27].mxu1  ;;  %v4871_v18 = vpop.f32.mrb[20].mxu0  ;;  %v3999_v0 = vmul.f32 %v3963_v62, %v6277_v21 }
 0x21b   : > { %v4033_v30 = vadd.f32 %v4032_v42, %v3998_v32  ;;  %v3920_v20 = vadd.f32 %v3919_v27, %v3885_v12  ;;  %v4907_v46 = vadd.f32 %v4871_v18, %v4719_v19  ;;  %v3553_v57 = vpop.f32.mrb[21].mxu0  ;;  %v4001_v19 = vmul.f32 %v3965_v47, %v6290_v48 }
 0x21c   : > { %v4908_v15 = vadd.f32 %v3553_v57, %v2039_v51  ;;  %v4872_v11 = vpop.f32.mrb[22].mxu0 }
 0x21d   : > { %v3921_v22 = vadd.f32 %v3920_v20, %v3886_v37  ;;  %v4034_v50 = vadd.f32 %v4033_v30, %v3999_v0  ;;  %v3556_v53 = vpop.f32.mrb[23].mxu0  ;;  %v4909_v61 = vadd.f32 %v4872_v11, %v6301_v2  ;;  %v3968_v55 = vmul.f32 %v4907_v46, %v4907_v46 }
 0x21e   : > { %v3888_v6 = vmul.f32 %v4908_v15, %v6295_v58  ;;  %v3966_v9 = vmul.f32 %v4908_v15, %v4908_v15  ;;  %v4910_v40 = vadd.f32 %v3556_v53, %v2042_v36  ;;  %v3890_v43 = vmul.f32 %v4907_v46, %v6310_v29  ;;  %v3836_v15 = vpop.permute.xlu1 %3835 }
 0x21f   : > { %v4727_v26 = vpop.f32.mrb[28].mxu1  ;;  %v4035_v51 = vadd.f32 %v4034_v50, %v4000_v13  ;;  %v3922_v38 = vadd.f32 %v3921_v22, %v3887_v8  ;;  %v3969_v2 = vmul.f32 %v4909_v61, %v4909_v61  ;;  %v4004_v5 = vmul.f32 %v3968_v55, %v6310_v29 }
 0x220   : > { %v2071_v21 = vpop.f32.mrb[29].mxu1  ;;  %v4002_v56 = vmul.f32 %v3966_v9, %v6295_v58  ;;  %v3889_v52 = vmul.f32 %v4910_v40, %v6305_v34  ;;  %v3967_v41 = vmul.f32 %v4910_v40, %v4910_v40  ;;  %v3891_v45 = vmul.f32 %v4909_v61, %v6321_v16 }
 0x221   : > { %v4728_v35 = vpop.f32.mrb[30].mxu1  ;;  %v3923_v33 = vadd.f32 %v3922_v38, %v3888_v6  ;;  %v4036_v60 = vadd.f32 %v4035_v51, %v4001_v19 }
 0x222   : > { %v2074_v25 = vpop.f32.mrb[31].mxu1  ;;  %v4875_v36 = vpop.f32.mrb[24].mxu0  ;;  %v4003_v48 = vmul.f32 %v3967_v41, %v6305_v34 }
 0x223   : > { %v4037_v59 = vadd.f32 %v4036_v60, %v4002_v56  ;;  %v3924_v7 = vadd.f32 %v3923_v33, %v3889_v52  ;;  %v4911_v4 = vadd.f32 %v4875_v36, %v4723_v3  ;;  %v3569_v10 = vpop.f32.mrb[25].mxu0  ;;  %v3831_v34 = vpop.permute.xlu0 %3830  ;;  %v4005_v3 = vmul.f32 %v3969_v2, %v6321_v16 }
 0x224   : > { %v4912_v58 = vadd.f32 %v3569_v10, %v2055_v54  ;;  %v4876_v24 = vpop.f32.mrb[26].mxu0 }
 0x225   : > { %v3925_v1 = vadd.f32 %v3924_v7, %v3890_v43  ;;  %v4038_v23 = vadd.f32 %v4037_v59, %v4003_v48  ;;  %v3572_v31 = vpop.f32.mrb[27].mxu0  ;;  %v4913_v27 = vadd.f32 %v4876_v24, %v6319_v49  ;;  %v3972_v20 = vmul.f32 %v4911_v4, %v4911_v4  ;;  %v3846_v43 = vpop.permute.xlu1 %3845 }
 0x226   : > { %v3892_v12 = vmul.f32 %v4912_v58, %v3811_v14  ;;  %v3970_v63 = vmul.f32 %v4912_v58, %v4912_v58  ;;  %v4914_v42 = vadd.f32 %v3572_v31, %v2058_v17  ;;  %v3894_v11 = vmul.f32 %v4911_v4, %v3821_v39 }
 0x227   : > { %v4731_v32 = vpop.f32.mrb[32].mxu1  ;;  %v4039_v37 = vadd.f32 %v4038_v23, %v4004_v5  ;;  %v3926_v54 = vadd.f32 %v3925_v1, %v3891_v45  ;;  %v3973_v13 = vmul.f32 %v4913_v27, %v4913_v27  ;;  %v3841_v9 = vpop.permute.xlu0 %3840  ;;  %v4008_v61 = vmul.f32 %v3972_v20, %v3821_v39 }
 0x228   : > { %v2087_v62 = vpop.f32.mrb[33].mxu1  ;;  %v4006_v18 = vmul.f32 %v3970_v63, %v3811_v14  ;;  %v3893_v29 = vmul.f32 %v4914_v42, %v3816_v28  ;;  %v3971_v57 = vmul.f32 %v4914_v42, %v4914_v42  ;;  %v3895_v14 = vmul.f32 %v4913_v27, %v3826_v44 }
 0x229   : > { %v4732_v47 = vpop.f32.mrb[34].mxu1  ;;  %v3927_v0 = vadd.f32 %v3926_v54, %v3892_v12  ;;  %v4040_v46 = vadd.f32 %v4039_v37, %v4005_v3  ;;  %v4009_v33 = vmul.f32 %v3973_v13, %v3826_v44  ;;  %v3856_v63 = vpop.permute.xlu1 %3855 }
 0x22a   : > { %v2090_v30 = vpop.f32.mrb[35].mxu1  ;;  %v4879_v8 = vpop.f32.mrb[28].mxu0  ;;  %v4007_v22 = vmul.f32 %v3971_v57, %v3816_v28 }
 0x22b   : > { %v4041_v49 = vadd.f32 %v4040_v46, %v4006_v18  ;;  %v3928_v17 = vadd.f32 %v3927_v0, %v3893_v29  ;;  %v4915_v50 = vadd.f32 %v4879_v8, %v4727_v26  ;;  %v3585_v53 = vpop.f32.mrb[29].mxu0  ;;  %v3851_v4 = vpop.permute.xlu0 %3850 }
 0x22c   : > { %v4916_v16 = vadd.f32 %v3585_v53, %v2071_v21  ;;  %v4880_v6 = vpop.f32.mrb[30].mxu0 }
 0x22d   : > { %v3929_v40 = vadd.f32 %v3928_v17, %v3894_v11  ;;  %v4042_v19 = vadd.f32 %v4041_v49, %v4007_v22  ;;  %v3588_v51 = vpop.f32.mrb[31].mxu0  ;;  %v4917_v52 = vadd.f32 %v4880_v6, %v4728_v35  ;;  %v3976_v26 = vmul.f32 %v4915_v50, %v4915_v50  ;;  %v3866_v17 = vpop.permute.xlu1 %3865 }
 0x22e   : > { %v3896_v38 = vmul.f32 %v4916_v16, %v3831_v34  ;;  %v3974_v56 = vmul.f32 %v4916_v16, %v4916_v16  ;;  %v4918_v55 = vadd.f32 %v3588_v51, %v2074_v25  ;;  %v3898_v7 = vmul.f32 %v4915_v50, %v3841_v9 }
 0x22f   : > { %v4043_v60 = vadd.f32 %v4042_v19, %v4008_v61  ;;  %v3930_v41 = vadd.f32 %v3929_v40, %v3895_v14  ;;  %v3977_v39 = vmul.f32 %v4917_v52, %v4917_v52  ;;  %v4012_v45 = vmul.f32 %v3976_v26, %v3841_v9  ;;  %v3861_v0 = vpop.permute.xlu0 %3860 }
 0x230   : > { %v4010_v2 = vmul.f32 %v3974_v56, %v3831_v34  ;;  %v3897_v28 = vmul.f32 %v4918_v55, %v3836_v15  ;;  %v3975_v59 = vmul.f32 %v4918_v55, %v4918_v55  ;;  %v3899_v1 = vmul.f32 %v4917_v52, %v3846_v43 }
 0x231   : > { %v3931_v36 = vadd.f32 %v3930_v41, %v3896_v38  ;;  %v4044_v21 = vadd.f32 %v4043_v60, %v4009_v33  ;;  %v4013_v37 = vmul.f32 %v3977_v39, %v3846_v43 }
 0x232   : > { %v4883_v48 = vpop.f32.mrb[32].mxu0  ;;  %v4011_v24 = vmul.f32 %v3975_v59, %v3836_v15 }
 0x233   : > { %v4045_v10 = vadd.f32 %v4044_v21, %v4010_v2  ;;  %v3932_v58 = vadd.f32 %v3931_v36, %v3897_v28  ;;  %v4919_v5 = vadd.f32 %v4883_v48, %v4731_v32  ;;  %v3601_v35 = vpop.f32.mrb[33].mxu0 }
 0x234   : > { %v4920_v25 = vadd.f32 %v3601_v35, %v2087_v62  ;;  %v4884_v44 = vpop.f32.mrb[34].mxu0 }
 0x235   : > { %v3933_v23 = vadd.f32 %v3932_v58, %v3898_v7  ;;  %v4046_v31 = vadd.f32 %v4045_v10, %v4011_v24  ;;  %v3604_v12 = vpop.f32.mrb[35].mxu0  ;;  %v4921_v34 = vadd.f32 %v4884_v44, %v4732_v47  ;;  %v3980_v32 = vmul.f32 %v4919_v5, %v4919_v5 }
 0x236   : > { %v3900_v27 = vmul.f32 %v4920_v25, %v3851_v4  ;;  %v3978_v42 = vmul.f32 %v4920_v25, %v4920_v25  ;;  %v4922_v3 = vadd.f32 %v3604_v12, %v2090_v30  ;;  %v3902_v15 = vmul.f32 %v4919_v5, %v3861_v0 }
 0x237   : > { %v4047_v54 = vadd.f32 %v4046_v31, %v4012_v45  ;;  %v3934_v18 = vadd.f32 %v3933_v23, %v3899_v1  ;;  %v3981_v13 = vmul.f32 %v4921_v34, %v4921_v34  ;;  %v4016_v22 = vmul.f32 %v3980_v32, %v3861_v0 }
 0x238   : > { %v4014_v29 = vmul.f32 %v3978_v42, %v3851_v4  ;;  %v3901_v20 = vmul.f32 %v4922_v3, %v3856_v63  ;;  %v3979_v57 = vmul.f32 %v4922_v3, %v4922_v3  ;;  %v3903_v50 = vmul.f32 %v4921_v34, %v3866_v17 }
 0x239   : > { %v3935_v46 = vadd.f32 %v3934_v18, %v3900_v27  ;;  %v4048_v62 = vadd.f32 %v4047_v54, %v4013_v37  ;;  %v4017_v53 = vmul.f32 %v3981_v13, %v3866_v17 }
 0x23a   : > { %v4015_v49 = vmul.f32 %v3979_v57, %v3856_v63 }
 0x23b   : > { %v4049_v11 = vadd.f32 %v4048_v62, %v4014_v29  ;;  %v3936_v8 = vadd.f32 %v3935_v46, %v3901_v20 }
 0x23d   : > { %v3937_v47 = vadd.f32 %v3936_v8, %v3902_v15  ;;  %v4050_v30 = vadd.f32 %v4049_v11, %v4015_v49 }
 0x23f   : > { %v3938_v16 = vadd.f32 %v3937_v47, %v3903_v50  ;;  %v4051_v6 = vadd.f32 %v4050_v30, %v4016_v22 }
 0x241   : > { %v3939_v9 = vrot.slane %v3938_v16, 4  ;;  %v4052_v61 = vadd.f32 %v4051_v6, %v4017_v53 }
 0x243   : > { %v3940_v14 = vadd.f32 %v3939_v9, %v3938_v16  ;;  %v4053_v40 = vrot.slane %v4052_v61, 4 }
 0x245   : > { %v3941_v19 = vrot.slane %v3940_v14, 2  ;;  %v4054_v51 = vadd.f32 %v4053_v40, %v4052_v61 }
 0x247   : > { %v3942_v38 = vadd.f32 %v3941_v19, %v3940_v14  ;;  %v4055_v56 = vrot.slane %v4054_v51, 2 }
 0x249   : > { %v3943_v52 = vrot.slane %v3942_v38, 1  ;;  %v4056_v55 = vadd.f32 %v4055_v56, %v4054_v51 }
 0x24b   : > { %v3944_v33 = vadd.f32 %v3943_v52, %v3942_v38  ;;  %v4057_v60 = vrot.slane %v4056_v55, 1 }
 0x24d   : > { %3945 = vst [vmem:[%s199_s21] sm:$0x1] %v3944_v33  ;;  %v4058_v41 = vadd.f32 %v4057_v60, %v4056_v55 }
 0x24f   : > { %4059 = vst [vmem:[%s202_s24] sm:$0x1] %v4058_v41 }
 0x250 PF: > { %s15_s15 = sadd.s32 1, %s5276_s15  }
 0x251   : > { %p12_p4 = scmp.ge.s32.totalorder %s15_s15, 4  }
 0x253   :  { %14 = sbr.rel (!%p12_p4) target bundleno = 1 (0x1), region = 82 }

</bundles_post_ra>
